<compile_context>
chip_gen: v5e
topology: v5e:2x2
jax: 0.10.0
libtpu: 0.0.40
codegen_flags: <defaults>
</compile_context>

<pallas_src>
import functools

import jax
import jax.numpy as jnp
from jax.experimental import pallas as pl
from jax.experimental.pallas import tpu as pltpu

# ----------------------- model config (small, synthetic) --------------------
VOCAB = 1000
MAX_POS = 64
HIDDEN = 256        # stands in for 768
N_HEADS = 2         # stands in for 12
HEAD_DIM = HIDDEN // N_HEADS   # 128 == one lane width
FFN = 512           # stands in for 3072
N_LAYERS = 2        # stands in for 6
LN_EPS = 1e-12
NEG_INF = -1e9

BATCH = 2
SEQ = 16


# ------------------------------ kernel helpers -------------------------------
def _ln(x, g, b):
    """LayerNorm over last axis, fp32."""
    mu = jnp.mean(x, axis=-1, keepdims=True)
    var = jnp.mean((x - mu) ** 2, axis=-1, keepdims=True)
    return (x - mu) * jax.lax.rsqrt(var + LN_EPS) * g + b


# ------------------------------ fused Pallas kernel ---------------------------
def _fused_forward_kernel(
        emb_ref, mask_ref, eg_ref, eb_ref,
        wqkv_ref, bqkv_ref, wo_ref, bo_ref, ln1g_ref, ln1b_ref,
        w1_ref, b1_ref, w2_ref, b2_ref, ln2g_ref, ln2b_ref,
        prew_ref, preb_ref, clsw_ref, clsb_ref,
        o_ref):
    """One batch element: emb-LN -> N_LAYERS encoder layers -> classifier head."""
    x = emb_ref[...].astype(jnp.float32)                       # (S, H)
    S = x.shape[0]
    h = _ln(x, eg_ref[...], eb_ref[...])                       # (S, H) f32
    mask = mask_ref[...]                                       # (1, S) additive key mask

    for l in range(N_LAYERS):
        # ---- attention block: fused QKV proj -> per-head attn -> out proj -> LN1
        hb = h.astype(jnp.bfloat16)
        # attention scale already folded into the Q columns of wqkv/bqkv
        qkv = jnp.dot(hb, wqkv_ref[l],
                      preferred_element_type=jnp.float32) + bqkv_ref[l]   # (S, 3H)
        wo_l = wo_ref[l]                                        # (H, H) bf16

        attn = jnp.zeros((S, HIDDEN), jnp.float32)
        for hd in range(N_HEADS):
            q = qkv[:, hd * HEAD_DIM:(hd + 1) * HEAD_DIM].astype(jnp.bfloat16)
            k = qkv[:, HIDDEN + hd * HEAD_DIM:HIDDEN + (hd + 1) * HEAD_DIM
                    ].astype(jnp.bfloat16)
            v = qkv[:, 2 * HIDDEN + hd * HEAD_DIM:2 * HIDDEN + (hd + 1) * HEAD_DIM
                    ].astype(jnp.bfloat16)
            s = jnp.dot(q, k.T, preferred_element_type=jnp.float32) + mask   # (S, S)
            s = s - jnp.max(s, axis=-1, keepdims=True)
            p = jnp.exp(s)
            p = p * pl.reciprocal(jnp.sum(p, axis=-1, keepdims=True), approx=True)
            ctx = jnp.dot(p.astype(jnp.bfloat16), v,
                          preferred_element_type=jnp.float32)                # (S, Dh)
            # out-projection folded per head: concat(ctx_h) @ Wo == sum_h ctx_h @ Wo[h]
            attn = attn + jnp.dot(
                ctx.astype(jnp.bfloat16),
                wo_l[hd * HEAD_DIM:(hd + 1) * HEAD_DIM, :],
                preferred_element_type=jnp.float32)

        y = h + attn + bo_ref[l]                                # residual + out bias
        h = _ln(y, ln1g_ref[l], ln1b_ref[l])

        # ---- FFN block: w1 + GELU + w2 -> residual -> LN2
        hb = h.astype(jnp.bfloat16)
        f = jnp.dot(hb, w1_ref[l], preferred_element_type=jnp.float32) + b1_ref[l]
        # TODO(synk): HF DistilBERT uses exact (erf) GELU; tanh approximation used here.
        f = jax.nn.gelu(f, approximate=True)
        ff = jnp.dot(f.astype(jnp.bfloat16), w2_ref[l],
                     preferred_element_type=jnp.float32) + b2_ref[l]
        h = _ln(h + ff, ln2g_ref[l], ln2b_ref[l])

    # ---- classifier head on the CLS row (dropout = identity at eval time)
    cls = h[0:1, :]                                             # (1, H)
    p1 = jnp.dot(cls.astype(jnp.bfloat16), prew_ref[...],
                 preferred_element_type=jnp.float32) + preb_ref[...]
    p1 = jnp.tanh(p1)                                           # (1, H)
    # single-output classifier as VPU multiply + lane reduction (no padded matmul)
    logit = jnp.sum(p1 * clsw_ref[...], axis=-1, keepdims=True) + clsb_ref[...]  # (1,1)
    o_ref[...] = jnp.broadcast_to(logit, o_ref.shape).astype(o_ref.dtype)


def fused_forward(emb, mask_bias, params):
    B, S, H = emb.shape
    F = FFN
    L = N_LAYERS
    rep = lambda shape: pl.BlockSpec(shape, lambda b: (0,) * len(shape))
    out = pl.pallas_call(
        _fused_forward_kernel,
        out_shape=jax.ShapeDtypeStruct((B, 8, 128), jnp.float32),
        grid=(B,),
        in_specs=[
            pl.BlockSpec((None, S, H), lambda b: (b, 0, 0)),    # embeddings
            pl.BlockSpec((None, 1, S), lambda b: (b, 0, 0)),    # additive key mask
            rep((1, H)), rep((1, H)),                           # emb LN gamma / beta
            rep((L, H, 3 * H)), rep((L, 1, 3 * H)),             # wqkv / bqkv
            rep((L, H, H)), rep((L, 1, H)),                     # wo / bo
            rep((L, 1, H)), rep((L, 1, H)),                     # ln1 gamma / beta
            rep((L, H, F)), rep((L, 1, F)),                     # w1 / b1
            rep((L, F, H)), rep((L, 1, H)),                     # w2 / b2
            rep((L, 1, H)), rep((L, 1, H)),                     # ln2 gamma / beta
            rep((H, H)), rep((1, H)),                           # pre_classifier w / b
            rep((1, H)), rep((1, 1)),                           # classifier w / b
        ],
        out_specs=pl.BlockSpec((None, 8, 128), lambda b: (b, 0, 0)),
        compiler_params=pltpu.CompilerParams(
            dimension_semantics=("parallel",),
            vmem_limit_bytes=32 * 1024 * 1024,
        ),
    )(emb, mask_bias,
      params["emb_ln_g"], params["emb_ln_b"],
      params["wqkv"], params["bqkv"], params["wo"], params["bo"],
      params["ln1_g"], params["ln1_b"],
      params["w1"], params["b1"], params["w2"], params["b2"],
      params["ln2_g"], params["ln2_b"],
      params["pre_w"], params["pre_b"],
      params["cls_w"], params["cls_b"])
    return out[:, 0, :1]                                        # (B, 1)


# ------------------------------ parameter init -------------------------------
def init_params(key):
    def nrm(k, shape, scale=0.02):
        return scale * jax.random.normal(k, shape, dtype=jnp.float32)

    n_keys = 4 + N_LAYERS * 6
    keys = iter(jax.random.split(key, n_keys))
    H, F, L = HIDDEN, FFN, N_LAYERS
    att_scale = 1.0 / (HEAD_DIM ** 0.5)

    p = {
        "word_emb": nrm(next(keys), (VOCAB, H)),
        "pos_emb": nrm(next(keys), (MAX_POS, H)),
        "emb_ln_g": jnp.ones((1, H), jnp.float32),
        "emb_ln_b": jnp.zeros((1, H), jnp.float32),
        "pre_w": nrm(next(keys), (H, H)).astype(jnp.bfloat16),
        "pre_b": jnp.zeros((1, H), jnp.float32),
        "cls_w": nrm(next(keys), (1, H)),                 # single-logit classifier
        "cls_b": jnp.zeros((1, 1), jnp.float32),
    }

    wqkv, bqkv, wo, bo, ln1g, ln1b = [], [], [], [], [], []
    w1, b1, w2, b2, ln2g, ln2b = [], [], [], [], [], []
    for _ in range(L):
        wq = nrm(next(keys), (H, H)) * att_scale          # fold attention scale into Q
        wk = nrm(next(keys), (H, H))
        wv = nrm(next(keys), (H, H))
        wqkv.append(jnp.concatenate([wq, wk, wv], axis=1).astype(jnp.bfloat16))
        bqkv.append(jnp.zeros((1, 3 * H), jnp.float32))   # (scale-fold applies to Q bias too)
        wo.append(nrm(next(keys), (H, H)).astype(jnp.bfloat16))
        bo.append(jnp.zeros((1, H), jnp.float32))
        ln1g.append(jnp.ones((1, H), jnp.float32))
        ln1b.append(jnp.zeros((1, H), jnp.float32))
        w1.append(nrm(next(keys), (H, F)).astype(jnp.bfloat16))
        b1.append(jnp.zeros((1, F), jnp.float32))
        w2.append(nrm(next(keys), (F, H)).astype(jnp.bfloat16))
        b2.append(jnp.zeros((1, H), jnp.float32))
        ln2g.append(jnp.ones((1, H), jnp.float32))
        ln2b.append(jnp.zeros((1, H), jnp.float32))

    stack = lambda xs: jnp.stack(xs, axis=0)
    p.update({
        "wqkv": stack(wqkv), "bqkv": stack(bqkv),
        "wo": stack(wo), "bo": stack(bo),
        "ln1_g": stack(ln1g), "ln1_b": stack(ln1b),
        "w1": stack(w1), "b1": stack(b1),
        "w2": stack(w2), "b2": stack(b2),
        "ln2_g": stack(ln2g), "ln2_b": stack(ln2b),
    })
    return p


# ------------------------------ forward pass ---------------------------------
def distilbert_class_forward(params, input_ids, attention_mask, token_type_ids):
    # token_type_ids accepted but unused — DistilBERT has no token-type
    # embeddings; matches the PyTorch module which never forwards it to l1.
    del token_type_ids
    B, S = input_ids.shape

    # Embedding gather is plain-JAX glue; everything else is one fused kernel.
    emb = params["word_emb"][input_ids] + params["pos_emb"][jnp.arange(S)][None, :, :]

    # Additive key mask: 0 for real tokens, NEG_INF for padding.  (B,1,S)
    mask_bias = ((1.0 - attention_mask.astype(jnp.float32)) * NEG_INF).reshape(B, 1, S)

    return fused_forward(emb, mask_bias, params)                # (B, 1)


# ----------------------------------- main -------------------------------------
if __name__ == "__main__":
    key = jax.random.PRNGKey(0)
    k_param, k_ids = jax.random.split(key)

    params = init_params(k_param)

    input_ids = jax.random.randint(k_ids, (BATCH, SEQ), 0, VOCAB, dtype=jnp.int32)
    attention_mask = jnp.ones((BATCH, SEQ), dtype=jnp.int32)
    attention_mask = attention_mask.at[1, SEQ - 3:].set(0)   # some padding in batch 1
    token_type_ids = jnp.zeros((BATCH, SEQ), dtype=jnp.int32)

    fwd = jax.jit(functools.partial(distilbert_class_forward, params))
    out = fwd(input_ids, attention_mask, token_type_ids)
    jax.block_until_ready(out)

    assert out.shape == (BATCH, 1) and out.dtype == jnp.float32
    print("KERNEL_OK")
</pallas_src>

<mosaic_0001>
module attributes {stable_mosaic.version = 11 : i64} {
  func.func @_fused_forward_kernel(%arg0: i32, %arg1: memref<1x16x256xf32, #tpu.memory_space<vmem>>, %arg2: memref<1x1x16xf32, #tpu.memory_space<vmem>>, %arg3: memref<1x256xf32, #tpu.memory_space<vmem>>, %arg4: memref<1x256xf32, #tpu.memory_space<vmem>>, %arg5: memref<2x256x768xbf16, #tpu.memory_space<vmem>>, %arg6: memref<2x1x768xf32, #tpu.memory_space<vmem>>, %arg7: memref<2x256x256xbf16, #tpu.memory_space<vmem>>, %arg8: memref<2x1x256xf32, #tpu.memory_space<vmem>>, %arg9: memref<2x1x256xf32, #tpu.memory_space<vmem>>, %arg10: memref<2x1x256xf32, #tpu.memory_space<vmem>>, %arg11: memref<2x256x512xbf16, #tpu.memory_space<vmem>>, %arg12: memref<2x1x512xf32, #tpu.memory_space<vmem>>, %arg13: memref<2x512x256xbf16, #tpu.memory_space<vmem>>, %arg14: memref<2x1x256xf32, #tpu.memory_space<vmem>>, %arg15: memref<2x1x256xf32, #tpu.memory_space<vmem>>, %arg16: memref<2x1x256xf32, #tpu.memory_space<vmem>>, %arg17: memref<256x256xbf16, #tpu.memory_space<vmem>>, %arg18: memref<1x256xf32, #tpu.memory_space<vmem>>, %arg19: memref<1x256xf32, #tpu.memory_space<vmem>>, %arg20: memref<1x1xf32, #tpu.memory_space<vmem>>, %arg21: memref<1x8x128xf32, #tpu.memory_space<vmem>>) attributes {dimension_semantics = [#tpu.dimension_semantics<parallel>], iteration_bounds = array<i64: 2>, scalar_prefetch = 0 : i64, scratch_operands = 0 : i64, tpu.core_type = #tpu.core_type<tc>, window_params = [{transform_indices = @transform_0, window_bounds = array<i64: 1, 16, 256>}, {transform_indices = @transform_1, window_bounds = array<i64: 1, 1, 16>}, {pipeline_mode = #tpu.pipeline_mode<synchronous>, transform_indices = @transform_2, window_bounds = array<i64: 1, 256>}, {pipeline_mode = #tpu.pipeline_mode<synchronous>, transform_indices = @transform_3, window_bounds = array<i64: 1, 256>}, {pipeline_mode = #tpu.pipeline_mode<synchronous>, transform_indices = @transform_4, window_bounds = array<i64: 2, 256, 768>}, {pipeline_mode = #tpu.pipeline_mode<synchronous>, transform_indices = @transform_5, window_bounds = array<i64: 2, 1, 768>}, {pipeline_mode = #tpu.pipeline_mode<synchronous>, transform_indices = @transform_6, window_bounds = array<i64: 2, 256, 256>}, {pipeline_mode = #tpu.pipeline_mode<synchronous>, transform_indices = @transform_7, window_bounds = array<i64: 2, 1, 256>}, {pipeline_mode = #tpu.pipeline_mode<synchronous>, transform_indices = @transform_8, window_bounds = array<i64: 2, 1, 256>}, {pipeline_mode = #tpu.pipeline_mode<synchronous>, transform_indices = @transform_9, window_bounds = array<i64: 2, 1, 256>}, {pipeline_mode = #tpu.pipeline_mode<synchronous>, transform_indices = @transform_10, window_bounds = array<i64: 2, 256, 512>}, {pipeline_mode = #tpu.pipeline_mode<synchronous>, transform_indices = @transform_11, window_bounds = array<i64: 2, 1, 512>}, {pipeline_mode = #tpu.pipeline_mode<synchronous>, transform_indices = @transform_12, window_bounds = array<i64: 2, 512, 256>}, {pipeline_mode = #tpu.pipeline_mode<synchronous>, transform_indices = @transform_13, window_bounds = array<i64: 2, 1, 256>}, {pipeline_mode = #tpu.pipeline_mode<synchronous>, transform_indices = @transform_14, window_bounds = array<i64: 2, 1, 256>}, {pipeline_mode = #tpu.pipeline_mode<synchronous>, transform_indices = @transform_15, window_bounds = array<i64: 2, 1, 256>}, {pipeline_mode = #tpu.pipeline_mode<synchronous>, transform_indices = @transform_16, window_bounds = array<i64: 256, 256>}, {pipeline_mode = #tpu.pipeline_mode<synchronous>, transform_indices = @transform_17, window_bounds = array<i64: 1, 256>}, {pipeline_mode = #tpu.pipeline_mode<synchronous>, transform_indices = @transform_18, window_bounds = array<i64: 1, 256>}, {pipeline_mode = #tpu.pipeline_mode<synchronous>, transform_indices = @transform_19, window_bounds = array<i64: 1, 1>}, {transform_indices = @transform_20, window_bounds = array<i64: 1, 8, 128>}]} {
    %c0 = arith.constant 0 : index
    %c0_0 = arith.constant 0 : index
    %c0_1 = arith.constant 0 : index
    %0 = vector.load %arg1[%c0, %c0_0, %c0_1] : memref<1x16x256xf32, #tpu.memory_space<vmem>>, vector<1x16x256xf32>
    %1 = vector.shape_cast %0 : vector<1x16x256xf32> to vector<16x256xf32>
    %c0_2 = arith.constant 0 : index
    %c0_3 = arith.constant 0 : index
    %2 = vector.load %arg3[%c0_2, %c0_3] : memref<1x256xf32, #tpu.memory_space<vmem>>, vector<1x256xf32>
    %c0_4 = arith.constant 0 : index
    %c0_5 = arith.constant 0 : index
    %3 = vector.load %arg4[%c0_4, %c0_5] : memref<1x256xf32, #tpu.memory_space<vmem>>, vector<1x256xf32>
    %cst = arith.constant dense<0.000000e+00> : vector<16xf32>
    %4 = vector.multi_reduction <add>, %1, %cst [1] : vector<16x256xf32> to vector<16xf32>
    %5 = vector.shape_cast %4 : vector<16xf32> to vector<16x1xf32>
    %cst_6 = arith.constant 2.560000e+02 : f32
    %6 = vector.broadcast %cst_6 : f32 to vector<16x1xf32>
    %7 = arith.divf %5, %6 : vector<16x1xf32>
    %8 = vector.broadcast %7 : vector<16x1xf32> to vector<16x256xf32>
    %9 = arith.subf %1, %8 : vector<16x256xf32>
    %10 = arith.mulf %9, %9 : vector<16x256xf32>
    %cst_7 = arith.constant dense<0.000000e+00> : vector<16xf32>
    %11 = vector.multi_reduction <add>, %10, %cst_7 [1] : vector<16x256xf32> to vector<16xf32>
    %12 = vector.shape_cast %11 : vector<16xf32> to vector<16x1xf32>
    %cst_8 = arith.constant 2.560000e+02 : f32
    %13 = vector.broadcast %cst_8 : f32 to vector<16x1xf32>
    %14 = arith.divf %12, %13 : vector<16x1xf32>
    %15 = vector.broadcast %7 : vector<16x1xf32> to vector<16x256xf32>
    %16 = arith.subf %1, %15 : vector<16x256xf32>
    %cst_9 = arith.constant 9.99999996E-13 : f32
    %17 = vector.broadcast %cst_9 : f32 to vector<16x1xf32>
    %18 = arith.addf %14, %17 : vector<16x1xf32>
    %19 = math.rsqrt %18 : vector<16x1xf32>
    %20 = vector.broadcast %19 : vector<16x1xf32> to vector<16x256xf32>
    %21 = arith.mulf %16, %20 : vector<16x256xf32>
    %22 = vector.broadcast %2 : vector<1x256xf32> to vector<16x256xf32>
    %23 = arith.mulf %21, %22 : vector<16x256xf32>
    %24 = vector.broadcast %3 : vector<1x256xf32> to vector<16x256xf32>
    %25 = arith.addf %23, %24 : vector<16x256xf32>
    %c0_10 = arith.constant 0 : index
    %c0_11 = arith.constant 0 : index
    %c0_12 = arith.constant 0 : index
    %26 = vector.load %arg2[%c0_10, %c0_11, %c0_12] : memref<1x1x16xf32, #tpu.memory_space<vmem>>, vector<1x1x16xf32>
    %27 = vector.shape_cast %26 : vector<1x1x16xf32> to vector<1x16xf32>
    %28 = arith.truncf %25 : vector<16x256xf32> to vector<16x256xbf16>
    %c0_13 = arith.constant 0 : index
    %c0_14 = arith.constant 0 : index
    %c0_15 = arith.constant 0 : index
    %29 = vector.load %arg5[%c0_13, %c0_14, %c0_15] : memref<2x256x768xbf16, #tpu.memory_space<vmem>>, vector<1x256x768xbf16>
    %30 = vector.shape_cast %29 : vector<1x256x768xbf16> to vector<256x768xbf16>
    %cst_16 = arith.constant dense<0.000000e+00> : vector<16x768xf32>
    %31 = tpu.matmul %28, %30, %cst_16 {dimension_numbers = #tpu.dot_dimension_numbers<[1], [0], [0], [1], [0, 0, 1, 1], [], []>} : vector<16x256xbf16>, vector<256x768xbf16>, vector<16x768xf32> -> vector<16x768xf32>
    %c0_17 = arith.constant 0 : index
    %c0_18 = arith.constant 0 : index
    %c0_19 = arith.constant 0 : index
    %32 = vector.load %arg6[%c0_17, %c0_18, %c0_19] : memref<2x1x768xf32, #tpu.memory_space<vmem>>, vector<1x1x768xf32>
    %33 = vector.shape_cast %32 : vector<1x1x768xf32> to vector<1x768xf32>
    %34 = vector.broadcast %33 : vector<1x768xf32> to vector<16x768xf32>
    %35 = arith.addf %31, %34 : vector<16x768xf32>
    %c0_20 = arith.constant 0 : index
    %c0_21 = arith.constant 0 : index
    %c0_22 = arith.constant 0 : index
    %36 = vector.load %arg7[%c0_20, %c0_21, %c0_22] : memref<2x256x256xbf16, #tpu.memory_space<vmem>>, vector<1x256x256xbf16>
    %37 = vector.shape_cast %36 : vector<1x256x256xbf16> to vector<256x256xbf16>
    %cst_23 = arith.constant 0.000000e+00 : f32
    %38 = vector.broadcast %cst_23 : f32 to vector<16x256xf32>
    %39 = vector.extract_strided_slice %35 {offsets = [0, 0], sizes = [16, 128], strides = [1, 1]} : vector<16x768xf32> to vector<16x128xf32>
    %40 = arith.truncf %39 : vector<16x128xf32> to vector<16x128xbf16>
    %41 = vector.extract_strided_slice %35 {offsets = [0, 256], sizes = [16, 128], strides = [1, 1]} : vector<16x768xf32> to vector<16x128xf32>
    %42 = arith.truncf %41 : vector<16x128xf32> to vector<16x128xbf16>
    %43 = vector.extract_strided_slice %35 {offsets = [0, 512], sizes = [16, 128], strides = [1, 1]} : vector<16x768xf32> to vector<16x128xf32>
    %44 = arith.truncf %43 : vector<16x128xf32> to vector<16x128xbf16>
    %45 = tpu.transpose %42, [1, 0] : vector<16x128xbf16> -> vector<128x16xbf16>
    %cst_24 = arith.constant dense<0.000000e+00> : vector<16x16xf32>
    %46 = tpu.matmul %40, %45, %cst_24 {dimension_numbers = #tpu.dot_dimension_numbers<[1], [0], [0], [1], [0, 0, 1, 1], [], []>} : vector<16x128xbf16>, vector<128x16xbf16>, vector<16x16xf32> -> vector<16x16xf32>
    %47 = vector.broadcast %27 : vector<1x16xf32> to vector<16x16xf32>
    %48 = arith.addf %46, %47 : vector<16x16xf32>
    %cst_25 = arith.constant dense<0xFF800000> : vector<16xf32>
    %49 = vector.multi_reduction <maximumf>, %48, %cst_25 [1] : vector<16x16xf32> to vector<16xf32>
    %50 = vector.shape_cast %49 : vector<16xf32> to vector<16x1xf32>
    %51 = vector.broadcast %50 : vector<16x1xf32> to vector<16x16xf32>
    %52 = arith.subf %48, %51 : vector<16x16xf32>
    %53 = math.exp %52 : vector<16x16xf32>
    %cst_26 = arith.constant dense<0.000000e+00> : vector<16xf32>
    %54 = vector.multi_reduction <add>, %53, %cst_26 [1] : vector<16x16xf32> to vector<16xf32>
    %55 = vector.shape_cast %54 : vector<16xf32> to vector<16x1xf32>
    %56 = tpu.reciprocal %55 {approx = true} : vector<16x1xf32> -> vector<16x1xf32>
    %57 = vector.broadcast %56 : vector<16x1xf32> to vector<16x16xf32>
    %58 = arith.mulf %53, %57 : vector<16x16xf32>
    %59 = arith.truncf %58 : vector<16x16xf32> to vector<16x16xbf16>
    %cst_27 = arith.constant dense<0.000000e+00> : vector<16x128xf32>
    %60 = tpu.matmul %59, %44, %cst_27 {dimension_numbers = #tpu.dot_dimension_numbers<[1], [0], [0], [1], [0, 0, 1, 1], [], []>} : vector<16x16xbf16>, vector<16x128xbf16>, vector<16x128xf32> -> vector<16x128xf32>
    %61 = arith.truncf %60 : vector<16x128xf32> to vector<16x128xbf16>
    %62 = vector.extract_strided_slice %37 {offsets = [0, 0], sizes = [128, 256], strides = [1, 1]} : vector<256x256xbf16> to vector<128x256xbf16>
    %cst_28 = arith.constant dense<0.000000e+00> : vector<16x256xf32>
    %63 = tpu.matmul %61, %62, %cst_28 {dimension_numbers = #tpu.dot_dimension_numbers<[1], [0], [0], [1], [0, 0, 1, 1], [], []>} : vector<16x128xbf16>, vector<128x256xbf16>, vector<16x256xf32> -> vector<16x256xf32>
    %64 = arith.addf %38, %63 : vector<16x256xf32>
    %65 = vector.extract_strided_slice %35 {offsets = [0, 128], sizes = [16, 128], strides = [1, 1]} : vector<16x768xf32> to vector<16x128xf32>
    %66 = arith.truncf %65 : vector<16x128xf32> to vector<16x128xbf16>
    %67 = vector.extract_strided_slice %35 {offsets = [0, 384], sizes = [16, 128], strides = [1, 1]} : vector<16x768xf32> to vector<16x128xf32>
    %68 = arith.truncf %67 : vector<16x128xf32> to vector<16x128xbf16>
    %69 = vector.extract_strided_slice %35 {offsets = [0, 640], sizes = [16, 128], strides = [1, 1]} : vector<16x768xf32> to vector<16x128xf32>
    %70 = arith.truncf %69 : vector<16x128xf32> to vector<16x128xbf16>
    %71 = tpu.transpose %68, [1, 0] : vector<16x128xbf16> -> vector<128x16xbf16>
    %cst_29 = arith.constant dense<0.000000e+00> : vector<16x16xf32>
    %72 = tpu.matmul %66, %71, %cst_29 {dimension_numbers = #tpu.dot_dimension_numbers<[1], [0], [0], [1], [0, 0, 1, 1], [], []>} : vector<16x128xbf16>, vector<128x16xbf16>, vector<16x16xf32> -> vector<16x16xf32>
    %73 = vector.broadcast %27 : vector<1x16xf32> to vector<16x16xf32>
    %74 = arith.addf %72, %73 : vector<16x16xf32>
    %cst_30 = arith.constant dense<0xFF800000> : vector<16xf32>
    %75 = vector.multi_reduction <maximumf>, %74, %cst_30 [1] : vector<16x16xf32> to vector<16xf32>
    %76 = vector.shape_cast %75 : vector<16xf32> to vector<16x1xf32>
    %77 = vector.broadcast %76 : vector<16x1xf32> to vector<16x16xf32>
    %78 = arith.subf %74, %77 : vector<16x16xf32>
    %79 = math.exp %78 : vector<16x16xf32>
    %cst_31 = arith.constant dense<0.000000e+00> : vector<16xf32>
    %80 = vector.multi_reduction <add>, %79, %cst_31 [1] : vector<16x16xf32> to vector<16xf32>
    %81 = vector.shape_cast %80 : vector<16xf32> to vector<16x1xf32>
    %82 = tpu.reciprocal %81 {approx = true} : vector<16x1xf32> -> vector<16x1xf32>
    %83 = vector.broadcast %82 : vector<16x1xf32> to vector<16x16xf32>
    %84 = arith.mulf %79, %83 : vector<16x16xf32>
    %85 = arith.truncf %84 : vector<16x16xf32> to vector<16x16xbf16>
    %cst_32 = arith.constant dense<0.000000e+00> : vector<16x128xf32>
    %86 = tpu.matmul %85, %70, %cst_32 {dimension_numbers = #tpu.dot_dimension_numbers<[1], [0], [0], [1], [0, 0, 1, 1], [], []>} : vector<16x16xbf16>, vector<16x128xbf16>, vector<16x128xf32> -> vector<16x128xf32>
    %87 = arith.truncf %86 : vector<16x128xf32> to vector<16x128xbf16>
    %88 = vector.extract_strided_slice %37 {offsets = [128, 0], sizes = [128, 256], strides = [1, 1]} : vector<256x256xbf16> to vector<128x256xbf16>
    %cst_33 = arith.constant dense<0.000000e+00> : vector<16x256xf32>
    %89 = tpu.matmul %87, %88, %cst_33 {dimension_numbers = #tpu.dot_dimension_numbers<[1], [0], [0], [1], [0, 0, 1, 1], [], []>} : vector<16x128xbf16>, vector<128x256xbf16>, vector<16x256xf32> -> vector<16x256xf32>
    %90 = arith.addf %64, %89 : vector<16x256xf32>
    %91 = arith.addf %25, %90 : vector<16x256xf32>
    %c0_34 = arith.constant 0 : index
    %c0_35 = arith.constant 0 : index
    %c0_36 = arith.constant 0 : index
    %92 = vector.load %arg8[%c0_34, %c0_35, %c0_36] : memref<2x1x256xf32, #tpu.memory_space<vmem>>, vector<1x1x256xf32>
    %93 = vector.shape_cast %92 : vector<1x1x256xf32> to vector<1x256xf32>
    %94 = vector.broadcast %93 : vector<1x256xf32> to vector<16x256xf32>
    %95 = arith.addf %91, %94 : vector<16x256xf32>
    %c0_37 = arith.constant 0 : index
    %c0_38 = arith.constant 0 : index
    %c0_39 = arith.constant 0 : index
    %96 = vector.load %arg9[%c0_37, %c0_38, %c0_39] : memref<2x1x256xf32, #tpu.memory_space<vmem>>, vector<1x1x256xf32>
    %97 = vector.shape_cast %96 : vector<1x1x256xf32> to vector<1x256xf32>
    %c0_40 = arith.constant 0 : index
    %c0_41 = arith.constant 0 : index
    %c0_42 = arith.constant 0 : index
    %98 = vector.load %arg10[%c0_40, %c0_41, %c0_42] : memref<2x1x256xf32, #tpu.memory_space<vmem>>, vector<1x1x256xf32>
    %99 = vector.shape_cast %98 : vector<1x1x256xf32> to vector<1x256xf32>
    %cst_43 = arith.constant dense<0.000000e+00> : vector<16xf32>
    %100 = vector.multi_reduction <add>, %95, %cst_43 [1] : vector<16x256xf32> to vector<16xf32>
    %101 = vector.shape_cast %100 : vector<16xf32> to vector<16x1xf32>
    %cst_44 = arith.constant 2.560000e+02 : f32
    %102 = vector.broadcast %cst_44 : f32 to vector<16x1xf32>
    %103 = arith.divf %101, %102 : vector<16x1xf32>
    %104 = vector.broadcast %103 : vector<16x1xf32> to vector<16x256xf32>
    %105 = arith.subf %95, %104 : vector<16x256xf32>
    %106 = arith.mulf %105, %105 : vector<16x256xf32>
    %cst_45 = arith.constant dense<0.000000e+00> : vector<16xf32>
    %107 = vector.multi_reduction <add>, %106, %cst_45 [1] : vector<16x256xf32> to vector<16xf32>
    %108 = vector.shape_cast %107 : vector<16xf32> to vector<16x1xf32>
    %cst_46 = arith.constant 2.560000e+02 : f32
    %109 = vector.broadcast %cst_46 : f32 to vector<16x1xf32>
    %110 = arith.divf %108, %109 : vector<16x1xf32>
    %111 = vector.broadcast %103 : vector<16x1xf32> to vector<16x256xf32>
    %112 = arith.subf %95, %111 : vector<16x256xf32>
    %cst_47 = arith.constant 9.99999996E-13 : f32
    %113 = vector.broadcast %cst_47 : f32 to vector<16x1xf32>
    %114 = arith.addf %110, %113 : vector<16x1xf32>
    %115 = math.rsqrt %114 : vector<16x1xf32>
    %116 = vector.broadcast %115 : vector<16x1xf32> to vector<16x256xf32>
    %117 = arith.mulf %112, %116 : vector<16x256xf32>
    %118 = vector.broadcast %97 : vector<1x256xf32> to vector<16x256xf32>
    %119 = arith.mulf %117, %118 : vector<16x256xf32>
    %120 = vector.broadcast %99 : vector<1x256xf32> to vector<16x256xf32>
    %121 = arith.addf %119, %120 : vector<16x256xf32>
    %122 = arith.truncf %121 : vector<16x256xf32> to vector<16x256xbf16>
    %c0_48 = arith.constant 0 : index
    %c0_49 = arith.constant 0 : index
    %c0_50 = arith.constant 0 : index
    %123 = vector.load %arg11[%c0_48, %c0_49, %c0_50] : memref<2x256x512xbf16, #tpu.memory_space<vmem>>, vector<1x256x512xbf16>
    %124 = vector.shape_cast %123 : vector<1x256x512xbf16> to vector<256x512xbf16>
    %cst_51 = arith.constant dense<0.000000e+00> : vector<16x512xf32>
    %125 = tpu.matmul %122, %124, %cst_51 {dimension_numbers = #tpu.dot_dimension_numbers<[1], [0], [0], [1], [0, 0, 1, 1], [], []>} : vector<16x256xbf16>, vector<256x512xbf16>, vector<16x512xf32> -> vector<16x512xf32>
    %c0_52 = arith.constant 0 : index
    %c0_53 = arith.constant 0 : index
    %c0_54 = arith.constant 0 : index
    %126 = vector.load %arg12[%c0_52, %c0_53, %c0_54] : memref<2x1x512xf32, #tpu.memory_space<vmem>>, vector<1x1x512xf32>
    %127 = vector.shape_cast %126 : vector<1x1x512xf32> to vector<1x512xf32>
    %128 = vector.broadcast %127 : vector<1x512xf32> to vector<16x512xf32>
    %129 = arith.addf %125, %128 : vector<16x512xf32>
    %130 = arith.mulf %129, %129 : vector<16x512xf32>
    %131 = arith.mulf %129, %130 : vector<16x512xf32>
    %cst_55 = arith.constant 4.471500e-02 : f32
    %132 = vector.broadcast %cst_55 : f32 to vector<16x512xf32>
    %133 = arith.mulf %132, %131 : vector<16x512xf32>
    %134 = arith.addf %129, %133 : vector<16x512xf32>
    %cst_56 = arith.constant 0.797884583 : f32
    %135 = vector.broadcast %cst_56 : f32 to vector<16x512xf32>
    %136 = arith.mulf %135, %134 : vector<16x512xf32>
    %137 = math.tanh %136 : vector<16x512xf32>
    %cst_57 = arith.constant 1.000000e+00 : f32
    %138 = vector.broadcast %cst_57 : f32 to vector<16x512xf32>
    %139 = arith.addf %138, %137 : vector<16x512xf32>
    %cst_58 = arith.constant 5.000000e-01 : f32
    %140 = vector.broadcast %cst_58 : f32 to vector<16x512xf32>
    %141 = arith.mulf %140, %139 : vector<16x512xf32>
    %142 = arith.mulf %129, %141 : vector<16x512xf32>
    %143 = arith.truncf %142 : vector<16x512xf32> to vector<16x512xbf16>
    %c0_59 = arith.constant 0 : index
    %c0_60 = arith.constant 0 : index
    %c0_61 = arith.constant 0 : index
    %144 = vector.load %arg13[%c0_59, %c0_60, %c0_61] : memref<2x512x256xbf16, #tpu.memory_space<vmem>>, vector<1x512x256xbf16>
    %145 = vector.shape_cast %144 : vector<1x512x256xbf16> to vector<512x256xbf16>
    %cst_62 = arith.constant dense<0.000000e+00> : vector<16x256xf32>
    %146 = tpu.matmul %143, %145, %cst_62 {dimension_numbers = #tpu.dot_dimension_numbers<[1], [0], [0], [1], [0, 0, 1, 1], [], []>} : vector<16x512xbf16>, vector<512x256xbf16>, vector<16x256xf32> -> vector<16x256xf32>
    %c0_63 = arith.constant 0 : index
    %c0_64 = arith.constant 0 : index
    %c0_65 = arith.constant 0 : index
    %147 = vector.load %arg14[%c0_63, %c0_64, %c0_65] : memref<2x1x256xf32, #tpu.memory_space<vmem>>, vector<1x1x256xf32>
    %148 = vector.shape_cast %147 : vector<1x1x256xf32> to vector<1x256xf32>
    %149 = vector.broadcast %148 : vector<1x256xf32> to vector<16x256xf32>
    %150 = arith.addf %146, %149 : vector<16x256xf32>
    %151 = arith.addf %121, %150 : vector<16x256xf32>
    %c0_66 = arith.constant 0 : index
    %c0_67 = arith.constant 0 : index
    %c0_68 = arith.constant 0 : index
    %152 = vector.load %arg15[%c0_66, %c0_67, %c0_68] : memref<2x1x256xf32, #tpu.memory_space<vmem>>, vector<1x1x256xf32>
    %153 = vector.shape_cast %152 : vector<1x1x256xf32> to vector<1x256xf32>
    %c0_69 = arith.constant 0 : index
    %c0_70 = arith.constant 0 : index
    %c0_71 = arith.constant 0 : index
    %154 = vector.load %arg16[%c0_69, %c0_70, %c0_71] : memref<2x1x256xf32, #tpu.memory_space<vmem>>, vector<1x1x256xf32>
    %155 = vector.shape_cast %154 : vector<1x1x256xf32> to vector<1x256xf32>
    %cst_72 = arith.constant dense<0.000000e+00> : vector<16xf32>
    %156 = vector.multi_reduction <add>, %151, %cst_72 [1] : vector<16x256xf32> to vector<16xf32>
    %157 = vector.shape_cast %156 : vector<16xf32> to vector<16x1xf32>
    %cst_73 = arith.constant 2.560000e+02 : f32
    %158 = vector.broadcast %cst_73 : f32 to vector<16x1xf32>
    %159 = arith.divf %157, %158 : vector<16x1xf32>
    %160 = vector.broadcast %159 : vector<16x1xf32> to vector<16x256xf32>
    %161 = arith.subf %151, %160 : vector<16x256xf32>
    %162 = arith.mulf %161, %161 : vector<16x256xf32>
    %cst_74 = arith.constant dense<0.000000e+00> : vector<16xf32>
    %163 = vector.multi_reduction <add>, %162, %cst_74 [1] : vector<16x256xf32> to vector<16xf32>
    %164 = vector.shape_cast %163 : vector<16xf32> to vector<16x1xf32>
    %cst_75 = arith.constant 2.560000e+02 : f32
    %165 = vector.broadcast %cst_75 : f32 to vector<16x1xf32>
    %166 = arith.divf %164, %165 : vector<16x1xf32>
    %167 = vector.broadcast %159 : vector<16x1xf32> to vector<16x256xf32>
    %168 = arith.subf %151, %167 : vector<16x256xf32>
    %cst_76 = arith.constant 9.99999996E-13 : f32
    %169 = vector.broadcast %cst_76 : f32 to vector<16x1xf32>
    %170 = arith.addf %166, %169 : vector<16x1xf32>
    %171 = math.rsqrt %170 : vector<16x1xf32>
    %172 = vector.broadcast %171 : vector<16x1xf32> to vector<16x256xf32>
    %173 = arith.mulf %168, %172 : vector<16x256xf32>
    %174 = vector.broadcast %153 : vector<1x256xf32> to vector<16x256xf32>
    %175 = arith.mulf %173, %174 : vector<16x256xf32>
    %176 = vector.broadcast %155 : vector<1x256xf32> to vector<16x256xf32>
    %177 = arith.addf %175, %176 : vector<16x256xf32>
    %178 = arith.truncf %177 : vector<16x256xf32> to vector<16x256xbf16>
    %c1 = arith.constant 1 : index
    %c0_77 = arith.constant 0 : index
    %c0_78 = arith.constant 0 : index
    %179 = vector.load %arg5[%c1, %c0_77, %c0_78] : memref<2x256x768xbf16, #tpu.memory_space<vmem>>, vector<1x256x768xbf16>
    %180 = vector.shape_cast %179 : vector<1x256x768xbf16> to vector<256x768xbf16>
    %cst_79 = arith.constant dense<0.000000e+00> : vector<16x768xf32>
    %181 = tpu.matmul %178, %180, %cst_79 {dimension_numbers = #tpu.dot_dimension_numbers<[1], [0], [0], [1], [0, 0, 1, 1], [], []>} : vector<16x256xbf16>, vector<256x768xbf16>, vector<16x768xf32> -> vector<16x768xf32>
    %c1_80 = arith.constant 1 : index
    %c0_81 = arith.constant 0 : index
    %c0_82 = arith.constant 0 : index
    %182 = vector.load %arg6[%c1_80, %c0_81, %c0_82] : memref<2x1x768xf32, #tpu.memory_space<vmem>>, vector<1x1x768xf32>
    %183 = vector.shape_cast %182 : vector<1x1x768xf32> to vector<1x768xf32>
    %184 = vector.broadcast %183 : vector<1x768xf32> to vector<16x768xf32>
    %185 = arith.addf %181, %184 : vector<16x768xf32>
    %c1_83 = arith.constant 1 : index
    %c0_84 = arith.constant 0 : index
    %c0_85 = arith.constant 0 : index
    %186 = vector.load %arg7[%c1_83, %c0_84, %c0_85] : memref<2x256x256xbf16, #tpu.memory_space<vmem>>, vector<1x256x256xbf16>
    %187 = vector.shape_cast %186 : vector<1x256x256xbf16> to vector<256x256xbf16>
    %cst_86 = arith.constant 0.000000e+00 : f32
    %188 = vector.broadcast %cst_86 : f32 to vector<16x256xf32>
    %189 = vector.extract_strided_slice %185 {offsets = [0, 0], sizes = [16, 128], strides = [1, 1]} : vector<16x768xf32> to vector<16x128xf32>
    %190 = arith.truncf %189 : vector<16x128xf32> to vector<16x128xbf16>
    %191 = vector.extract_strided_slice %185 {offsets = [0, 256], sizes = [16, 128], strides = [1, 1]} : vector<16x768xf32> to vector<16x128xf32>
    %192 = arith.truncf %191 : vector<16x128xf32> to vector<16x128xbf16>
    %193 = vector.extract_strided_slice %185 {offsets = [0, 512], sizes = [16, 128], strides = [1, 1]} : vector<16x768xf32> to vector<16x128xf32>
    %194 = arith.truncf %193 : vector<16x128xf32> to vector<16x128xbf16>
    %195 = tpu.transpose %192, [1, 0] : vector<16x128xbf16> -> vector<128x16xbf16>
    %cst_87 = arith.constant dense<0.000000e+00> : vector<16x16xf32>
    %196 = tpu.matmul %190, %195, %cst_87 {dimension_numbers = #tpu.dot_dimension_numbers<[1], [0], [0], [1], [0, 0, 1, 1], [], []>} : vector<16x128xbf16>, vector<128x16xbf16>, vector<16x16xf32> -> vector<16x16xf32>
    %197 = vector.broadcast %27 : vector<1x16xf32> to vector<16x16xf32>
    %198 = arith.addf %196, %197 : vector<16x16xf32>
    %cst_88 = arith.constant dense<0xFF800000> : vector<16xf32>
    %199 = vector.multi_reduction <maximumf>, %198, %cst_88 [1] : vector<16x16xf32> to vector<16xf32>
    %200 = vector.shape_cast %199 : vector<16xf32> to vector<16x1xf32>
    %201 = vector.broadcast %200 : vector<16x1xf32> to vector<16x16xf32>
    %202 = arith.subf %198, %201 : vector<16x16xf32>
    %203 = math.exp %202 : vector<16x16xf32>
    %cst_89 = arith.constant dense<0.000000e+00> : vector<16xf32>
    %204 = vector.multi_reduction <add>, %203, %cst_89 [1] : vector<16x16xf32> to vector<16xf32>
    %205 = vector.shape_cast %204 : vector<16xf32> to vector<16x1xf32>
    %206 = tpu.reciprocal %205 {approx = true} : vector<16x1xf32> -> vector<16x1xf32>
    %207 = vector.broadcast %206 : vector<16x1xf32> to vector<16x16xf32>
    %208 = arith.mulf %203, %207 : vector<16x16xf32>
    %209 = arith.truncf %208 : vector<16x16xf32> to vector<16x16xbf16>
    %cst_90 = arith.constant dense<0.000000e+00> : vector<16x128xf32>
    %210 = tpu.matmul %209, %194, %cst_90 {dimension_numbers = #tpu.dot_dimension_numbers<[1], [0], [0], [1], [0, 0, 1, 1], [], []>} : vector<16x16xbf16>, vector<16x128xbf16>, vector<16x128xf32> -> vector<16x128xf32>
    %211 = arith.truncf %210 : vector<16x128xf32> to vector<16x128xbf16>
    %212 = vector.extract_strided_slice %187 {offsets = [0, 0], sizes = [128, 256], strides = [1, 1]} : vector<256x256xbf16> to vector<128x256xbf16>
    %cst_91 = arith.constant dense<0.000000e+00> : vector<16x256xf32>
    %213 = tpu.matmul %211, %212, %cst_91 {dimension_numbers = #tpu.dot_dimension_numbers<[1], [0], [0], [1], [0, 0, 1, 1], [], []>} : vector<16x128xbf16>, vector<128x256xbf16>, vector<16x256xf32> -> vector<16x256xf32>
    %214 = arith.addf %188, %213 : vector<16x256xf32>
    %215 = vector.extract_strided_slice %185 {offsets = [0, 128], sizes = [16, 128], strides = [1, 1]} : vector<16x768xf32> to vector<16x128xf32>
    %216 = arith.truncf %215 : vector<16x128xf32> to vector<16x128xbf16>
    %217 = vector.extract_strided_slice %185 {offsets = [0, 384], sizes = [16, 128], strides = [1, 1]} : vector<16x768xf32> to vector<16x128xf32>
    %218 = arith.truncf %217 : vector<16x128xf32> to vector<16x128xbf16>
    %219 = vector.extract_strided_slice %185 {offsets = [0, 640], sizes = [16, 128], strides = [1, 1]} : vector<16x768xf32> to vector<16x128xf32>
    %220 = arith.truncf %219 : vector<16x128xf32> to vector<16x128xbf16>
    %221 = tpu.transpose %218, [1, 0] : vector<16x128xbf16> -> vector<128x16xbf16>
    %cst_92 = arith.constant dense<0.000000e+00> : vector<16x16xf32>
    %222 = tpu.matmul %216, %221, %cst_92 {dimension_numbers = #tpu.dot_dimension_numbers<[1], [0], [0], [1], [0, 0, 1, 1], [], []>} : vector<16x128xbf16>, vector<128x16xbf16>, vector<16x16xf32> -> vector<16x16xf32>
    %223 = vector.broadcast %27 : vector<1x16xf32> to vector<16x16xf32>
    %224 = arith.addf %222, %223 : vector<16x16xf32>
    %cst_93 = arith.constant dense<0xFF800000> : vector<16xf32>
    %225 = vector.multi_reduction <maximumf>, %224, %cst_93 [1] : vector<16x16xf32> to vector<16xf32>
    %226 = vector.shape_cast %225 : vector<16xf32> to vector<16x1xf32>
    %227 = vector.broadcast %226 : vector<16x1xf32> to vector<16x16xf32>
    %228 = arith.subf %224, %227 : vector<16x16xf32>
    %229 = math.exp %228 : vector<16x16xf32>
    %cst_94 = arith.constant dense<0.000000e+00> : vector<16xf32>
    %230 = vector.multi_reduction <add>, %229, %cst_94 [1] : vector<16x16xf32> to vector<16xf32>
    %231 = vector.shape_cast %230 : vector<16xf32> to vector<16x1xf32>
    %232 = tpu.reciprocal %231 {approx = true} : vector<16x1xf32> -> vector<16x1xf32>
    %233 = vector.broadcast %232 : vector<16x1xf32> to vector<16x16xf32>
    %234 = arith.mulf %229, %233 : vector<16x16xf32>
    %235 = arith.truncf %234 : vector<16x16xf32> to vector<16x16xbf16>
    %cst_95 = arith.constant dense<0.000000e+00> : vector<16x128xf32>
    %236 = tpu.matmul %235, %220, %cst_95 {dimension_numbers = #tpu.dot_dimension_numbers<[1], [0], [0], [1], [0, 0, 1, 1], [], []>} : vector<16x16xbf16>, vector<16x128xbf16>, vector<16x128xf32> -> vector<16x128xf32>
    %237 = arith.truncf %236 : vector<16x128xf32> to vector<16x128xbf16>
    %238 = vector.extract_strided_slice %187 {offsets = [128, 0], sizes = [128, 256], strides = [1, 1]} : vector<256x256xbf16> to vector<128x256xbf16>
    %cst_96 = arith.constant dense<0.000000e+00> : vector<16x256xf32>
    %239 = tpu.matmul %237, %238, %cst_96 {dimension_numbers = #tpu.dot_dimension_numbers<[1], [0], [0], [1], [0, 0, 1, 1], [], []>} : vector<16x128xbf16>, vector<128x256xbf16>, vector<16x256xf32> -> vector<16x256xf32>
    %240 = arith.addf %214, %239 : vector<16x256xf32>
    %241 = arith.addf %177, %240 : vector<16x256xf32>
    %c1_97 = arith.constant 1 : index
    %c0_98 = arith.constant 0 : index
    %c0_99 = arith.constant 0 : index
    %242 = vector.load %arg8[%c1_97, %c0_98, %c0_99] : memref<2x1x256xf32, #tpu.memory_space<vmem>>, vector<1x1x256xf32>
    %243 = vector.shape_cast %242 : vector<1x1x256xf32> to vector<1x256xf32>
    %244 = vector.broadcast %243 : vector<1x256xf32> to vector<16x256xf32>
    %245 = arith.addf %241, %244 : vector<16x256xf32>
    %c1_100 = arith.constant 1 : index
    %c0_101 = arith.constant 0 : index
    %c0_102 = arith.constant 0 : index
    %246 = vector.load %arg9[%c1_100, %c0_101, %c0_102] : memref<2x1x256xf32, #tpu.memory_space<vmem>>, vector<1x1x256xf32>
    %247 = vector.shape_cast %246 : vector<1x1x256xf32> to vector<1x256xf32>
    %c1_103 = arith.constant 1 : index
    %c0_104 = arith.constant 0 : index
    %c0_105 = arith.constant 0 : index
    %248 = vector.load %arg10[%c1_103, %c0_104, %c0_105] : memref<2x1x256xf32, #tpu.memory_space<vmem>>, vector<1x1x256xf32>
    %249 = vector.shape_cast %248 : vector<1x1x256xf32> to vector<1x256xf32>
    %cst_106 = arith.constant dense<0.000000e+00> : vector<16xf32>
    %250 = vector.multi_reduction <add>, %245, %cst_106 [1] : vector<16x256xf32> to vector<16xf32>
    %251 = vector.shape_cast %250 : vector<16xf32> to vector<16x1xf32>
    %cst_107 = arith.constant 2.560000e+02 : f32
    %252 = vector.broadcast %cst_107 : f32 to vector<16x1xf32>
    %253 = arith.divf %251, %252 : vector<16x1xf32>
    %254 = vector.broadcast %253 : vector<16x1xf32> to vector<16x256xf32>
    %255 = arith.subf %245, %254 : vector<16x256xf32>
    %256 = arith.mulf %255, %255 : vector<16x256xf32>
    %cst_108 = arith.constant dense<0.000000e+00> : vector<16xf32>
    %257 = vector.multi_reduction <add>, %256, %cst_108 [1] : vector<16x256xf32> to vector<16xf32>
    %258 = vector.shape_cast %257 : vector<16xf32> to vector<16x1xf32>
    %cst_109 = arith.constant 2.560000e+02 : f32
    %259 = vector.broadcast %cst_109 : f32 to vector<16x1xf32>
    %260 = arith.divf %258, %259 : vector<16x1xf32>
    %261 = vector.broadcast %253 : vector<16x1xf32> to vector<16x256xf32>
    %262 = arith.subf %245, %261 : vector<16x256xf32>
    %cst_110 = arith.constant 9.99999996E-13 : f32
    %263 = vector.broadcast %cst_110 : f32 to vector<16x1xf32>
    %264 = arith.addf %260, %263 : vector<16x1xf32>
    %265 = math.rsqrt %264 : vector<16x1xf32>
    %266 = vector.broadcast %265 : vector<16x1xf32> to vector<16x256xf32>
    %267 = arith.mulf %262, %266 : vector<16x256xf32>
    %268 = vector.broadcast %247 : vector<1x256xf32> to vector<16x256xf32>
    %269 = arith.mulf %267, %268 : vector<16x256xf32>
    %270 = vector.broadcast %249 : vector<1x256xf32> to vector<16x256xf32>
    %271 = arith.addf %269, %270 : vector<16x256xf32>
    %272 = arith.truncf %271 : vector<16x256xf32> to vector<16x256xbf16>
    %c1_111 = arith.constant 1 : index
    %c0_112 = arith.constant 0 : index
    %c0_113 = arith.constant 0 : index
    %273 = vector.load %arg11[%c1_111, %c0_112, %c0_113] : memref<2x256x512xbf16, #tpu.memory_space<vmem>>, vector<1x256x512xbf16>
    %274 = vector.shape_cast %273 : vector<1x256x512xbf16> to vector<256x512xbf16>
    %cst_114 = arith.constant dense<0.000000e+00> : vector<16x512xf32>
    %275 = tpu.matmul %272, %274, %cst_114 {dimension_numbers = #tpu.dot_dimension_numbers<[1], [0], [0], [1], [0, 0, 1, 1], [], []>} : vector<16x256xbf16>, vector<256x512xbf16>, vector<16x512xf32> -> vector<16x512xf32>
    %c1_115 = arith.constant 1 : index
    %c0_116 = arith.constant 0 : index
    %c0_117 = arith.constant 0 : index
    %276 = vector.load %arg12[%c1_115, %c0_116, %c0_117] : memref<2x1x512xf32, #tpu.memory_space<vmem>>, vector<1x1x512xf32>
    %277 = vector.shape_cast %276 : vector<1x1x512xf32> to vector<1x512xf32>
    %278 = vector.broadcast %277 : vector<1x512xf32> to vector<16x512xf32>
    %279 = arith.addf %275, %278 : vector<16x512xf32>
    %280 = arith.mulf %279, %279 : vector<16x512xf32>
    %281 = arith.mulf %279, %280 : vector<16x512xf32>
    %cst_118 = arith.constant 4.471500e-02 : f32
    %282 = vector.broadcast %cst_118 : f32 to vector<16x512xf32>
    %283 = arith.mulf %282, %281 : vector<16x512xf32>
    %284 = arith.addf %279, %283 : vector<16x512xf32>
    %cst_119 = arith.constant 0.797884583 : f32
    %285 = vector.broadcast %cst_119 : f32 to vector<16x512xf32>
    %286 = arith.mulf %285, %284 : vector<16x512xf32>
    %287 = math.tanh %286 : vector<16x512xf32>
    %cst_120 = arith.constant 1.000000e+00 : f32
    %288 = vector.broadcast %cst_120 : f32 to vector<16x512xf32>
    %289 = arith.addf %288, %287 : vector<16x512xf32>
    %cst_121 = arith.constant 5.000000e-01 : f32
    %290 = vector.broadcast %cst_121 : f32 to vector<16x512xf32>
    %291 = arith.mulf %290, %289 : vector<16x512xf32>
    %292 = arith.mulf %279, %291 : vector<16x512xf32>
    %293 = arith.truncf %292 : vector<16x512xf32> to vector<16x512xbf16>
    %c1_122 = arith.constant 1 : index
    %c0_123 = arith.constant 0 : index
    %c0_124 = arith.constant 0 : index
    %294 = vector.load %arg13[%c1_122, %c0_123, %c0_124] : memref<2x512x256xbf16, #tpu.memory_space<vmem>>, vector<1x512x256xbf16>
    %295 = vector.shape_cast %294 : vector<1x512x256xbf16> to vector<512x256xbf16>
    %cst_125 = arith.constant dense<0.000000e+00> : vector<16x256xf32>
    %296 = tpu.matmul %293, %295, %cst_125 {dimension_numbers = #tpu.dot_dimension_numbers<[1], [0], [0], [1], [0, 0, 1, 1], [], []>} : vector<16x512xbf16>, vector<512x256xbf16>, vector<16x256xf32> -> vector<16x256xf32>
    %c1_126 = arith.constant 1 : index
    %c0_127 = arith.constant 0 : index
    %c0_128 = arith.constant 0 : index
    %297 = vector.load %arg14[%c1_126, %c0_127, %c0_128] : memref<2x1x256xf32, #tpu.memory_space<vmem>>, vector<1x1x256xf32>
    %298 = vector.shape_cast %297 : vector<1x1x256xf32> to vector<1x256xf32>
    %299 = vector.broadcast %298 : vector<1x256xf32> to vector<16x256xf32>
    %300 = arith.addf %296, %299 : vector<16x256xf32>
    %301 = arith.addf %271, %300 : vector<16x256xf32>
    %c1_129 = arith.constant 1 : index
    %c0_130 = arith.constant 0 : index
    %c0_131 = arith.constant 0 : index
    %302 = vector.load %arg15[%c1_129, %c0_130, %c0_131] : memref<2x1x256xf32, #tpu.memory_space<vmem>>, vector<1x1x256xf32>
    %303 = vector.shape_cast %302 : vector<1x1x256xf32> to vector<1x256xf32>
    %c1_132 = arith.constant 1 : index
    %c0_133 = arith.constant 0 : index
    %c0_134 = arith.constant 0 : index
    %304 = vector.load %arg16[%c1_132, %c0_133, %c0_134] : memref<2x1x256xf32, #tpu.memory_space<vmem>>, vector<1x1x256xf32>
    %305 = vector.shape_cast %304 : vector<1x1x256xf32> to vector<1x256xf32>
    %cst_135 = arith.constant dense<0.000000e+00> : vector<16xf32>
    %306 = vector.multi_reduction <add>, %301, %cst_135 [1] : vector<16x256xf32> to vector<16xf32>
    %307 = vector.shape_cast %306 : vector<16xf32> to vector<16x1xf32>
    %cst_136 = arith.constant 2.560000e+02 : f32
    %308 = vector.broadcast %cst_136 : f32 to vector<16x1xf32>
    %309 = arith.divf %307, %308 : vector<16x1xf32>
    %310 = vector.broadcast %309 : vector<16x1xf32> to vector<16x256xf32>
    %311 = arith.subf %301, %310 : vector<16x256xf32>
    %312 = arith.mulf %311, %311 : vector<16x256xf32>
    %cst_137 = arith.constant dense<0.000000e+00> : vector<16xf32>
    %313 = vector.multi_reduction <add>, %312, %cst_137 [1] : vector<16x256xf32> to vector<16xf32>
    %314 = vector.shape_cast %313 : vector<16xf32> to vector<16x1xf32>
    %cst_138 = arith.constant 2.560000e+02 : f32
    %315 = vector.broadcast %cst_138 : f32 to vector<16x1xf32>
    %316 = arith.divf %314, %315 : vector<16x1xf32>
    %317 = vector.broadcast %309 : vector<16x1xf32> to vector<16x256xf32>
    %318 = arith.subf %301, %317 : vector<16x256xf32>
    %cst_139 = arith.constant 9.99999996E-13 : f32
    %319 = vector.broadcast %cst_139 : f32 to vector<16x1xf32>
    %320 = arith.addf %316, %319 : vector<16x1xf32>
    %321 = math.rsqrt %320 : vector<16x1xf32>
    %322 = vector.broadcast %321 : vector<16x1xf32> to vector<16x256xf32>
    %323 = arith.mulf %318, %322 : vector<16x256xf32>
    %324 = vector.broadcast %303 : vector<1x256xf32> to vector<16x256xf32>
    %325 = arith.mulf %323, %324 : vector<16x256xf32>
    %326 = vector.broadcast %305 : vector<1x256xf32> to vector<16x256xf32>
    %327 = arith.addf %325, %326 : vector<16x256xf32>
    %328 = vector.extract_strided_slice %327 {offsets = [0, 0], sizes = [1, 256], strides = [1, 1]} : vector<16x256xf32> to vector<1x256xf32>
    %329 = arith.truncf %328 : vector<1x256xf32> to vector<1x256xbf16>
    %c0_140 = arith.constant 0 : index
    %c0_141 = arith.constant 0 : index
    %330 = vector.load %arg17[%c0_140, %c0_141] : memref<256x256xbf16, #tpu.memory_space<vmem>>, vector<256x256xbf16>
    %cst_142 = arith.constant dense<0.000000e+00> : vector<1x256xf32>
    %331 = tpu.matmul %329, %330, %cst_142 {dimension_numbers = #tpu.dot_dimension_numbers<[1], [0], [0], [1], [0, 0, 1, 1], [], []>} : vector<1x256xbf16>, vector<256x256xbf16>, vector<1x256xf32> -> vector<1x256xf32>
    %c0_143 = arith.constant 0 : index
    %c0_144 = arith.constant 0 : index
    %332 = vector.load %arg18[%c0_143, %c0_144] : memref<1x256xf32, #tpu.memory_space<vmem>>, vector<1x256xf32>
    %333 = arith.addf %331, %332 : vector<1x256xf32>
    %334 = math.tanh %333 : vector<1x256xf32>
    %c0_145 = arith.constant 0 : index
    %c0_146 = arith.constant 0 : index
    %335 = vector.load %arg19[%c0_145, %c0_146] : memref<1x256xf32, #tpu.memory_space<vmem>>, vector<1x256xf32>
    %336 = arith.mulf %334, %335 : vector<1x256xf32>
    %cst_147 = arith.constant dense<0.000000e+00> : vector<1xf32>
    %337 = vector.multi_reduction <add>, %336, %cst_147 [1] : vector<1x256xf32> to vector<1xf32>
    %338 = vector.shape_cast %337 : vector<1xf32> to vector<1x1xf32>
    %c0_148 = arith.constant 0 : index
    %c0_149 = arith.constant 0 : index
    %339 = vector.load %arg20[%c0_148, %c0_149] : memref<1x1xf32, #tpu.memory_space<vmem>>, vector<1x1xf32>
    %340 = arith.addf %338, %339 : vector<1x1xf32>
    %341 = vector.shape_cast %340 : vector<1x1xf32> to vector<1x1xf32>
    %342 = vector.broadcast %341 : vector<1x1xf32> to vector<8x128xf32>
    %c0_150 = arith.constant 0 : index
    %c0_151 = arith.constant 0 : index
    %c0_152 = arith.constant 0 : index
    %343 = vector.load %arg21[%c0_150, %c0_151, %c0_152] : memref<1x8x128xf32, #tpu.memory_space<vmem>>, vector<1x8x128xf32>
    %344 = vector.shape_cast %343 : vector<1x8x128xf32> to vector<8x128xf32>
    %345 = vector.shape_cast %342 : vector<8x128xf32> to vector<1x8x128xf32>
    tpu.vector_store %arg21[%c0_150, %c0_151, %c0_152], %345 {strides = array<i32>} : memref<1x8x128xf32, #tpu.memory_space<vmem>>, vector<1x8x128xf32>,
    return
  }
  func.func @transform_0(%arg0: i32) -> (i32, i32, i32) {
    %c0_i32 = arith.constant 0 : i32
    %c0_i32_0 = arith.constant 0 : i32
    %c0_i32_1 = arith.constant 0 : i32
    return %arg0, %c0_i32, %c0_i32_0 : i32, i32, i32
  }
  func.func @transform_1(%arg0: i32) -> (i32, i32, i32) {
    %c0_i32 = arith.constant 0 : i32
    %c0_i32_0 = arith.constant 0 : i32
    %c0_i32_1 = arith.constant 0 : i32
    return %arg0, %c0_i32, %c0_i32_0 : i32, i32, i32
  }
  func.func @transform_2(%arg0: i32) -> (i32, i32) {
    %c0_i32 = arith.constant 0 : i32
    %c0_i32_0 = arith.constant 0 : i32
    %c0_i32_1 = arith.constant 0 : i32
    return %c0_i32, %c0_i32_0 : i32, i32
  }
  func.func @transform_3(%arg0: i32) -> (i32, i32) {
    %c0_i32 = arith.constant 0 : i32
    %c0_i32_0 = arith.constant 0 : i32
    %c0_i32_1 = arith.constant 0 : i32
    return %c0_i32, %c0_i32_0 : i32, i32
  }
  func.func @transform_4(%arg0: i32) -> (i32, i32, i32) {
    %c0_i32 = arith.constant 0 : i32
    %c0_i32_0 = arith.constant 0 : i32
    %c0_i32_1 = arith.constant 0 : i32
    %c0_i32_2 = arith.constant 0 : i32
    return %c0_i32, %c0_i32_0, %c0_i32_1 : i32, i32, i32
  }
  func.func @transform_5(%arg0: i32) -> (i32, i32, i32) {
    %c0_i32 = arith.constant 0 : i32
    %c0_i32_0 = arith.constant 0 : i32
    %c0_i32_1 = arith.constant 0 : i32
    %c0_i32_2 = arith.constant 0 : i32
    return %c0_i32, %c0_i32_0, %c0_i32_1 : i32, i32, i32
  }
  func.func @transform_6(%arg0: i32) -> (i32, i32, i32) {
    %c0_i32 = arith.constant 0 : i32
    %c0_i32_0 = arith.constant 0 : i32
    %c0_i32_1 = arith.constant 0 : i32
    %c0_i32_2 = arith.constant 0 : i32
    return %c0_i32, %c0_i32_0, %c0_i32_1 : i32, i32, i32
  }
  func.func @transform_7(%arg0: i32) -> (i32, i32, i32) {
    %c0_i32 = arith.constant 0 : i32
    %c0_i32_0 = arith.constant 0 : i32
    %c0_i32_1 = arith.constant 0 : i32
    %c0_i32_2 = arith.constant 0 : i32
    return %c0_i32, %c0_i32_0, %c0_i32_1 : i32, i32, i32
  }
  func.func @transform_8(%arg0: i32) -> (i32, i32, i32) {
    %c0_i32 = arith.constant 0 : i32
    %c0_i32_0 = arith.constant 0 : i32
    %c0_i32_1 = arith.constant 0 : i32
    %c0_i32_2 = arith.constant 0 : i32
    return %c0_i32, %c0_i32_0, %c0_i32_1 : i32, i32, i32
  }
  func.func @transform_9(%arg0: i32) -> (i32, i32, i32) {
    %c0_i32 = arith.constant 0 : i32
    %c0_i32_0 = arith.constant 0 : i32
    %c0_i32_1 = arith.constant 0 : i32
    %c0_i32_2 = arith.constant 0 : i32
    return %c0_i32, %c0_i32_0, %c0_i32_1 : i32, i32, i32
  }
  func.func @transform_10(%arg0: i32) -> (i32, i32, i32) {
    %c0_i32 = arith.constant 0 : i32
    %c0_i32_0 = arith.constant 0 : i32
    %c0_i32_1 = arith.constant 0 : i32
    %c0_i32_2 = arith.constant 0 : i32
    return %c0_i32, %c0_i32_0, %c0_i32_1 : i32, i32, i32
  }
  func.func @transform_11(%arg0: i32) -> (i32, i32, i32) {
    %c0_i32 = arith.constant 0 : i32
    %c0_i32_0 = arith.constant 0 : i32
    %c0_i32_1 = arith.constant 0 : i32
    %c0_i32_2 = arith.constant 0 : i32
    return %c0_i32, %c0_i32_0, %c0_i32_1 : i32, i32, i32
  }
  func.func @transform_12(%arg0: i32) -> (i32, i32, i32) {
    %c0_i32 = arith.constant 0 : i32
    %c0_i32_0 = arith.constant 0 : i32
    %c0_i32_1 = arith.constant 0 : i32
    %c0_i32_2 = arith.constant 0 : i32
    return %c0_i32, %c0_i32_0, %c0_i32_1 : i32, i32, i32
  }
  func.func @transform_13(%arg0: i32) -> (i32, i32, i32) {
    %c0_i32 = arith.constant 0 : i32
    %c0_i32_0 = arith.constant 0 : i32
    %c0_i32_1 = arith.constant 0 : i32
    %c0_i32_2 = arith.constant 0 : i32
    return %c0_i32, %c0_i32_0, %c0_i32_1 : i32, i32, i32
  }
  func.func @transform_14(%arg0: i32) -> (i32, i32, i32) {
    %c0_i32 = arith.constant 0 : i32
    %c0_i32_0 = arith.constant 0 : i32
    %c0_i32_1 = arith.constant 0 : i32
    %c0_i32_2 = arith.constant 0 : i32
    return %c0_i32, %c0_i32_0, %c0_i32_1 : i32, i32, i32
  }
  func.func @transform_15(%arg0: i32) -> (i32, i32, i32) {
    %c0_i32 = arith.constant 0 : i32
    %c0_i32_0 = arith.constant 0 : i32
    %c0_i32_1 = arith.constant 0 : i32
    %c0_i32_2 = arith.constant 0 : i32
    return %c0_i32, %c0_i32_0, %c0_i32_1 : i32, i32, i32
  }
  func.func @transform_16(%arg0: i32) -> (i32, i32) {
    %c0_i32 = arith.constant 0 : i32
    %c0_i32_0 = arith.constant 0 : i32
    %c0_i32_1 = arith.constant 0 : i32
    return %c0_i32, %c0_i32_0 : i32, i32
  }
  func.func @transform_17(%arg0: i32) -> (i32, i32) {
    %c0_i32 = arith.constant 0 : i32
    %c0_i32_0 = arith.constant 0 : i32
    %c0_i32_1 = arith.constant 0 : i32
    return %c0_i32, %c0_i32_0 : i32, i32
  }
  func.func @transform_18(%arg0: i32) -> (i32, i32) {
    %c0_i32 = arith.constant 0 : i32
    %c0_i32_0 = arith.constant 0 : i32
    %c0_i32_1 = arith.constant 0 : i32
    return %c0_i32, %c0_i32_0 : i32, i32
  }
  func.func @transform_19(%arg0: i32) -> (i32, i32) {
    %c0_i32 = arith.constant 0 : i32
    %c0_i32_0 = arith.constant 0 : i32
    %c0_i32_1 = arith.constant 0 : i32
    return %c0_i32, %c0_i32_0 : i32, i32
  }
  func.func @transform_20(%arg0: i32) -> (i32, i32, i32) {
    %c0_i32 = arith.constant 0 : i32
    %c0_i32_0 = arith.constant 0 : i32
    %c0_i32_1 = arith.constant 0 : i32
    return %arg0, %c0_i32, %c0_i32_0 : i32, i32, i32
  }
}

</mosaic_0001>

<bundles_post_ra>
// kernel: distilbert_class_forward.1
= control target key start
LH: loop header
LB: loop body
LE: loop exit
PB: predicated region body
PF: predicated region fallthrough
CT: control target
= control target key end

     0   :  { %s10042_s0 = inlined_call_operand.vmem [shape: f32[2,16,256], index: 0, kind: input, shape index: {}]   ;;  %s10043_s1 = inlined_call_operand.vmem [shape: f32[2,1,16], index: 1, kind: input, shape index: {}]   ;;  %s10044_s2 = inlined_call_operand.vmem [shape: f32[1,256], index: 2, kind: input, shape index: {}]   ;;  %s10045_s3 = inlined_call_operand.vmem [shape: f32[1,256], index: 3, kind: input, shape index: {}, may-alias: {3,17}]   ;;  %s10046_s4 = inlined_call_operand.hbm [shape: bf16[2,256,768], index: 4, kind: input, shape index: {}]   ;;  %s10047_s5 = inlined_call_operand.vmem [shape: f32[2,1,768], index: 5, kind: input, shape index: {}]   ;;  %s10048_s6 = inlined_call_operand.vmem [shape: bf16[2,256,256], index: 6, kind: input, shape index: {}]   ;;  %s10049_s7 = inlined_call_operand.vmem [shape: f32[2,1,256], index: 7, kind: input, shape index: {}, may-alias: {7,9,13,15}]   ;;  %s10050_s8 = inlined_call_operand.vmem [shape: f32[2,1,256], index: 8, kind: input, shape index: {}, may-alias: {8,14}]   ;;  %s10051_s9 = inlined_call_operand.vmem [shape: f32[2,1,256], index: 9, kind: input, shape index: {}, may-alias: {7,9,13,15}]   ;;  %s10052_s10 = inlined_call_operand.hbm [shape: bf16[2,256,512], index: 10, kind: input, shape index: {}]   ;;  %s10053_s11 = inlined_call_operand.vmem [shape: f32[2,1,512], index: 11, kind: input, shape index: {}]   ;;  %s10054_s12 = inlined_call_operand.hbm [shape: bf16[2,512,256], index: 12, kind: input, shape index: {}]   ;;  %s10055_s13 = inlined_call_operand.vmem [shape: f32[2,1,256], index: 13, kind: input, shape index: {}, may-alias: {7,9,13,15}]   ;;  %s10056_s14 = inlined_call_operand.vmem [shape: f32[2,1,256], index: 14, kind: input, shape index: {}, may-alias: {8,14}]   ;;  %s10057_s15 = inlined_call_operand.vmem [shape: f32[2,1,256], index: 15, kind: input, shape index: {}, may-alias: {7,9,13,15}]   ;;  %s10058_s16 = inlined_call_operand.hbm [shape: bf16[256,256], index: 16, kind: input, shape index: {}]   ;;  %s10059_s17 = inlined_call_operand.vmem [shape: f32[1,256], index: 17, kind: input, shape index: {}, may-alias: {3,17}]   ;;  %s10060_s18 = inlined_call_operand.vmem [shape: f32[1,256], index: 18, kind: input, shape index: {}]   ;;  %s10061_s19 = inlined_call_operand.<no memory space> [shape: f32[1,1], index: 19, kind: input, shape index: {}]   ;;  %s10062_s20 = inlined_call_operand.vmem [shape: f32[2,8,128], index: 20, kind: output, shape index: {}]  }
   0x1   :  { %10064 = sst [smem:[#allocation14_spill]] %s10042_s0  ;;  %v25_v0 = vstv %s10061_s19 }
   0x2   :  { %10065 = sst [smem:[#allocation15_spill]] %s10043_s1  ;;  %26 = vst [vmem:[#allocation2] sm:$0x1] %v25_v0 }
   0x3   :  { %10066 = sst [smem:[#allocation16_spill]] %s10044_s2 }
   0x4   :  { %10067 = sst [smem:[#allocation17_spill]] %s10045_s3 }
   0x5   :  { %10068 = sst [smem:[#allocation18_spill]] %s10046_s4 }
   0x6   :  { %10069 = sst [smem:[#allocation19_spill]] %s10052_s10 }
   0x7   :  { %10070 = sst [smem:[#allocation20_spill]] %s10059_s17 }
   0x8   :  { %10071 = sst [smem:[#allocation21_spill]] %s10060_s18 }
   0x9   :  { %10072 = sst [smem:[#allocation22_spill]] %s10062_s20 }
   0xa   :  { %27 = vsyncpa [#allocation4], 0 }
   0xb   :  { %28 = vsyncpa [#allocation6], 0 }
   0xc   :  { %29 = vsyncpa [#allocation9], 0  ;;  %s9075_s23 = smov 0  }
   0xd LB: > { %10073 = sst [smem:[#allocation13_spill]] %s8954_s23  ;;  %s9084_s19 = sadd.s32 4294967295, %s8954_s23   ;;  %s8954_s23 = sphi %s9075_s23, %s35_s23  }
   0xe   : > { %s10074_s10 = sld [smem:[#allocation19_spill]]  ;;  %p5887_p0 = scmp.ge.s32.totalorder %s8954_s23, 1 }
   0xf   : > { %p496_p1 = scmp.lt.s32.totalorder %s8954_s23, 3  ;;  %p8699_p2 = scmp.eq.s32.totalorder %s9084_s19, 0 }
  0x10   : > { %s8956_s26 = smov [#allocation5]   ;;  %s10076_s29 = sld [smem:[#allocation18_spill]] }
  0x11   : > { %p9089_p3 = pnand %p5887_p0, %p496_p1  ;;  %s544_s27 = sshll.u32 %s8956_s26, 4  ;;  %s545_s27 = int_to_ptr.vmem [resolvable:$true] %s544_s27 }
  0x12   : > { %s8957_s21 = smov [#allocation3]   ;;  %s8958_s22 = smov 256  }
  0x13   : > { %p8686_p4 = pneg %p9089_p3  ;;  %s515_s1 = sshll.u32 %s8957_s21, 4  ;;  %s516_s1 = int_to_ptr.vmem [resolvable:$true] %s515_s1 }
  0x14   : > { %s542_s25 = sshll.u32 %s10074_s10, 4  ;;  %s8959_s24 = smov 16   ;;  %s543_s25 = int_to_ptr.hbm [resolvable:$true] %s542_s25 }
  0x15   : > { %p9100_p5 = pnand %p8699_p2, %p8686_p4  ;;  %s559_s28 = sshll.u32 %s10054_s12, 4  ;;  %s560_s28 = int_to_ptr.hbm [resolvable:$true] %s559_s28 }
  0x16   : > { %s513_s30 = sshll.u32 %s10076_s29, 4  ;;  %s8960_s4 = smov 384   ;;  %s514_s30 = int_to_ptr.hbm [resolvable:$true] %s513_s30 }
  0x17   : > { %8692 = dma.hbm_to_vmem [thread:$0]  (!%p9100_p5), %s543_s25, 16384, %s545_s27, [#allocation6], %s8958_s22, %s8958_s22, %s8959_s24  }
  0x18   : > { %s8961_s29 = smov 24   ;;  %s8962_s10 = smov [#allocation7]  }
  0x19   : > { %8689 = dma.hbm_to_vmem [thread:$0]  (!%p9100_p5), %s514_s30, 24576, %s516_s1, [#allocation4], %s8960_s4, %s8960_s4, %s8961_s29  }
  0x1a   : > { %s561_s23 = sshll.u32 %s8962_s10, 4  ;;  %s8963_s20 = smov 128   ;;  %s562_s23 = int_to_ptr.vmem [resolvable:$true] %s561_s23 }
  0x1b   : > { %s8964_s21 = smov 8   ;;  %s582_s25 = sshll.u32 %s10058_s16, 4  ;;  %s583_s25 = int_to_ptr.hbm [resolvable:$true] %s582_s25 }
  0x1c   : > { %8695 = dma.hbm_to_vmem [thread:$0]  (!%p9100_p5), %s560_s28, 16384, %s562_s23, [#allocation6], %s8963_s20, %s8963_s20, %s8964_s21  }
  0x1d   : > { %s8965_s27 = smov [#allocation8]   ;;  %623 = sbr.rel (%p9089_p3) target bundleno = 4118 (0x1016), region = 100 }
  0x1e   : > { %s584_s22 = sshll.u32 %s8965_s27, 4  ;;  %s585_s22 = int_to_ptr.vmem [resolvable:$true] %s584_s22 }
  0x1f   : > { %8698 = dma.hbm_to_vmem [thread:$0]  (!%p9100_p5), %s583_s25, 4096, %s585_s22, [#allocation9], %s8963_s20, %s8963_s20, %s8964_s21  }
  0x22   : > { %8941 = dma.done.wait (%p8699_p2), [#allocation4], 24576  }
  0x23   : > { %8943 = vsyncadd (%p8699_p2), [#allocation4], 4294942720 }
  0x24   : > { %8945 = dma.done.wait (%p8699_p2), [#allocation6], 32768  }
  0x25   : > { %8947 = vsyncadd (%p8699_p2), [#allocation6], 4294934528 }
  0x26   : > { %8949 = dma.done.wait (%p8699_p2), [#allocation9], 4096  }
  0x27   : > { %8951 = vsyncadd (%p8699_p2), [#allocation9], 4294963200  ;;  %p699_p6 = scmp.lt.s32.totalorder %s9084_s19, 1  ;;  %s10078_s20 = sld [smem:[#allocation14_spill]]  ;;  %v8966_v7 = vmov 256.0   ;;  %vm1606_vm7 = vcmask 130048  }
  0x28   : > { %s10079_s0 = sld [smem:[#allocation15_spill]]  ;;  %8727 = vrcp.f32 %v8966_v7  ;;  %v6071_v11 = vld [vmem:[#allocation3 + $0x150] sm:$0xf]  ;;  %v8169_v12 = vld [vmem:[#allocation3 + $0x164] sm:$0xf0] }
  0x29   : > { %s10087_s19 = smov (!%p699_p6, %s9084_s19), 1  ;;  %v6263_v13 = vld [vmem:[#allocation3 + $0x2d0] sm:$0xf]  ;;  %v6072_v14 = vor.u32 %v8169_v12, %v6071_v11  ;;  %v8217_v15 = vld [vmem:[#allocation3 + $0x2e4] sm:$0xf0]  ;;  %s10080_s26 = sld [smem:[#allocation16_spill]] }
  0x2a   : > { %s8123_s10 = sshll.u32 %s10087_s19, 5  ;;  %v8166_v16 = vld [vmem:[#allocation3 + $0x154] sm:$0xf]  ;;  %v6073_v17 = vld [vmem:[#allocation3 + $0x168] sm:$0xf0]  ;;  %v6264_v18 = vor.u32 %v8217_v15, %v6263_v13  ;;  %s10081_s29 = sld [smem:[#allocation17_spill]] }
  0x2b   : > { %v6076_v19 = vor.u32 %v8166_v16, %v6073_v17  ;;  %v8214_v20 = vld [vmem:[#allocation3 + $0x2d4] sm:$0xf]  ;;  %v6265_v21 = vld [vmem:[#allocation3 + $0x2e8] sm:$0xf0]  ;;  %v6047_v22 = vld [vmem:[#allocation3 + $0x120] sm:$0xf]  ;;  %1386 = vmatpush.bf16.msra.mxu0 %v6072_v14 }
  0x2c   : > { %v6268_v23 = vor.u32 %v8214_v20, %v6265_v21  ;;  %v8163_v24 = vld [vmem:[#allocation3 + $0x134] sm:$0xf0]  ;;  %v6239_v25 = vld [vmem:[#allocation3 + $0x2a0] sm:$0xf]  ;;  %1400 = vmatpush.bf16.msra.mxu1 %v6264_v18  ;;  %v8160_v29 = vld [vmem:[#allocation3 + $0x124] sm:$0xf] }
  0x2d   : > { %s703_s23 = scalar_lea.vmem %s10078_s20, %s8123_s10  ;;  %v8211_v26 = vld [vmem:[#allocation3 + $0x2b4] sm:$0xf0]  ;;  %1414 = vmatpush.bf16.msra.mxu2 %v6076_v19  ;;  %v6048_v27 = vor.u32 %v8163_v24, %v6047_v22  ;;  %v6049_v30 = vld [vmem:[#allocation3 + $0x138] sm:$0xf0]  ;;  %v8208_v31 = vld [vmem:[#allocation3 + $0x2a4] sm:$0xf] }
  0x2e   : > { %s9144_s1 = scalar_lea.vmem %s10079_s0, %s10087_s19  ;;  %v9146_v1 = vld [vmem:[%s703_s23] sm:$0xff]  ;;  %v9148_v2 = vld [vmem:[%s703_s23 + $0x8] sm:$0xff]  ;;  %v9152_v4 = vld [vmem:[%s703_s23 + $0x10] sm:$0xff]  ;;  %v9158_v8 = vpop.eup %8727  ;;  %v6240_v28 = vor.u32 %v8211_v26, %v6239_v25  ;;  %1428 = vmatpush.bf16.msra.mxu3 %v6268_v23  ;;  %v6052_v33 = vor.u32 %v8160_v29, %v6049_v30  ;;  %s10082_s24 = sld [smem:[#allocation20_spill]] }
  0x2f   : > { %v718_v3 = vadd.f32 %v9148_v2, %v9146_v1  ;;  %v9154_v5 = vld [vmem:[%s703_s23 + $0x18] sm:$0xff]  ;;  %v725_v9 = vmul.f32 256.0, %v9158_v8  ;;  %v6023_v35 = vld [vmem:[#allocation3 + $0xf0] sm:$0xf]  ;;  %v8157_v36 = vld [vmem:[#allocation3 + $0x104] sm:$0xf0]  ;;  %1387 = vmatpush.bf16.msra.mxu0 %v6048_v27  ;;  %vm729_vm0 = vweird.f32 %v9158_v8 }
  0x30   : > { %v721_v6 = vadd.f32 %v9154_v5, %v9152_v4  ;;  %v6241_v34 = vld [vmem:[#allocation3 + $0x2b8] sm:$0xf0]  ;;  %v6215_v38 = vld [vmem:[#allocation3 + $0x270] sm:$0xf]  ;;  %v8205_v39 = vld [vmem:[#allocation3 + $0x284] sm:$0xf0]  ;;  %v6024_v41 = vor.u32 %v8157_v36, %v6023_v35  ;;  %1401 = vmatpush.bf16.msra.mxu1 %v6240_v28 }
  0x31   : > { %719 = vadd.xlane.f32.xlu0 %v718_v3  ;;  %v726_v10 = vsub.f32 1.0, %v725_v9  ;;  %v6244_v37 = vor.u32 %v8208_v31, %v6241_v34  ;;  %v8154_v40 = vld [vmem:[#allocation3 + $0xf4] sm:$0xf]  ;;  %v6025_v42 = vld [vmem:[#allocation3 + $0x108] sm:$0xf0]  ;;  %1415 = vmatpush.bf16.msra.mxu2 %v6052_v33  ;;  %v6216_v45 = vor.u32 %v8205_v39, %v6215_v38  ;;  %s10083_s28 = sld [smem:[#allocation21_spill]] }
  0x32   : > { %v8202_v43 = vld [vmem:[#allocation3 + $0x274] sm:$0xf]  ;;  %v6217_v44 = vld [vmem:[#allocation3 + $0x288] sm:$0xf0]  ;;  %v6028_v46 = vor.u32 %v8154_v40, %v6025_v42  ;;  %v5999_v47 = vld [vmem:[#allocation3 + $0xc0] sm:$0xf] }
  0x33   : > { %v727_v32 = vmul.f32 %v9158_v8, %v726_v10  ;;  %v8151_v48 = vld [vmem:[#allocation3 + $0xd4] sm:$0xf0]  ;;  %v6191_v49 = vld [vmem:[#allocation3 + $0x240] sm:$0xf]  ;;  %1429 = vmatpush.bf16.msra.mxu3 %v6244_v37  ;;  %v6220_v51 = vor.u32 %v8202_v43, %v6217_v44  ;;  %v8148_v53 = vld [vmem:[#allocation3 + $0xc4] sm:$0xf]  ;;  %1388 = vmatpush.bf16.msra.mxu0 %v6024_v41 }
  0x34   : > { %v8199_v52 = vld [vmem:[#allocation3 + $0x254] sm:$0xf0]  ;;  %v6001_v54 = vld [vmem:[#allocation3 + $0xd8] sm:$0xf0]  ;;  %v8196_v55 = vld [vmem:[#allocation3 + $0x244] sm:$0xf]  ;;  %v6000_v57 = vor.u32 %v8151_v48, %v5999_v47  ;;  %1402 = vmatpush.bf16.msra.mxu1 %v6216_v45 }
  0x35   : > { %v728_v50 = vadd.f32 %v9158_v8, %v727_v32  ;;  %v6193_v56 = vld [vmem:[#allocation3 + $0x258] sm:$0xf0]  ;;  %1416 = vmatpush.bf16.msra.mxu2 %v6028_v46  ;;  %v6192_v58 = vor.u32 %v8199_v52, %v6191_v49  ;;  %v6004_v59 = vor.u32 %v8148_v53, %v6001_v54  ;;  %v5975_v60 = vld [vmem:[#allocation3 + $0x90] sm:$0xf]  ;;  %v8145_v61 = vld [vmem:[#allocation3 + $0xa4] sm:$0xf0] }
  0x36   : > { %v6167_v62 = vld [vmem:[#allocation3 + $0x210] sm:$0xf]  ;;  %v6196_v0 = vor.u32 %v8196_v55, %v6193_v56  ;;  %v8193_v3 = vld [vmem:[#allocation3 + $0x224] sm:$0xf0]  ;;  %v5977_v7 = vld [vmem:[#allocation3 + $0xa8] sm:$0xf0]  ;;  %v5976_v12 = vor.u32 %v8145_v61, %v5975_v60 }
  0x37   : > { %v9165_v63 = vsel %vm729_vm0, %v9158_v8, %v728_v50  ;;  %1430 = vmatpush.bf16.msra.mxu3 %v6220_v51  ;;  %v8190_v9 = vld [vmem:[#allocation3 + $0x214] sm:$0xf]  ;;  %v6169_v10 = vld [vmem:[#allocation3 + $0x228] sm:$0xf0]  ;;  %1389 = vmatpush.bf16.msra.mxu0 %v6000_v57  ;;  %v6168_v14 = vor.u32 %v8193_v3, %v6167_v62  ;;  %v5951_v26 = vld [vmem:[#allocation3 + $0x60] sm:$0xf] }
  0x38   : > { %1403 = vmatpush.bf16.msra.mxu1 %v6192_v58  ;;  %v6172_v16 = vor.u32 %v8190_v9, %v6169_v10  ;;  %v8139_v27 = vld [vmem:[#allocation3 + $0x74] sm:$0xf0]  ;;  %v6143_v28 = vld [vmem:[#allocation3 + $0x1e0] sm:$0xf]  ;;  %v8136_v31 = vld [vmem:[#allocation3 + $0x64] sm:$0xf] }
  0x39   : > { %722 = vadd.xlane.f32.xlu0 %v721_v6  ;;  %v8142_v6 = vld [vmem:[#allocation3 + $0x94] sm:$0xf]  ;;  %1417 = vmatpush.bf16.msra.mxu2 %v6004_v59  ;;  %v5952_v29 = vor.u32 %v8139_v27, %v5951_v26  ;;  %v8187_v30 = vld [vmem:[#allocation3 + $0x1f4] sm:$0xf0]  ;;  %v5953_v32 = vld [vmem:[#allocation3 + $0x78] sm:$0xf0] }
  0x3a   : > { %v5980_v15 = vor.u32 %v8142_v6, %v5977_v7  ;;  %v5956_v33 = vor.u32 %v8136_v31, %v5953_v32  ;;  %v8184_v34 = vld [vmem:[#allocation3 + $0x1e4] sm:$0xf]  ;;  %v5927_v36 = vld [vmem:[#allocation3 + $0x30] sm:$0xf]  ;;  %v8133_v37 = vld [vmem:[#allocation3 + $0x44] sm:$0xf0] }
  0x3b   : > { %1431 = vmatpush.bf16.msra.mxu3 %v6196_v0  ;;  %1390 = vmatpush.bf16.msra.mxu0 %v5976_v12  ;;  %v6119_v38 = vld [vmem:[#allocation3 + $0x1b0] sm:$0xf]  ;;  %v5928_v39 = vor.u32 %v8133_v37, %v5927_v36  ;;  %v8181_v40 = vld [vmem:[#allocation3 + $0x1c4] sm:$0xf0]  ;;  %v8130_v41 = vld [vmem:[#allocation3 + $0x34] sm:$0xf] }
  0x3c   : > { %1404 = vmatpush.bf16.msra.mxu1 %v6168_v14  ;;  %v5929_v42 = vld [vmem:[#allocation3 + $0x48] sm:$0xf0]  ;;  %v6120_v43 = vor.u32 %v8181_v40, %v6119_v38  ;;  %v8178_v45 = vld [vmem:[#allocation3 + $0x1b4] sm:$0xf]  ;;  %v5903_v48 = vld [vmem:[#allocation3] sm:$0xf] }
  0x3d   : > { %1418 = vmatpush.bf16.msra.mxu2 %v5980_v15  ;;  %v5932_v44 = vor.u32 %v8130_v41, %v5929_v42  ;;  %v6121_v46 = vld [vmem:[#allocation3 + $0x1c8] sm:$0xf0]  ;;  %v8127_v49 = vld [vmem:[#allocation3 + $0x14] sm:$0xf0]  ;;  %v6095_v50 = vld [vmem:[#allocation3 + $0x180] sm:$0xf] }
  0x3e   : > { %v6124_v47 = vor.u32 %v8178_v45, %v6121_v46  ;;  %v5904_v51 = vor.u32 %v8127_v49, %v5903_v48  ;;  %v8175_v52 = vld [vmem:[#allocation3 + $0x194] sm:$0xf0]  ;;  %v8124_v53 = vld [vmem:[#allocation3 + $0x4] sm:$0xf]  ;;  %v5905_v54 = vld [vmem:[#allocation3 + $0x18] sm:$0xf0] }
  0x3f   : > { %1432 = vmatpush.bf16.msra.mxu3 %v6172_v16  ;;  %1391 = vmatpush.bf16.msra.mxu0 %v5952_v29  ;;  %v6096_v55 = vor.u32 %v8175_v52, %v6095_v50  ;;  %v5908_v56 = vor.u32 %v8124_v53, %v5905_v54  ;;  %v8172_v57 = vld [vmem:[#allocation3 + $0x184] sm:$0xf]  ;;  %v6097_v58 = vld [vmem:[#allocation3 + $0x198] sm:$0xf0]  ;;  %v6079_v59 = vld [vmem:[#allocation3 + $0x158] sm:$0xf] }
  0x40   : > { %v6100_v60 = vor.u32 %v8172_v57, %v6097_v58  ;;  %v8170_v61 = vld [vmem:[#allocation3 + $0x16c] sm:$0xf0]  ;;  %v6271_v62 = vld [vmem:[#allocation3 + $0x2d8] sm:$0xf]  ;;  %v8167_v7 = vld [vmem:[#allocation3 + $0x15c] sm:$0xf] }
  0x41   : > { %1419 = vmatpush.bf16.msra.mxu2 %v5956_v33  ;;  %v8218_v0 = vld [vmem:[#allocation3 + $0x2ec] sm:$0xf0]  ;;  %v6080_v3 = vor.u32 %v8170_v61, %v6079_v59  ;;  %v6081_v9 = vld [vmem:[#allocation3 + $0x170] sm:$0xf0]  ;;  %v8215_v10 = vld [vmem:[#allocation3 + $0x2dc] sm:$0xf] }
  0x42   : > { %v6272_v6 = vor.u32 %v8218_v0, %v6271_v62  ;;  %v6273_v12 = vld [vmem:[#allocation3 + $0x2f0] sm:$0xf0]  ;;  %v8164_v14 = vld [vmem:[#allocation3 + $0x13c] sm:$0xf0]  ;;  %v6031_v27 = vld [vmem:[#allocation3 + $0xf8] sm:$0xf] }
  0x43   : > { %1392 = vmatpush.bf16.msra.mxu0 %v5928_v39  ;;  %v6276_v15 = vor.u32 %v8215_v10, %v6273_v12  ;;  %v6223_v29 = vld [vmem:[#allocation3 + $0x278] sm:$0xf]  ;;  %v8206_v31 = vld [vmem:[#allocation3 + $0x28c] sm:$0xf0]  ;;  %v8155_v32 = vld [vmem:[#allocation3 + $0xfc] sm:$0xf] }
  0x44   : > { %v6224_v33 = vor.u32 %v8206_v31, %v6223_v29  ;;  %v6007_v37 = vld [vmem:[#allocation3 + $0xc8] sm:$0xf]  ;;  %v8152_v38 = vld [vmem:[#allocation3 + $0xdc] sm:$0xf0]  ;;  %v8149_v42 = vld [vmem:[#allocation3 + $0xcc] sm:$0xf] }
  0x45   : > { %1420 = vmatpush.bf16.msra.mxu2 %v5932_v44  ;;  %v6199_v39 = vld [vmem:[#allocation3 + $0x248] sm:$0xf]  ;;  %v6008_v40 = vor.u32 %v8152_v38, %v6007_v37  ;;  %v8200_v41 = vld [vmem:[#allocation3 + $0x25c] sm:$0xf0]  ;;  %v8197_v46 = vld [vmem:[#allocation3 + $0x24c] sm:$0xf] }
  0x46   : > { %v6200_v44 = vor.u32 %v8200_v41, %v6199_v39  ;;  %v5983_v49 = vld [vmem:[#allocation3 + $0x98] sm:$0xf]  ;;  %v8146_v50 = vld [vmem:[#allocation3 + $0xac] sm:$0xf0]  ;;  %v8143_v54 = vld [vmem:[#allocation3 + $0x9c] sm:$0xf] }
  0x47   : > { %1393 = vmatpush.bf16.msra.mxu0 %v5904_v51  ;;  %v6175_v51 = vld [vmem:[#allocation3 + $0x218] sm:$0xf]  ;;  %v5984_v52 = vor.u32 %v8146_v50, %v5983_v49  ;;  %v8194_v53 = vld [vmem:[#allocation3 + $0x22c] sm:$0xf0]  ;;  %v8191_v58 = vld [vmem:[#allocation3 + $0x21c] sm:$0xf] }
  0x48   : > { %v6177_v59 = vld [vmem:[#allocation3 + $0x230] sm:$0xf0]  ;;  %v5959_v61 = vld [vmem:[#allocation3 + $0x68] sm:$0xf]  ;;  %v8140_v62 = vld [vmem:[#allocation3 + $0x7c] sm:$0xf0] }
  0x49   : > { %1421 = vmatpush.bf16.msra.mxu2 %v5908_v56  ;;  %v6176_v56 = vor.u32 %v8194_v53, %v6175_v51  ;;  %v6151_v0 = vld [vmem:[#allocation3 + $0x1e8] sm:$0xf]  ;;  %v8185_v12 = vld [vmem:[#allocation3 + $0x1ec] sm:$0xf]  ;;  %v6105_v39 = vld [vmem:[#allocation3 + $0x1a0] sm:$0xf0] }
  0x4a   : > { %v5911_v31 = vld [vmem:[#allocation3 + $0x8] sm:$0xf]  ;;  %v8173_v38 = vld [vmem:[#allocation3 + $0x18c] sm:$0xf]  ;;  %v716_v53 = vld [vmem:[%s10080_s26] sm:$0x3] }
  0x4b   : > { %1442 = vmatpush.bf16.msrb.mxu0 %v6080_v3  ;;  %v5960_v3 = vor.u32 %v8140_v62, %v5959_v61  ;;  %v6108_v41 = vor.u32 %v8173_v38, %v6105_v39  ;;  %v8159_v38 = vld [vmem:[#allocation3 + $0x114] sm:$0xf0]  ;;  %s5900_s4 = sshll.u32 %s10087_s19, 3  ;;  %s10084_s25 = sld [smem:[#allocation22_spill]] }
  0xa4   : > { %v720_v11 = vpop.xlane.xlu0 %719 }
  0xa5   : > { %v731_v13 = vmul.f32 %v9165_v63, %v720_v11  ;;  %v6084_v11 = vor.u32 %v8167_v7, %v6081_v9  ;;  %v8137_v7 = vld [vmem:[#allocation3 + $0x6c] sm:$0xf]  ;;  %v5961_v9 = vld [vmem:[#allocation3 + $0x80] sm:$0xf0] }
  0xa7   : > { %v9169_v8 = vsub.f32 %v9146_v1, %v731_v13  ;;  %v9172_v17 = vsub.f32 %v9148_v2, %v731_v13  ;;  %v6055_v13 = vld [vmem:[#allocation3 + $0x128] sm:$0xf]  ;;  %1470 = vmatpush.bf16.msrb.mxu2 %v6084_v11  ;;  %v5964_v11 = vor.u32 %v8137_v7, %v5961_v9 }
  0xa8   : > { %v6056_v16 = vor.u32 %v8164_v14, %v6055_v13  ;;  %v6153_v13 = vld [vmem:[#allocation3 + $0x200] sm:$0xf0] }
  0xa9   : > { %v737_v18 = vmul.f32 %v9169_v8, %v9169_v8  ;;  %v738_v19 = vmul.f32 %v9172_v17, %v9172_v17  ;;  %v6156_v14 = vor.u32 %v8185_v12, %v6153_v13 }
  0xaa   : > { %1443 = vmatpush.bf16.msrb.mxu0 %v6056_v16  ;;  %v5935_v16 = vld [vmem:[#allocation3 + $0x38] sm:$0xf] }
  0xab   : > { %v741_v20 = vadd.f32 %v738_v19, %v737_v18  ;;  %v6247_v18 = vld [vmem:[#allocation3 + $0x2a8] sm:$0xf]  ;;  %v8212_v19 = vld [vmem:[#allocation3 + $0x2bc] sm:$0xf0] }
  0xac   : > { %v723_v21 = vpop.xlane.xlu0 %722 }
  0xad   : > { %v732_v22 = vmul.f32 %v9165_v63, %v723_v21  ;;  %742 = vadd.xlane.f32.xlu1 %v741_v20  ;;  %v8161_v20 = vld [vmem:[#allocation3 + $0x12c] sm:$0xf]  ;;  %v6248_v21 = vor.u32 %v8212_v19, %v6247_v18  ;;  %v8134_v18 = vld [vmem:[#allocation3 + $0x4c] sm:$0xf0]  ;;  %v6127_v19 = vld [vmem:[#allocation3 + $0x1b8] sm:$0xf] }
  0xaf   : > { %v9180_v1 = vsub.f32 %v9152_v4, %v732_v22  ;;  %v9183_v2 = vsub.f32 %v9154_v5, %v732_v22  ;;  %v6144_v4 = vor.u32 %v8187_v30, %v6143_v28  ;;  %v6145_v5 = vld [vmem:[#allocation3 + $0x1f8] sm:$0xf0]  ;;  %v6057_v22 = vld [vmem:[#allocation3 + $0x140] sm:$0xf0]  ;;  %v8158_v28 = vld [vmem:[#allocation3 + $0x10c] sm:$0xf0] }
  0xb0   : > { %v6148_v35 = vor.u32 %v8184_v34, %v6145_v5  ;;  %v6032_v30 = vor.u32 %v8158_v28, %v6031_v27  ;;  %v8203_v5 = vld [vmem:[#allocation3 + $0x27c] sm:$0xf]  ;;  %v6129_v28 = vld [vmem:[#allocation3 + $0x1d0] sm:$0xf0] }
  0xb1   : > { %v739_v23 = vmul.f32 %v9180_v1, %v9180_v1  ;;  %v740_v24 = vmul.f32 %v9183_v2, %v9183_v2  ;;  %1405 = vmatpush.bf16.msra.mxu1 %v6144_v4  ;;  %v6033_v4 = vld [vmem:[#allocation3 + $0x110] sm:$0xf0]  ;;  %v8179_v27 = vld [vmem:[#allocation3 + $0x1bc] sm:$0xf] }
  0xb2   : > { %1433 = vmatpush.bf16.msra.mxu3 %v6148_v35  ;;  %v6036_v34 = vor.u32 %v8155_v32, %v6033_v4  ;;  %v6225_v35 = vld [vmem:[#allocation3 + $0x290] sm:$0xf0]  ;;  %1444 = vmatpush.bf16.msrb.mxu0 %v6032_v30  ;;  %v6132_v30 = vor.u32 %v8179_v27, %v6129_v28  ;;  %v8128_v32 = vld [vmem:[#allocation3 + $0x1c] sm:$0xf0]  ;;  %v6103_v4 = vld [vmem:[#allocation3 + $0x188] sm:$0xf] }
  0xb3   : > { %v744_v25 = vadd.f32 %v740_v24, %v739_v23  ;;  %v8209_v23 = vld [vmem:[#allocation3 + $0x2ac] sm:$0xf]  ;;  %v6249_v24 = vld [vmem:[#allocation3 + $0x2c0] sm:$0xf0]  ;;  %v6228_v36 = vor.u32 %v8203_v5, %v6225_v35  ;;  %v6063_v27 = vld [vmem:[#allocation3 + $0x130] sm:$0xf] }
  0xb4   : > { %v6252_v26 = vor.u32 %v8209_v23, %v6249_v24  ;;  %v8131_v23 = vld [vmem:[#allocation3 + $0x3c] sm:$0xf]  ;;  %v5937_v24 = vld [vmem:[#allocation3 + $0x50] sm:$0xf0]  ;;  %v8125_v5 = vld [vmem:[#allocation3 + $0xc] sm:$0xf] }
  0xb5   : > { %745 = vadd.xlane.f32.xlu1 %v744_v25  ;;  %1406 = vmatpush.bf16.msra.mxu1 %v6120_v43  ;;  %v6060_v25 = vor.u32 %v8161_v20, %v6057_v22  ;;  %v6009_v43 = vld [vmem:[#allocation3 + $0xe0] sm:$0xf0]  ;;  %v8182_v22 = vld [vmem:[#allocation3 + $0x1cc] sm:$0xf0]  ;;  %v8165_v28 = vld [vmem:[#allocation3 + $0x144] sm:$0xf0] }
  0xb6   : > { %1434 = vmatpush.bf16.msra.mxu3 %v6124_v47  ;;  %v6012_v45 = vor.u32 %v8149_v42, %v6009_v43  ;;  %v6201_v47 = vld [vmem:[#allocation3 + $0x260] sm:$0xf0]  ;;  %1445 = vmatpush.bf16.msrb.mxu0 %v6008_v40 }
  0xb7   : > { %1471 = vmatpush.bf16.msrb.mxu2 %v6060_v25  ;;  %v6204_v48 = vor.u32 %v8197_v46, %v6201_v47  ;;  %v6128_v25 = vor.u32 %v8182_v22, %v6127_v19  ;;  %v5913_v35 = vld [vmem:[#allocation3 + $0x20] sm:$0xf0]  ;;  %v6089_v22 = vld [vmem:[#allocation3 + $0x178] sm:$0xf0] }
  0xb8   : > { %v5916_v37 = vor.u32 %v8125_v5, %v5913_v35  ;;  %v6257_v5 = vld [vmem:[#allocation3 + $0x2c8] sm:$0xf0]  ;;  %v6064_v35 = vor.u32 %v8165_v28, %v6063_v27 }
  0xb9   : > { %1407 = vmatpush.bf16.msra.mxu1 %v6096_v55  ;;  %v5985_v55 = vld [vmem:[#allocation3 + $0xb0] sm:$0xf0]  ;;  %v6161_v27 = vld [vmem:[#allocation3 + $0x208] sm:$0xf0] }
  0xba   : > { %1435 = vmatpush.bf16.msra.mxu3 %v6100_v60  ;;  %v5988_v57 = vor.u32 %v8143_v54, %v5985_v55  ;;  %v6180_v60 = vor.u32 %v8191_v58, %v6177_v59  ;;  %1446 = vmatpush.bf16.msrb.mxu0 %v5984_v52  ;;  %v776_v58 = vperm.slane %v716_v53, 0  ;;  %v777_v59 = vperm.slane %v716_v53, 1  ;;  %v6207_v53 = vld [vmem:[#allocation3 + $0x250] sm:$0xf] }
  0xbb   : > { %1472 = vmatpush.bf16.msrb.mxu2 %v6036_v34  ;;  %v8176_v34 = vld [vmem:[#allocation3 + $0x19c] sm:$0xf0] }
  0xbd   : > { %1456 = vmatpush.bf16.msrb.mxu1 %v6272_v6  ;;  %v8188_v6 = vld [vmem:[#allocation3 + $0x1fc] sm:$0xf0] }
  0xbe   : > { %1484 = vmatpush.bf16.msrb.mxu3 %v6276_v15  ;;  %v6152_v10 = vor.u32 %v8188_v6, %v6151_v0  ;;  %1447 = vmatpush.bf16.msrb.mxu0 %v5960_v3 }
  0xbf   : > { %1473 = vmatpush.bf16.msrb.mxu2 %v6012_v45 }
  0xc1   : > { %1457 = vmatpush.bf16.msrb.mxu1 %v6248_v21  ;;  %v5936_v21 = vor.u32 %v8134_v18, %v5935_v16  ;;  %v6279_v16 = vld [vmem:[#allocation3 + $0x2e0] sm:$0xf]  ;;  %v8168_v18 = vld [vmem:[#allocation3 + $0x164] sm:$0xf] }
  0xc2   : > { %1485 = vmatpush.bf16.msrb.mxu3 %v6252_v26  ;;  %v5940_v26 = vor.u32 %v8131_v23, %v5937_v24  ;;  %v8216_v23 = vld [vmem:[#allocation3 + $0x2e4] sm:$0xf] }
  0xc3   : > { %1474 = vmatpush.bf16.msrb.mxu2 %v5988_v57  ;;  %1448 = vmatpush.bf16.msrb.mxu0 %v5936_v21  ;;  %v717_v57 = vld [vmem:[%s10081_s29] sm:$0x3] }
  0xc4   : > { %v785_v0 = vperm.slane %v717_v57, 0  ;;  %v786_v3 = vperm.slane %v717_v57, 1  ;;  %v8198_v57 = vld [vmem:[#allocation3 + $0x254] sm:$0xf] }
  0xc5   : > { %1458 = vmatpush.bf16.msrb.mxu1 %v6224_v33  ;;  %v5912_v33 = vor.u32 %v8128_v32, %v5911_v31  ;;  %v6255_v31 = vld [vmem:[#allocation3 + $0x2b0] sm:$0xf]  ;;  %v8213_v32 = vld [vmem:[#allocation3 + $0x2c4] sm:$0xf0] }
  0xc6   : > { %1486 = vmatpush.bf16.msrb.mxu3 %v6228_v36  ;;  %v6104_v36 = vor.u32 %v8176_v34, %v6103_v4  ;;  %v8162_v4 = vld [vmem:[#allocation3 + $0x134] sm:$0xf] }
  0xc7   : > { %1475 = vmatpush.bf16.msrb.mxu2 %v5964_v11  ;;  %1449 = vmatpush.bf16.msrb.mxu0 %v5912_v33  ;;  %v6065_v33 = vld [vmem:[#allocation3 + $0x148] sm:$0xf0]  ;;  %v8210_v34 = vld [vmem:[#allocation3 + $0x2b4] sm:$0xf] }
  0xc8   : > { %v6068_v39 = vor.u32 %v8162_v4, %v6065_v33  ;;  %v6135_v33 = vld [vmem:[#allocation3 + $0x1c0] sm:$0xf] }
  0xc9   : > { %1459 = vmatpush.bf16.msrb.mxu1 %v6200_v44 }
  0xca   : > { %1487 = vmatpush.bf16.msrb.mxu3 %v6204_v48 }
  0xcb   : > { %1476 = vmatpush.bf16.msrb.mxu2 %v5940_v26 }
  0xcd   : > { %1460 = vmatpush.bf16.msrb.mxu1 %v6176_v56 }
  0xce   : > { %1488 = vmatpush.bf16.msrb.mxu3 %v6180_v60 }
  0xcf   : > { %1477 = vmatpush.bf16.msrb.mxu2 %v5916_v37  ;;  %v6039_v37 = vld [vmem:[#allocation3 + $0x100] sm:$0xf] }
  0xd1   : > { %1461 = vmatpush.bf16.msrb.mxu1 %v6152_v10 }
  0xd2   : > { %1489 = vmatpush.bf16.msrb.mxu3 %v6156_v14  ;;  %v6087_v14 = vld [vmem:[#allocation3 + $0x160] sm:$0xf] }
  0xd5   : > { %1462 = vmatpush.bf16.msrb.mxu1 %v6128_v25 }
  0xd6   : > { %1490 = vmatpush.bf16.msrb.mxu3 %v6132_v30 }
  0xd9   : > { %1463 = vmatpush.bf16.msrb.mxu1 %v6104_v36  ;;  %v6256_v36 = vor.u32 %v8213_v32, %v6255_v31  ;;  %v8135_v31 = vld [vmem:[#allocation3 + $0x54] sm:$0xf0] }
  0xda   : > { %1491 = vmatpush.bf16.msrb.mxu3 %v6108_v41  ;;  %v6231_v41 = vld [vmem:[#allocation3 + $0x280] sm:$0xf] }
 0x120   : > { %v743_v15 = vpop.xlane.xlu1 %742 }
 0x121   : > { %v747_v20 = vmul.f32 %v743_v15, %v9165_v63  ;;  %v8171_v15 = vld [vmem:[#allocation3 + $0x174] sm:$0xf0] }
 0x122   : > { %v6088_v25 = vor.u32 %v8171_v15, %v6087_v14  ;;  %v5967_v15 = vld [vmem:[#allocation3 + $0x70] sm:$0xf] }
 0x123   : > { %v749_v29 = vadd.f32 1e-12, %v747_v20 }
 0x125   : > { %8729 = vrsqrt.f32 %v749_v29  ;;  %vm757_vm2 = vweird.f32 %v749_v29 }
 0x128   : > { %v746_v40 = vpop.xlane.xlu1 %745 }
 0x129   : > { %v748_v42 = vmul.f32 %v746_v40, %v9165_v63  ;;  %v6260_v40 = vor.u32 %v8210_v34, %v6257_v5  ;;  %v8183_v34 = vld [vmem:[#allocation3 + $0x1d4] sm:$0xf0]  ;;  %v8132_v5 = vld [vmem:[#allocation3 + $0x44] sm:$0xf] }
 0x12b   : > { %v8730_v43 = vpop.eup %8729  ;;  %v750_v44 = vadd.f32 1e-12, %v748_v42  ;;  %v8207_v42 = vld [vmem:[#allocation3 + $0x294] sm:$0xf0] }
 0x12c   : > { %v752_v45 = vmul.f32 %v8730_v43, %v749_v29  ;;  %vm758_vm1 = vweird.f32 %v8730_v43  ;;  %v6092_v29 = vor.u32 %v8168_v18, %v6089_v22  ;;  %v6159_v22 = vld [vmem:[#allocation3 + $0x1f0] sm:$0xf] }
 0x12d   : > { %8731 = vrsqrt.f32 %v750_v44  ;;  %vm759_vm3 = vmor %vm757_vm2, %vm758_vm1  ;;  %vm767_vm5 = vweird.f32 %v750_v44 }
 0x12e   : > { %v753_v46 = vmul.f32 %v8730_v43, %v752_v45  ;;  %v8204_v45 = vld [vmem:[#allocation3 + $0x284] sm:$0xf] }
 0x130   : > { %v754_v47 = vmul.f32 0.5, %v753_v46  ;;  %v6233_v46 = vld [vmem:[#allocation3 + $0x298] sm:$0xf0] }
 0x132   : > { %v755_v48 = vsub.f32 1.5, %v754_v47  ;;  %v6040_v47 = vor.u32 %v8159_v38, %v6039_v37  ;;  %v6137_v37 = vld [vmem:[#allocation3 + $0x1d8] sm:$0xf0] }
 0x133   : > { %v8732_v49 = vpop.eup %8731 }
 0x134   : > { %v756_v50 = vmul.f32 %v8730_v43, %v755_v48  ;;  %v762_v51 = vmul.f32 %v8732_v49, %v750_v44  ;;  %vm768_vm4 = vweird.f32 %v8732_v49  ;;  %v6041_v44 = vld [vmem:[#allocation3 + $0x118] sm:$0xf0]  ;;  %v6232_v48 = vor.u32 %v8207_v42, %v6231_v41  ;;  %v8129_v41 = vld [vmem:[#allocation3 + $0x24] sm:$0xf0] }
 0x135   : > { %vm769_vm6 = vmor %vm767_vm5, %vm768_vm4 }
 0x136   : > { %v763_v52 = vmul.f32 %v8732_v49, %v762_v51  ;;  %v760_v54 = vsel %vm759_vm3, %v8730_v43, %v756_v50  ;;  %v8156_v43 = vld [vmem:[#allocation3 + $0x104] sm:$0xf]  ;;  %v8153_v50 = vld [vmem:[#allocation3 + $0xe4] sm:$0xf0] }
 0x137   : > { %v771_v60 = vmul.f32 %v760_v54, %v9169_v8  ;;  %v772_v61 = vmul.f32 %v760_v54, %v9172_v17  ;;  %v8219_v8 = vld [vmem:[#allocation3 + $0x2f4] sm:$0xf0]  ;;  %v6044_v51 = vor.u32 %v8156_v43, %v6041_v44  ;;  %v8201_v54 = vld [vmem:[#allocation3 + $0x264] sm:$0xf0]  ;;  %v6111_v44 = vld [vmem:[#allocation3 + $0x190] sm:$0xf] }
 0x138   : > { %v764_v55 = vmul.f32 0.5, %v763_v52  ;;  %v6280_v26 = vor.u32 %v8219_v8, %v6279_v16  ;;  %v6236_v52 = vor.u32 %v8204_v45, %v6233_v46  ;;  %v8141_v16 = vld [vmem:[#allocation3 + $0x84] sm:$0xf0]  ;;  %v8126_v46 = vld [vmem:[#allocation3 + $0x14] sm:$0xf] }
 0x139   : > { %v780_v7 = vmul.f32 %v776_v58, %v771_v60  ;;  %v781_v9 = vmul.f32 %v777_v59, %v772_v61  ;;  %v6208_v60 = vor.u32 %v8201_v54, %v6207_v53  ;;  %v5991_v61 = vld [vmem:[#allocation3 + $0xa0] sm:$0xf]  ;;  %v5968_v28 = vor.u32 %v8141_v16, %v5967_v15  ;;  %v8177_v45 = vld [vmem:[#allocation3 + $0x1a4] sm:$0xf0] }
 0x13a   : > { %v765_v56 = vsub.f32 1.5, %v764_v55  ;;  %v8150_v55 = vld [vmem:[#allocation3 + $0xd4] sm:$0xf] }
 0x13b   : > { %v9201_v17 = vadd.f32 %v785_v0, %v780_v7  ;;  %v9203_v19 = vadd.f32 %v786_v3, %v781_v9  ;;  %v8195_v7 = vld [vmem:[#allocation3 + $0x234] sm:$0xf0]  ;;  %v8144_v9 = vld [vmem:[#allocation3 + $0xa4] sm:$0xf] }
 0x13c   : > { %v766_v62 = vmul.f32 %v8732_v49, %v765_v56  ;;  %v6017_v56 = vld [vmem:[#allocation3 + $0xe8] sm:$0xf0] }
 0x13e   : > { %v770_v6 = vsel %vm769_vm6, %v8732_v49, %v766_v62  ;;  %v6015_v49 = vld [vmem:[#allocation3 + $0xd0] sm:$0xf]  ;;  %v8147_v62 = vld [vmem:[#allocation3 + $0xb4] sm:$0xf0] }
 0x13f   : > { %v773_v10 = vmul.f32 %v770_v6, %v9180_v1  ;;  %v774_v11 = vmul.f32 %v770_v6, %v9183_v2  ;;  %v6281_v1 = vld [vmem:[#allocation3 + $0x2f8] sm:$0xf0]  ;;  %v6183_v6 = vld [vmem:[#allocation3 + $0x220] sm:$0xf] }
 0x140   : > { %v6284_v30 = vor.u32 %v8216_v23, %v6281_v1  ;;  %v6184_v14 = vor.u32 %v8195_v7, %v6183_v6  ;;  %v8189_v23 = vld [vmem:[#allocation3 + $0x204] sm:$0xf0]  ;;  %v8138_v1 = vld [vmem:[#allocation3 + $0x74] sm:$0xf] }
 0x141   : > { %v782_v12 = vmul.f32 %v776_v58, %v773_v10  ;;  %v783_v13 = vmul.f32 %v777_v59, %v774_v11  ;;  %v6209_v58 = vld [vmem:[#allocation3 + $0x268] sm:$0xf0]  ;;  %v6016_v59 = vor.u32 %v8153_v50, %v6015_v49  ;;  %v5993_v10 = vld [vmem:[#allocation3 + $0xb8] sm:$0xf0]  ;;  %v8192_v11 = vld [vmem:[#allocation3 + $0x224] sm:$0xf] }
 0x142   : > { %v5996_v8 = vor.u32 %v8144_v9, %v5993_v10  ;;  %v6113_v49 = vld [vmem:[#allocation3 + $0x1a8] sm:$0xf0] }
 0x143   : > { %v9205_v20 = vadd.f32 %v785_v0, %v782_v12  ;;  %v9207_v21 = vadd.f32 %v786_v3, %v783_v13  ;;  %v6020_v0 = vor.u32 %v8150_v55, %v6017_v56  ;;  %v6212_v3 = vor.u32 %v8198_v57, %v6209_v58  ;;  %v6185_v12 = vld [vmem:[#allocation3 + $0x238] sm:$0xf0] }
 0x144   : > { %v5992_v13 = vor.u32 %v8147_v62, %v5991_v61  ;;  %v6188_v18 = vor.u32 %v8192_v11, %v6185_v12 }
 0x145   : > { %v9211_v2 = vpack.c.bf16 %v9205_v20, %v9201_v17  ;;  %v9215_v24 = vpack.c.bf16 %v9207_v21, %v9203_v19 }
 0x147   : > { %1394 = vmatmul.bf16.vlgmr.msra.gmra.mxu0 %v9211_v2  ;;  %1408 = vmatmul.bf16.vlgmr.msra.gmra.mxu1 %v9215_v24 }
 0x148   : > { %1422 = vmatmul.bf16.vlgmr.msra.gmra.mxu2 %v9211_v2  ;;  %1436 = vmatmul.bf16.vlgmr.msra.gmra.mxu3 %v9215_v24 }
 0x149   : > { %1498 = vmatpush.bf16.msra.mxu0 %v6088_v25  ;;  %1512 = vmatpush.bf16.msra.mxu1 %v6280_v26  ;;  %v5969_v25 = vld [vmem:[#allocation3 + $0x88] sm:$0xf0]  ;;  %v8186_v26 = vld [vmem:[#allocation3 + $0x1f4] sm:$0xf] }
 0x14a   : > { %1526 = vmatpush.bf16.msra.mxu2 %v6092_v29  ;;  %1540 = vmatpush.bf16.msra.mxu3 %v6284_v30  ;;  %v6160_v29 = vor.u32 %v8189_v23, %v6159_v22  ;;  %v5943_v30 = vld [vmem:[#allocation3 + $0x40] sm:$0xf]  ;;  %v5972_v32 = vor.u32 %v8138_v1, %v5969_v25  ;;  %v6164_v4 = vor.u32 %v8186_v26, %v6161_v27 }
 0x14b   : > { %v5944_v38 = vor.u32 %v8135_v31, %v5943_v30 }
 0x14d   : > { %1499 = vmatpush.bf16.msra.mxu0 %v6064_v35  ;;  %1513 = vmatpush.bf16.msra.mxu1 %v6256_v36  ;;  %v5945_v35 = vld [vmem:[#allocation3 + $0x58] sm:$0xf0]  ;;  %v8180_v36 = vld [vmem:[#allocation3 + $0x1c4] sm:$0xf] }
 0x14e   : > { %1527 = vmatpush.bf16.msra.mxu2 %v6068_v39  ;;  %1541 = vmatpush.bf16.msra.mxu3 %v6260_v40  ;;  %v6136_v39 = vor.u32 %v8183_v34, %v6135_v33  ;;  %v5919_v40 = vld [vmem:[#allocation3 + $0x10] sm:$0xf]  ;;  %v5948_v42 = vor.u32 %v8132_v5, %v5945_v35  ;;  %v6140_v43 = vor.u32 %v8180_v36, %v6137_v37 }
 0x14f   : > { %v5920_v50 = vor.u32 %v8129_v41, %v5919_v40 }
 0x151   : > { %1500 = vmatpush.bf16.msra.mxu0 %v6040_v47  ;;  %1514 = vmatpush.bf16.msra.mxu1 %v6232_v48  ;;  %v5921_v47 = vld [vmem:[#allocation3 + $0x28] sm:$0xf0]  ;;  %v8174_v48 = vld [vmem:[#allocation3 + $0x194] sm:$0xf] }
 0x152   : > { %1528 = vmatpush.bf16.msra.mxu2 %v6044_v51  ;;  %1542 = vmatpush.bf16.msra.mxu3 %v6236_v52  ;;  %v6112_v51 = vor.u32 %v8177_v45, %v6111_v44  ;;  %v5924_v52 = vor.u32 %v8126_v46, %v5921_v47  ;;  %v6116_v53 = vor.u32 %v8174_v48, %v6113_v49 }
 0x155   : > { %1501 = vmatpush.bf16.msra.mxu0 %v6016_v59  ;;  %1515 = vmatpush.bf16.msra.mxu1 %v6208_v60 }
 0x156   : > { %1529 = vmatpush.bf16.msra.mxu2 %v6020_v0  ;;  %1543 = vmatpush.bf16.msra.mxu3 %v6212_v3  ;;  %v892_v3 = vld [vmem:[%s10047_s5] sm:$0x3f] }
 0x157   : > { %1450 = vmatmul.bf16.vlgmr.msrb.gmra.mxu0 %v9211_v2  ;;  %1464 = vmatmul.bf16.vlgmr.msrb.gmra.mxu1 %v9215_v24  ;;  %v896_v6 = vperm.slane %v892_v3, 2  ;;  %v894_v12 = vperm.slane %v892_v3, 0  ;;  %v895_v27 = vperm.slane %v892_v3, 1  ;;  %v898_v5 = vperm.slane %v892_v3, 4 }
 0x158   : > { %1478 = vmatmul.bf16.vlgmr.msrb.gmra.mxu2 %v9211_v2  ;;  %1492 = vmatmul.bf16.vlgmr.msrb.gmra.mxu3 %v9215_v24  ;;  %v899_v44 = vperm.slane %v892_v3, 5 }
 0x159   : > { %1502 = vmatpush.bf16.msra.mxu0 %v5992_v13  ;;  %1516 = vmatpush.bf16.msra.mxu1 %v6184_v14  ;;  %v897_v13 = vperm.slane %v892_v3, 3 }
 0x15a   : > { %1530 = vmatpush.bf16.msra.mxu2 %v5996_v8  ;;  %1544 = vmatpush.bf16.msra.mxu3 %v6188_v18 }
 0x15d   : > { %1503 = vmatpush.bf16.msra.mxu0 %v5968_v28  ;;  %1517 = vmatpush.bf16.msra.mxu1 %v6160_v29 }
 0x15e   : > { %1531 = vmatpush.bf16.msra.mxu2 %v5972_v32  ;;  %1545 = vmatpush.bf16.msra.mxu3 %v6164_v4 }
 0x161   : > { %1504 = vmatpush.bf16.msra.mxu0 %v5944_v38  ;;  %1518 = vmatpush.bf16.msra.mxu1 %v6136_v39 }
 0x162   : > { %1532 = vmatpush.bf16.msra.mxu2 %v5948_v42  ;;  %1546 = vmatpush.bf16.msra.mxu3 %v6140_v43 }
 0x165   : > { %1505 = vmatpush.bf16.msra.mxu0 %v5920_v50  ;;  %1519 = vmatpush.bf16.msra.mxu1 %v6112_v51 }
 0x166   : > { %1533 = vmatpush.bf16.msra.mxu2 %v5924_v52  ;;  %1547 = vmatpush.bf16.msra.mxu3 %v6116_v53 }
 0x168   : > { %1506 = vmatmul.bf16.vlgmr.msra.gmra.mxu0 %v9211_v2  ;;  %1520 = vmatmul.bf16.vlgmr.msra.gmra.mxu1 %v9215_v24 }
 0x169   : > { %1534 = vmatmul.bf16.vlgmr.msra.gmra.mxu2 %v9211_v2  ;;  %1548 = vmatmul.bf16.vlgmr.msra.gmra.mxu3 %v9215_v24 }
 0x1c4   : > { %v1395_v54 = vpop.f32.mrf.mxu0  ;;  %v1409_v55 = vpop.f32.mrf.mxu1 }
 0x1c5   : > { %v1396_v18 = vadd.f32 %v1395_v54, %v894_v12 }
 0x1c7   : > { %v1410_v30 = vadd.f32 %v1409_v55, %v1396_v18 }
 0x1cb   : > { %v1423_v56 = vpop.f32.mrf.mxu2  ;;  %v1437_v57 = vpop.f32.mrf.mxu3 }
 0x1cc   : > { %v1397_v58 = vpop.f32.mrf.mxu0  ;;  %v1411_v59 = vpop.f32.mrf.mxu1  ;;  %v1424_v35 = vadd.f32 %v1423_v56, %v895_v27  ;;  %v8726_v56 = vld [vmem:[%s9144_s1] ss:$0 sm:$0xff] }
 0x1cd   : > { %v1398_v16 = vadd.f32 %v1397_v58, %v894_v12 }
 0x1ce   : > { %v1438_v40 = vadd.f32 %v1437_v57, %v1424_v35  ;;  %v6401_v35 = vld [vmem:[%s10048_s6 + $0x60] sm:$0xf] }
 0x1cf   : > { %v1412_v25 = vadd.f32 %v1411_v59, %v1398_v16 }
 0x1d1   : > { %v1586_v33 = vpack.c.bf16 %v1412_v25, %v1410_v30 }
 0x1d3   : > { %v1425_v60 = vpop.f32.mrf.mxu2  ;;  %v1439_v61 = vpop.f32.mrf.mxu3 }
 0x1d4   : > { %v1451_v62 = vpop.f32.mrf.mxu0  ;;  %v1465_v0 = vpop.f32.mrf.mxu1  ;;  %v1426_v4 = vadd.f32 %v1425_v60, %v895_v27 }
 0x1d5   : > { %v1452_v7 = vadd.f32 %v1451_v62, %v896_v6 }
 0x1d6   : > { %v1440_v36 = vadd.f32 %v1439_v61, %v1426_v4  ;;  %v8235_v4 = vld [vmem:[%s10048_s6 + $0x74] sm:$0xf0] }
 0x1d7   : > { %v1466_v14 = vadd.f32 %v1465_v0, %v1452_v7 }
 0x1d8   : > { %v1648_v43 = vpack.c.bf16 %v1440_v36, %v1438_v40  ;;  %v8233_v36 = vld [vmem:[%s10048_s6 + $0x64] sm:$0xf0] }
 0x1db   : > { %v1479_v9 = vpop.f32.mrf.mxu2  ;;  %v1493_v2 = vpop.f32.mrf.mxu3 }
 0x1dc   : > { %v1453_v10 = vpop.f32.mrf.mxu0  ;;  %v1467_v24 = vpop.f32.mrf.mxu1  ;;  %v1480_v22 = vadd.f32 %v1479_v9, %v897_v13 }
 0x1dd   : > { %v1454_v11 = vadd.f32 %v1453_v10, %v896_v6 }
 0x1de   : > { %v1494_v31 = vadd.f32 %v1493_v2, %v1480_v22 }
 0x1df   : > { %v1468_v15 = vadd.f32 %v1467_v24, %v1454_v11 }
 0x1e1   : > { %v1587_v8 = vpack.c.bf16 %v1468_v15, %v1466_v14 }
 0x1e3   : > { %v1481_v23 = vpop.f32.mrf.mxu2  ;;  %v1495_v1 = vpop.f32.mrf.mxu3  ;;  %1599 = vmatpush.bf16.xpose.msrb.mxu0 %v1587_v8 }
 0x1e4   : > { %v1482_v26 = vadd.f32 %v1481_v23, %v897_v13 }
 0x1e5   : > { %v1507_v28 = vpop.f32.mrf.mxu0  ;;  %v1521_v29 = vpop.f32.mrf.mxu1 }
 0x1e6   : > { %v1496_v32 = vadd.f32 %v1495_v1, %v1482_v26  ;;  %v1508_v37 = vadd.f32 %v1507_v28, %v898_v5 }
 0x1e8   : > { %v1649_v34 = vpack.c.bf16 %v1496_v32, %v1494_v31  ;;  %v1522_v46 = vadd.f32 %v1521_v29, %v1508_v37  ;;  %v6409_v32 = vld [vmem:[%s10048_s6 + $0x70] sm:$0xf] }
 0x1ea   : > { %1658 = vmatpush.bf16.xpose.msrb.mxu2 %v1649_v34  ;;  %1600 = vmatmul.bf16.vlgmr.msrb.gmra.mxu0 %v1586_v33  ;;  %v8234_v33 = vld [vmem:[%s10048_s6 + $0x74] sm:$0xf]  ;;  %v6410_v34 = vor.u32 %v8235_v4, %v6409_v32  ;;  %v8248_v32 = vld [vmem:[%s10048_s6 + $0xe4] sm:$0xf]  ;;  %v6339_v4 = vld [vmem:[%s10048_s6 + $0xe8] sm:$0xf0] }
 0x1ec   : > { %v1535_v38 = vpop.f32.mrf.mxu2  ;;  %v1549_v39 = vpop.f32.mrf.mxu3 }
 0x1ed   : > { %v1509_v41 = vpop.f32.mrf.mxu0  ;;  %v1523_v45 = vpop.f32.mrf.mxu1  ;;  %v1536_v49 = vadd.f32 %v1535_v38, %v899_v44  ;;  %v8232_v38 = vld [vmem:[%s10048_s6 + $0x64] sm:$0xf] }
 0x1ee   : > { %v1510_v42 = vadd.f32 %v1509_v41, %v898_v5  ;;  %v6411_v5 = vld [vmem:[%s10048_s6 + $0x78] sm:$0xf0]  ;;  %v6402_v41 = vor.u32 %v8233_v36, %v6401_v35  ;;  %v8222_v35 = vld [vmem:[%s10048_s6 + $0x14] sm:$0xf] }
 0x1ef   : > { %v1550_v53 = vadd.f32 %v1549_v39, %v1536_v49  ;;  %v6414_v37 = vor.u32 %v8234_v33, %v6411_v5  ;;  %v6403_v39 = vld [vmem:[%s10048_s6 + $0x68] sm:$0xf0]  ;;  %v6361_v33 = vld [vmem:[%s10048_s6 + $0x10] sm:$0xf]  ;;  %v8223_v5 = vld [vmem:[%s10048_s6 + $0x14] sm:$0xf0] }
 0x1f0   : > { %v1524_v47 = vadd.f32 %v1523_v45, %v1510_v42  ;;  %v6406_v42 = vor.u32 %v8232_v38, %v6403_v39  ;;  %v8230_v45 = vld [vmem:[%s10048_s6 + $0x54] sm:$0xf]  ;;  %v6363_v36 = vld [vmem:[%s10048_s6 + $0x18] sm:$0xf0]  ;;  %v6329_v39 = vld [vmem:[%s10048_s6 + $0xd0] sm:$0xf] }
 0x1f1   : > { %1659 = vmatmul.bf16.vlgmr.msrb.gmra.mxu2 %v1648_v43  ;;  %v6393_v43 = vld [vmem:[%s10048_s6 + $0x50] sm:$0xf]  ;;  %v6366_v38 = vor.u32 %v8222_v35, %v6363_v36 }
 0x1f2   : > { %v1588_v48 = vpack.c.bf16 %v1524_v47, %v1522_v46  ;;  %1894 = vmatpush.bf16.msra.mxu2 %v6410_v34  ;;  %v6395_v46 = vld [vmem:[%s10048_s6 + $0x58] sm:$0xf0]  ;;  %v6345_v47 = vld [vmem:[%s10048_s6 + $0xf0] sm:$0xf]  ;;  %v6342_v34 = vor.u32 %v8248_v32, %v6339_v4  ;;  %v1926_v32 = vld [vmem:[%s10049_s7] sm:$0x3] }
 0x1f3   : > { %v1928_v35 = vperm.slane %v1926_v32, 0  ;;  %v1929_v36 = vperm.slane %v1926_v32, 1  ;;  %v6625_v32 = vld [vmem:[#allocation5 + $0x1a0] sm:$0xf] }
 0x1f4   : > { %v1537_v50 = vpop.f32.mrf.mxu2  ;;  %1640 = vmatpush.bf16.msrb.mxu1 %v1588_v48  ;;  %v1551_v52 = vpop.f32.mrf.mxu3 }
 0x1f5   : > { %v1538_v51 = vadd.f32 %v1537_v50, %v899_v44  ;;  %v8231_v44 = vld [vmem:[%s10048_s6 + $0x54] sm:$0xf0] }
 0x1f6   : > { %1895 = vmatpush.bf16.msra.mxu2 %v6402_v41  ;;  %v6394_v49 = vor.u32 %v8231_v44, %v6393_v43  ;;  %v8251_v50 = vld [vmem:[%s10048_s6 + $0xf4] sm:$0xf0]  ;;  %v8246_v41 = vld [vmem:[%s10048_s6 + $0xd4] sm:$0xf]  ;;  %v6331_v43 = vld [vmem:[%s10048_s6 + $0xd8] sm:$0xf0] }
 0x1f7   : > { %v1552_v54 = vadd.f32 %v1551_v52, %v1538_v51  ;;  %v8250_v51 = vld [vmem:[%s10048_s6 + $0xf4] sm:$0xf]  ;;  %v6347_v52 = vld [vmem:[%s10048_s6 + $0xf8] sm:$0xf0]  ;;  %v6334_v44 = vor.u32 %v8246_v41, %v6331_v43 }
 0x1f9   : > { %v1650_v55 = vpack.c.bf16 %v1552_v54, %v1550_v53  ;;  %v6398_v53 = vor.u32 %v8230_v45, %v6395_v46  ;;  %v6385_v54 = vld [vmem:[%s10048_s6 + $0x40] sm:$0xf]  ;;  %v8221_v46 = vld [vmem:[%s10048_s6 + $0x4] sm:$0xf0] }
 0x1fa   : > { %1896 = vmatpush.bf16.msra.mxu2 %v6394_v49  ;;  %v6353_v45 = vld [vmem:[%s10048_s6] sm:$0xf]  ;;  %v6355_v49 = vld [vmem:[%s10048_s6 + $0x8] sm:$0xf0] }
 0x1fb   : > { %1698 = vmatpush.bf16.msrb.mxu3 %v1650_v55  ;;  %v8229_v55 = vld [vmem:[%s10048_s6 + $0x44] sm:$0xf0] }
 0x1ff   : > { %1908 = vmatpush.bf16.msra.mxu3 %v6414_v37  ;;  %v6362_v37 = vor.u32 %v8223_v5, %v6361_v33 }
 0x203   : > { %1909 = vmatpush.bf16.msra.mxu3 %v6406_v42 }
 0x207   : > { %1910 = vmatpush.bf16.msra.mxu3 %v6398_v53  ;;  %v8244_v53 = vld [vmem:[%s10048_s6 + $0xc4] sm:$0xf] }
 0x267   : > { %v1601_v57 = vpop.f32.mrf.mxu0 }
 0x268   : > { %v1602_v58 = vadd.f32 %v8726_v56, %v1601_v57  ;;  %v6350_v57 = vor.u32 %v8250_v51, %v6347_v52  ;;  %v6321_v51 = vld [vmem:[%s10048_s6 + $0xc0] sm:$0xf]  ;;  %v8245_v52 = vld [vmem:[%s10048_s6 + $0xc4] sm:$0xf0] }
 0x26a   : > { %v1607_v59 = vsel %vm1606_vm7, %v1602_v58, -inf  ;;  %1800 = vmatpush.bf16.msra.mxu1 %v6350_v57  ;;  %v6313_v57 = vld [vmem:[%s10048_s6 + $0xb0] sm:$0xf] }
 0x26b   : > { %1608 = vmax.xlane.f32.xlu2 %v1607_v59  ;;  %v6387_v59 = vld [vmem:[%s10048_s6 + $0x48] sm:$0xf0] }
 0x26e   : > { %1801 = vmatpush.bf16.msra.mxu1 %v6342_v34 }
 0x26f   : > { %v1603_v60 = vpop.f32.mrf.mxu0 }
 0x270   : > { %v1604_v61 = vadd.f32 %v8726_v56, %v1603_v60  ;;  %v6386_v60 = vor.u32 %v8229_v55, %v6385_v54  ;;  %v6322_v54 = vor.u32 %v8245_v52, %v6321_v51  ;;  %v6323_v55 = vld [vmem:[%s10048_s6 + $0xc8] sm:$0xf0] }
 0x272   : > { %v1610_v62 = vsel %vm1606_vm7, %v1604_v61, -inf  ;;  %1897 = vmatpush.bf16.msra.mxu2 %v6386_v60  ;;  %1802 = vmatpush.bf16.msra.mxu1 %v6334_v44 }
 0x273   : > { %1611 = vmax.xlane.f32.xlu2 %v1610_v62 }
 0x274   : > { %v1660_v0 = vpop.f32.mrf.mxu2 }
 0x275   : > { %v1661_v3 = vadd.f32 %v8726_v56, %v1660_v0  ;;  %v6377_v0 = vld [vmem:[%s10048_s6 + $0x30] sm:$0xf] }
 0x277   : > { %v1665_v6 = vsel %vm1606_vm7, %v1661_v3, -inf }
 0x278   : > { %1666 = vmax.xlane.f32.xlu0 %v1665_v6  ;;  %v8226_v6 = vld [vmem:[%s10048_s6 + $0x34] sm:$0xf] }
 0x27c   : > { %v1662_v7 = vpop.f32.mrf.mxu2 }
 0x27d   : > { %v1663_v9 = vadd.f32 %v8726_v56, %v1662_v7  ;;  %v6346_v56 = vor.u32 %v8251_v50, %v6345_v47  ;;  %v6379_v7 = vld [vmem:[%s10048_s6 + $0x38] sm:$0xf0]  ;;  %v8220_v47 = vld [vmem:[%s10048_s6 + $0x4] sm:$0xf] }
 0x27e   : > { %v6358_v50 = vor.u32 %v8220_v47, %v6355_v49 }
 0x27f   : > { %v1668_v2 = vsel %vm1606_vm7, %v1663_v9, -inf  ;;  %1786 = vmatpush.bf16.msra.mxu0 %v6346_v56  ;;  %v6326_v56 = vor.u32 %v8244_v53, %v6323_v55  ;;  %v6657_v53 = vld [vmem:[#allocation5 + $0x1e0] sm:$0xf]  ;;  %v8314_v55 = vld [vmem:[#allocation5 + $0x1ec] sm:$0xf0] }
 0x280   : > { %1669 = vmax.xlane.f32.xlu1 %v1668_v2 }
 0x281   : > { %1803 = vmatpush.bf16.msra.mxu1 %v6326_v56  ;;  %v8280_v56 = vld [vmem:[#allocation5 + $0xe4] sm:$0xf] }
 0x2de   : > { %v1609_v10 = vpop.xlane.xlu2 %1608 }
 0x2df   : > { %v1613_v24 = vsub.f32 %v1602_v58, %v1609_v10  ;;  %v8228_v58 = vld [vmem:[%s10048_s6 + $0x44] sm:$0xf] }
 0x2e0   : > { %v6390_v62 = vor.u32 %v8228_v58, %v6387_v59  ;;  %v8243_v58 = vld [vmem:[%s10048_s6 + $0xb4] sm:$0xf0]  ;;  %v8242_v59 = vld [vmem:[%s10048_s6 + $0xb4] sm:$0xf] }
 0x2e1   : > { %v1615_v11 = vmul.f32 1.442695, %v1613_v24  ;;  %v6314_v60 = vor.u32 %v8243_v58, %v6313_v57  ;;  %v6531_v57 = vld [vmem:[#allocation5 + $0xf0] sm:$0xf0]  ;;  %v6658_v58 = vor.u32 %v8314_v55, %v6657_v53  ;;  %v8264_v55 = vld [vmem:[#allocation5 + $0x64] sm:$0xf] }
 0x2e2   : > { %1911 = vmatpush.bf16.msra.mxu3 %v6390_v62 }
 0x2e3   : > { %8733 = vpow2.f32 %v1615_v11 }
 0x2e6   : > { %v1612_v12 = vpop.xlane.xlu2 %1611 }
 0x2e7   : > { %v1614_v13 = vsub.f32 %v1604_v61, %v1612_v12  ;;  %v6382_v12 = vor.u32 %v8226_v6, %v6379_v7  ;;  %v8240_v6 = vld [vmem:[%s10048_s6 + $0xa4] sm:$0xf] }
 0x2e9   : > { %v9237_v14 = vpop.eup %8733  ;;  %v1617_v15 = vmul.f32 1.442695, %v1614_v13  ;;  %1912 = vmatpush.bf16.msra.mxu3 %v6382_v12 }
 0x2ea   : > { %v1619_v16 = vsel %vm1606_vm7, %v9237_v14, 0.0 }
 0x2eb   : > { %8735 = vpow2.f32 %v1617_v15  ;;  %v1667_v8 = vpop.xlane.xlu0 %1666  ;;  %1620 = vadd.xlane.f32.xlu2 %v1619_v16 }
 0x2ec   : > { %v1671_v18 = vsub.f32 %v1661_v3, %v1667_v8  ;;  %v8227_v3 = vld [vmem:[%s10048_s6 + $0x34] sm:$0xf0] }
 0x2ed   : > { %v6378_v24 = vor.u32 %v8227_v3, %v6377_v0  ;;  %v6305_v0 = vld [vmem:[%s10048_s6 + $0xa0] sm:$0xf]  ;;  %v8241_v3 = vld [vmem:[%s10048_s6 + $0xa4] sm:$0xf0] }
 0x2ee   : > { %v1673_v22 = vmul.f32 1.442695, %v1671_v18  ;;  %v6306_v7 = vor.u32 %v8241_v3, %v6305_v0  ;;  %v8278_v0 = vld [vmem:[#allocation5 + $0xcc] sm:$0xf0] }
 0x2ef   : > { %1898 = vmatpush.bf16.msra.mxu2 %v6378_v24  ;;  %v8239_v24 = vld [vmem:[%s10048_s6 + $0x94] sm:$0xf0]  ;;  %v8310_v3 = vld [vmem:[#allocation5 + $0x1cc] sm:$0xf0] }
 0x2f0   : > { %8737 = vpow2.f32 %v1673_v22 }
 0x2f1   : > { %v8736_v23 = vpop.eup %8735 }
 0x2f2   : > { %v1622_v1 = vsel %vm1606_vm7, %v8736_v23, 0.0 }
 0x2f3   : > { %v1670_v25 = vpop.xlane.xlu1 %1669  ;;  %1623 = vadd.xlane.f32.xlu0 %v1622_v1  ;;  %v8225_v1 = vld [vmem:[%s10048_s6 + $0x24] sm:$0xf0] }
 0x2f4   : > { %v1672_v26 = vsub.f32 %v1663_v9, %v1670_v25  ;;  %v8224_v25 = vld [vmem:[%s10048_s6 + $0x24] sm:$0xf] }
 0x2f6   : > { %v9242_v27 = vpop.eup %8737  ;;  %v1675_v28 = vmul.f32 1.442695, %v1672_v26 }
 0x2f7   : > { %v1677_v29 = vsel %vm1606_vm7, %v9242_v27, 0.0 }
 0x2f8   : > { %8739 = vpow2.f32 %v1675_v28  ;;  %1678 = vadd.xlane.f32.xlu1 %v1677_v29  ;;  %v6337_v28 = vld [vmem:[%s10048_s6 + $0xe0] sm:$0xf]  ;;  %v8249_v29 = vld [vmem:[%s10048_s6 + $0xe4] sm:$0xf0] }
 0x2fe   : > { %v9246_v30 = vpop.eup %8739 }
 0x2ff   : > { %v1680_v31 = vsel %vm1606_vm7, %v9246_v30, 0.0 }
 0x300   : > { %1681 = vadd.xlane.f32.xlu2 %v1680_v31  ;;  %v6338_v31 = vor.u32 %v8249_v29, %v6337_v28 }
 0x302   : > { %1787 = vmatpush.bf16.msra.mxu0 %v6338_v31 }
 0x35e   : > { %v1621_v40 = vpop.xlane.xlu2 %1620 }
 0x35f   : > { %8741 = vrcp.f32 %v1621_v40  ;;  %v8247_v40 = vld [vmem:[%s10048_s6 + $0xd4] sm:$0xf0] }
 0x360   : > { %v6330_v42 = vor.u32 %v8247_v40, %v6329_v39 }
 0x362   : > { %1788 = vmatpush.bf16.msra.mxu0 %v6330_v42 }
 0x365   : > { %v8742_v61 = vpop.eup %8741 }
 0x366   : > { %v1624_v48 = vpop.xlane.xlu0 %1623  ;;  %v1627_v2 = vmul.f32 %v8742_v61, %v9237_v14  ;;  %1789 = vmatpush.bf16.msra.mxu0 %v6322_v54  ;;  %v6315_v61 = vld [vmem:[%s10048_s6 + $0xb8] sm:$0xf0] }
 0x367   : > { %8743 = vrcp.f32 %v1624_v48  ;;  %v6354_v48 = vor.u32 %v8221_v46, %v6353_v45  ;;  %v6318_v62 = vor.u32 %v8242_v59, %v6315_v61  ;;  %v6534_v59 = vor.u32 %v8280_v56, %v6531_v57  ;;  %v6659_v61 = vld [vmem:[#allocation5 + $0x1f0] sm:$0xf0] }
 0x368   : > { %v6467_v56 = vld [vmem:[#allocation5 + $0x70] sm:$0xf0] }
 0x369   : > { %1804 = vmatpush.bf16.msra.mxu1 %v6318_v62  ;;  %v6513_v62 = vld [vmem:[#allocation5 + $0xc0] sm:$0xf] }
 0x36a   : > { %1790 = vmatpush.bf16.msra.mxu0 %v6314_v60  ;;  %v8312_v60 = vld [vmem:[#allocation5 + $0x1e4] sm:$0xf] }
 0x36b   : > { %v1679_v11 = vpop.xlane.xlu1 %1678 }
 0x36c   : > { %8745 = vrcp.f32 %v1679_v11  ;;  %v8238_v11 = vld [vmem:[%s10048_s6 + $0x94] sm:$0xf] }
 0x36d   : > { %v8744_v9 = vpop.eup %8743 }
 0x36e   : > { %v1628_v10 = vmul.f32 %v8744_v9, %v8736_v23  ;;  %v6369_v23 = vld [vmem:[%s10048_s6 + $0x20] sm:$0xf]  ;;  %v6307_v9 = vld [vmem:[%s10048_s6 + $0xa8] sm:$0xf0]  ;;  %1791 = vmatpush.bf16.msra.mxu0 %v6306_v7 }
 0x36f   : > { %v6370_v26 = vor.u32 %v8225_v1, %v6369_v23 }
 0x370   : > { %v1629_v13 = vpack.c.bf16 %v1628_v10, %v1627_v2  ;;  %v6310_v2 = vor.u32 %v8240_v6, %v6307_v9  ;;  %v6297_v10 = vld [vmem:[%s10048_s6 + $0x90] sm:$0xf]  ;;  %v6514_v6 = vor.u32 %v8278_v0, %v6513_v62  ;;  %v8276_v9 = vld [vmem:[#allocation5 + $0xc4] sm:$0xf]  ;;  %v6449_v62 = vld [vmem:[#allocation5 + $0x40] sm:$0xf] }
 0x371   : > { %1899 = vmatpush.bf16.msra.mxu2 %v6370_v26  ;;  %v6298_v12 = vor.u32 %v8239_v24, %v6297_v10  ;;  %v8308_v10 = vld [vmem:[#allocation5 + $0x1c4] sm:$0xf]  ;;  %v6577_v0 = vld [vmem:[#allocation5 + $0x140] sm:$0xf] }
 0x372   : > { %6285 = vmatmul.msk.bf16.vlgmr.msrb.gmra.mxu1 %vm1606_vm7, %v1629_v13  ;;  %v8746_v16 = vpop.eup %8745  ;;  %v6299_v13 = vld [vmem:[%s10048_s6 + $0x98] sm:$0xf0] }
 0x373   : > { %v1682_v15 = vpop.xlane.xlu2 %1681  ;;  %v1685_v18 = vmul.f32 %v8746_v16, %v9242_v27  ;;  %v6371_v27 = vld [vmem:[%s10048_s6 + $0x28] sm:$0xf0]  ;;  %1805 = vmatpush.bf16.msra.mxu1 %v6310_v2  ;;  %1792 = vmatpush.bf16.msra.mxu0 %v6298_v12  ;;  %v6289_v16 = vld [vmem:[%s10048_s6 + $0x80] sm:$0xf]  ;;  %v6515_v2 = vld [vmem:[#allocation5 + $0xd0] sm:$0xf0] }
 0x374   : > { %8747 = vrcp.f32 %v1682_v15  ;;  %v6302_v15 = vor.u32 %v8238_v11, %v6299_v13  ;;  %v6518_v24 = vor.u32 %v8276_v9, %v6515_v2  ;;  %v6643_v11 = vld [vmem:[#allocation5 + $0x1d0] sm:$0xf0] }
 0x375   : > { %1900 = vmatpush.bf16.msra.mxu2 %v6362_v37  ;;  %v6646_v12 = vor.u32 %v8308_v10, %v6643_v11  ;;  %v8292_v10 = vld [vmem:[#allocation5 + $0x144] sm:$0xf] }
 0x377   : > { %1806 = vmatpush.bf16.msra.mxu1 %v6302_v15 }
 0x379   : > { %1901 = vmatpush.bf16.msra.mxu2 %v6354_v48 }
 0x37a   : > { %v8748_v8 = vpop.eup %8747 }
 0x37b   : > { %v1686_v14 = vmul.f32 %v8748_v8, %v9246_v30  ;;  %v6374_v30 = vor.u32 %v8224_v25, %v6371_v27  ;;  %v8237_v8 = vld [vmem:[%s10048_s6 + $0x84] sm:$0xf0] }
 0x37d   : > { %v1687_v22 = vpack.c.bf16 %v1686_v14, %v1685_v18  ;;  %1913 = vmatpush.bf16.msra.mxu3 %v6374_v30  ;;  %v8236_v18 = vld [vmem:[%s10048_s6 + $0x84] sm:$0xf]  ;;  %v6290_v14 = vor.u32 %v8237_v8, %v6289_v16  ;;  %2430 = vmatpush.bf16.msrb.mxu2 %v6534_v59 }
 0x37e   : > { %v8296_v59 = vld [vmem:[#allocation5 + $0x164] sm:$0xf] }
 0x37f   : > { %6286 = vmatmul.msk.bf16.vlgmr.msrb.gmra.mxu3 %vm1606_vm7, %v1687_v22  ;;  %v6291_v22 = vld [vmem:[%s10048_s6 + $0x88] sm:$0xf0]  ;;  %1793 = vmatpush.bf16.msra.mxu0 %v6290_v14 }
 0x380   : > { %v6294_v23 = vor.u32 %v8236_v18, %v6291_v22 }
 0x381   : > { %1914 = vmatpush.bf16.msra.mxu3 %v6366_v38  ;;  %2431 = vmatpush.bf16.msrb.mxu2 %v6518_v24  ;;  %v6579_v24 = vld [vmem:[#allocation5 + $0x150] sm:$0xf0] }
 0x382   : > { %1807 = vmatpush.bf16.msra.mxu1 %v6294_v23  ;;  %v6582_v11 = vor.u32 %v8292_v10, %v6579_v24 }
 0x385   : > { %1915 = vmatpush.bf16.msra.mxu3 %v6358_v50 }
 0x386   : > { %2416 = vmatpush.bf16.msrb.mxu1 %v6658_v58  ;;  %v6470_v58 = vor.u32 %v8264_v55, %v6467_v56  ;;  %v8311_v55 = vld [vmem:[#allocation5 + $0x1d4] sm:$0xf0]  ;;  %v8277_v56 = vld [vmem:[#allocation5 + $0xcc] sm:$0xf] }
 0x3ef   : > { %v1642_v1 = vpop.f32.mrf.mxu1 }
 0x3f7   : > { %v1644_v25 = vpop.f32.mrf.mxu1 }
 0x3f8   : > { %v1647_v26 = vpack.c.bf16 %v1644_v25, %v1642_v1 }
 0x3fa   : > { %1902 = vmatmul.bf16.vlgmr.msra.gmra.mxu2 %v1647_v26  ;;  %1916 = vmatmul.bf16.vlgmr.msra.gmra.mxu3 %v1647_v26 }
 0x402   : > { %v1700_v27 = vpop.f32.mrf.mxu3 }
 0x40a   : > { %v1702_v28 = vpop.f32.mrf.mxu3 }
 0x40b   : > { %v1705_v29 = vpack.c.bf16 %v1702_v28, %v1700_v27 }
 0x40d   : > { %1794 = vmatmul.bf16.vlgmr.msra.gmra.mxu0 %v1705_v29  ;;  %1808 = vmatmul.bf16.vlgmr.msra.gmra.mxu1 %v1705_v29 }
 0x47d   : > { %v1903_v30 = vpop.f32.mrf.mxu2  ;;  %v1917_v31 = vpop.f32.mrf.mxu3 }
 0x485   : > { %v1905_v41 = vpop.f32.mrf.mxu2  ;;  %v1919_v42 = vpop.f32.mrf.mxu3 }
 0x48a   : > { %v1795_v4 = vpop.f32.mrf.mxu0  ;;  %v1809_v33 = vpop.f32.mrf.mxu1 }
 0x48b   : > { %v1904_v34 = vadd.f32 %v1903_v30, %v1795_v4  ;;  %v1918_v5 = vadd.f32 %v1917_v31, %v1809_v33  ;;  %v6497_v30 = vld [vmem:[#allocation5 + $0xa0] sm:$0xf]  ;;  %v8274_v31 = vld [vmem:[#allocation5 + $0xac] sm:$0xf0] }
 0x48c   : > { %v6498_v4 = vor.u32 %v8274_v31, %v6497_v30  ;;  %v8306_v33 = vld [vmem:[#allocation5 + $0x1ac] sm:$0xf0]  ;;  %v6417_v31 = vld [vmem:[#allocation5] sm:$0xf] }
 0x48d   : > { %v1922_v37 = vadd.f32 %v1904_v34, %v9201_v17  ;;  %v1923_v38 = vadd.f32 %v1918_v5, %v9203_v19  ;;  %v6529_v17 = vld [vmem:[#allocation5 + $0xe0] sm:$0xf]  ;;  %v8282_v19 = vld [vmem:[#allocation5 + $0xec] sm:$0xf0]  ;;  %v8272_v34 = vld [vmem:[#allocation5 + $0xa4] sm:$0xf] }
 0x48e   : > { %v6530_v54 = vor.u32 %v8282_v19, %v6529_v17  ;;  %v6499_v5 = vld [vmem:[#allocation5 + $0xb0] sm:$0xf0]  ;;  %v8266_v17 = vld [vmem:[#allocation5 + $0x6c] sm:$0xf0]  ;;  %v6593_v19 = vld [vmem:[#allocation5 + $0x160] sm:$0xf] }
 0x48f   : > { %v1932_v39 = vadd.f32 %v1928_v35, %v1922_v37  ;;  %v1933_v40 = vadd.f32 %v1929_v36, %v1923_v38  ;;  %v8304_v37 = vld [vmem:[#allocation5 + $0x1a4] sm:$0xf]  ;;  %v6627_v38 = vld [vmem:[#allocation5 + $0x1b0] sm:$0xf0] }
 0x490   : > { %2402 = vmatpush.bf16.msrb.mxu0 %v6530_v54  ;;  %v8298_v54 = vld [vmem:[#allocation5 + $0x16c] sm:$0xf0] }
 0x491   : > { %v1938_v43 = vadd.f32 %v1933_v40, %v1932_v39  ;;  %v6594_v57 = vor.u32 %v8298_v54, %v6593_v19  ;;  %v6649_v54 = vld [vmem:[#allocation5 + $0x1c8] sm:$0xf] }
 0x492   : > { %v1797_v44 = vpop.f32.mrf.mxu0  ;;  %v1811_v45 = vpop.f32.mrf.mxu1 }
 0x493   : > { %v1906_v46 = vadd.f32 %v1905_v41, %v1797_v44  ;;  %v1920_v47 = vadd.f32 %v1919_v42, %v1811_v45  ;;  %1939 = vadd.xlane.f32.xlu0 %v1938_v43  ;;  %v8270_v41 = vld [vmem:[#allocation5 + $0x8c] sm:$0xf0]  ;;  %v6609_v42 = vld [vmem:[#allocation5 + $0x180] sm:$0xf]  ;;  %v8268_v45 = vld [vmem:[#allocation5 + $0x84] sm:$0xf] }
 0x494   : > { %2403 = vmatpush.bf16.msrb.mxu0 %v6514_v6  ;;  %v8302_v44 = vld [vmem:[#allocation5 + $0x18c] sm:$0xf0]  ;;  %v8260_v6 = vld [vmem:[#allocation5 + $0x44] sm:$0xf] }
 0x495   : > { %v1924_v48 = vadd.f32 %v1906_v46, %v9205_v20  ;;  %v1925_v49 = vadd.f32 %v1920_v47, %v9207_v21  ;;  %v6662_v20 = vor.u32 %v8312_v60, %v6659_v61  ;;  %v6641_v21 = vld [vmem:[#allocation5 + $0x1c0] sm:$0xf]  ;;  %v6483_v46 = vld [vmem:[#allocation5 + $0x90] sm:$0xf0]  ;;  %v6610_v47 = vor.u32 %v8302_v44, %v6609_v42  ;;  %v8283_v42 = vld [vmem:[#allocation5 + $0xf4] sm:$0xf0] }
 0x496   : > { %v6642_v7 = vor.u32 %v8310_v3, %v6641_v21  ;;  %v6595_v60 = vld [vmem:[#allocation5 + $0x170] sm:$0xf0]  ;;  %v8294_v3 = vld [vmem:[#allocation5 + $0x14c] sm:$0xf0]  ;;  %v8315_v44 = vld [vmem:[#allocation5 + $0x1f4] sm:$0xf0] }
 0x497   : > { %v1934_v50 = vadd.f32 %v1928_v35, %v1924_v48  ;;  %v1935_v51 = vadd.f32 %v1929_v36, %v1925_v49  ;;  %2444 = vmatpush.bf16.msrb.mxu3 %v6662_v20  ;;  %v6626_v35 = vor.u32 %v8306_v33, %v6625_v32  ;;  %v6502_v36 = vor.u32 %v8272_v34, %v6499_v5  ;;  %v8300_v49 = vld [vmem:[#allocation5 + $0x184] sm:$0xf]  ;;  %v8262_v20 = vld [vmem:[#allocation5 + $0x4c] sm:$0xf0] }
 0x498   : > { %2417 = vmatpush.bf16.msrb.mxu1 %v6642_v7  ;;  %2404 = vmatpush.bf16.msrb.mxu0 %v6498_v4  ;;  %v6486_v48 = vor.u32 %v8268_v45, %v6483_v46  ;;  %v6598_v61 = vor.u32 %v8296_v59, %v6595_v60  ;;  %v6450_v21 = vor.u32 %v8262_v20, %v6449_v62  ;;  %v6451_v7 = vld [vmem:[#allocation5 + $0x50] sm:$0xf0]  ;;  %v8254_v32 = vld [vmem:[#allocation5 + $0xc] sm:$0xf0]  ;;  %v6545_v4 = vld [vmem:[#allocation5 + $0x100] sm:$0xf] }
 0x499   : > { %v1941_v52 = vadd.f32 %v1935_v51, %v1934_v50  ;;  %2432 = vmatpush.bf16.msrb.mxu2 %v6502_v36  ;;  %v6578_v9 = vor.u32 %v8294_v3, %v6577_v0  ;;  %v6454_v2 = vor.u32 %v8260_v6, %v6451_v7  ;;  %v6418_v33 = vor.u32 %v8254_v32, %v6417_v31  ;;  %v8286_v34 = vld [vmem:[#allocation5 + $0x10c] sm:$0xf0]  ;;  %v8252_v5 = vld [vmem:[#allocation5 + $0x4] sm:$0xf]  ;;  %v8309_v59 = vld [vmem:[#allocation5 + $0x1cc] sm:$0xf] }
 0x49a   : > { %v6546_v36 = vor.u32 %v8286_v34, %v6545_v4  ;;  %v6651_v60 = vld [vmem:[#allocation5 + $0x1d8] sm:$0xf0]  ;;  %v6505_v20 = vld [vmem:[#allocation5 + $0xa8] sm:$0xf]  ;;  %v8275_v0 = vld [vmem:[#allocation5 + $0xb4] sm:$0xf0] }
 0x49b   : > { %1942 = vadd.xlane.f32.xlu1 %v1941_v52  ;;  %2445 = vmatpush.bf16.msrb.mxu3 %v6646_v12  ;;  %v6465_v52 = vld [vmem:[#allocation5 + $0x60] sm:$0xf]  ;;  %v6654_v62 = vor.u32 %v8309_v59, %v6651_v60  ;;  %v6506_v3 = vor.u32 %v8275_v0, %v6505_v20  ;;  %v8307_v6 = vld [vmem:[#allocation5 + $0x1b4] sm:$0xf0]  ;;  %v8273_v7 = vld [vmem:[#allocation5 + $0xac] sm:$0xf] }
 0x49c   : > { %2418 = vmatpush.bf16.msrb.mxu1 %v6626_v35  ;;  %v6466_v53 = vor.u32 %v8266_v17, %v6465_v52  ;;  %v6433_v12 = vld [vmem:[#allocation5 + $0x20] sm:$0xf]  ;;  %v6419_v35 = vld [vmem:[#allocation5 + $0x10] sm:$0xf0]  ;;  %v6521_v52 = vld [vmem:[#allocation5 + $0xc8] sm:$0xf] }
 0x49d   : > { %2433 = vmatpush.bf16.msrb.mxu2 %v6486_v48  ;;  %v6539_v48 = vld [vmem:[#allocation5 + $0xf8] sm:$0xf0]  ;;  %v8279_v17 = vld [vmem:[#allocation5 + $0xd4] sm:$0xf0]  ;;  %v6473_v34 = vld [vmem:[#allocation5 + $0x68] sm:$0xf] }
 0x49e   : > { %v6619_v32 = vld [vmem:[#allocation5 + $0x198] sm:$0xf0]  ;;  %v8259_v60 = vld [vmem:[#allocation5 + $0x34] sm:$0xf0]  ;;  %v8257_v0 = vld [vmem:[#allocation5 + $0x2c] sm:$0xf] }
 0x4a0   : > { %2419 = vmatpush.bf16.msrb.mxu1 %v6610_v47  ;;  %v8281_v47 = vld [vmem:[#allocation5 + $0xec] sm:$0xf] }
 0x4a1   : > { %2434 = vmatpush.bf16.msrb.mxu2 %v6470_v58  ;;  %v6523_v58 = vld [vmem:[#allocation5 + $0xd8] sm:$0xf0] }
 0x4a4   : > { %2420 = vmatpush.bf16.msrb.mxu1 %v6594_v57  ;;  %v6650_v57 = vor.u32 %v8311_v55, %v6649_v54 }
 0x4a5   : > { %2435 = vmatpush.bf16.msrb.mxu2 %v6454_v2 }
 0x4a8   : > { %2421 = vmatpush.bf16.msrb.mxu1 %v6578_v9  ;;  %v6507_v9 = vld [vmem:[#allocation5 + $0xb8] sm:$0xf0] }
 0x4a9   : > { %v6510_v24 = vor.u32 %v8273_v7, %v6507_v9  ;;  %v6571_v7 = vld [vmem:[#allocation5 + $0x138] sm:$0xf0] }
 0x506   : > { %v1940_v13 = vpop.xlane.xlu0 %1939 }
 0x507   : > { %v1944_v15 = vmul.f32 %v1940_v13, %v9165_v63  ;;  %v8258_v13 = vld [vmem:[#allocation5 + $0x2c] sm:$0xf0] }
 0x509   : > { %v9455_v16 = vsub.f32 %v1932_v39, %v1944_v15  ;;  %v9457_v8 = vsub.f32 %v1933_v40, %v1944_v15  ;;  %v6630_v39 = vor.u32 %v8304_v37, %v6627_v38  ;;  %v6481_v40 = vld [vmem:[#allocation5 + $0x80] sm:$0xf]  ;;  %v6422_v37 = vor.u32 %v8252_v5, %v6419_v35  ;;  %v8284_v38 = vld [vmem:[#allocation5 + $0x104] sm:$0xf]  ;;  %v8267_v5 = vld [vmem:[#allocation5 + $0x74] sm:$0xf0] }
 0x50a   : > { %v6482_v43 = vor.u32 %v8270_v41, %v6481_v40  ;;  %v6561_v15 = vld [vmem:[#allocation5 + $0x120] sm:$0xf]  ;;  %v6537_v40 = vld [vmem:[#allocation5 + $0xe8] sm:$0xf] }
 0x50b   : > { %v1950_v18 = vmul.f32 %v9455_v16, %v9455_v16  ;;  %v1951_v14 = vmul.f32 %v9457_v8, %v9457_v8  ;;  %2446 = vmatpush.bf16.msrb.mxu3 %v6630_v39  ;;  %v6547_v39 = vld [vmem:[#allocation5 + $0x110] sm:$0xf0]  ;;  %v6538_v45 = vor.u32 %v8283_v42, %v6537_v40  ;;  %v6601_v35 = vld [vmem:[#allocation5 + $0x168] sm:$0xf] }
 0x50c   : > { %2405 = vmatpush.bf16.msrb.mxu0 %v6482_v43  ;;  %v6550_v41 = vor.u32 %v8284_v38, %v6547_v39  ;;  %v6665_v43 = vld [vmem:[#allocation5 + $0x1e8] sm:$0xf]  ;;  %v8265_v38 = vld [vmem:[#allocation5 + $0x6c] sm:$0xf]  ;;  %v6475_v39 = vld [vmem:[#allocation5 + $0x78] sm:$0xf0] }
 0x50d   : > { %v1954_v22 = vadd.f32 %v1951_v14, %v1950_v18  ;;  %v6434_v18 = vor.u32 %v8258_v13, %v6433_v12  ;;  %v8290_v14 = vld [vmem:[#allocation5 + $0x12c] sm:$0xf0]  ;;  %v6666_v46 = vor.u32 %v8315_v44, %v6665_v43  ;;  %v6635_v12 = vld [vmem:[#allocation5 + $0x1b8] sm:$0xf0]  ;;  %v6489_v13 = vld [vmem:[#allocation5 + $0x88] sm:$0xf]  ;;  %v6478_v42 = vor.u32 %v8265_v38, %v6475_v39 }
 0x50e   : > { %v1943_v23 = vpop.xlane.xlu1 %1942  ;;  %v8297_v43 = vld [vmem:[#allocation5 + $0x16c] sm:$0xf]  ;;  %v6603_v44 = vld [vmem:[#allocation5 + $0x178] sm:$0xf0] }
 0x50f   : > { %v1945_v1 = vmul.f32 %v1943_v23, %v9165_v63  ;;  %1955 = vadd.xlane.f32.xlu2 %v1954_v22  ;;  %v8256_v22 = vld [vmem:[#allocation5 + $0x24] sm:$0xf]  ;;  %v6435_v23 = vld [vmem:[#allocation5 + $0x30] sm:$0xf0] }
 0x510   : > { %2406 = vmatpush.bf16.msrb.mxu0 %v6466_v53  ;;  %v6522_v53 = vor.u32 %v8279_v17, %v6521_v52  ;;  %v6459_v52 = vld [vmem:[#allocation5 + $0x58] sm:$0xf0]  ;;  %v8293_v17 = vld [vmem:[#allocation5 + $0x14c] sm:$0xf] }
 0x511   : > { %v9464_v25 = vsub.f32 %v1934_v50, %v1945_v1  ;;  %v9466_v26 = vsub.f32 %v1935_v51, %v1945_v1  ;;  %v6611_v50 = vld [vmem:[#allocation5 + $0x190] sm:$0xf0]  ;;  %v6562_v1 = vor.u32 %v8290_v14, %v6561_v15  ;;  %v8271_v14 = vld [vmem:[#allocation5 + $0x94] sm:$0xf0] }
 0x512   : > { %v6614_v51 = vor.u32 %v8300_v49, %v6611_v50  ;;  %v8313_v49 = vld [vmem:[#allocation5 + $0x1ec] sm:$0xf]  ;;  %v6542_v50 = vor.u32 %v8281_v47, %v6539_v48  ;;  %v6606_v47 = vor.u32 %v8297_v43, %v6603_v44  ;;  %v8263_v48 = vld [vmem:[#allocation5 + $0x54] sm:$0xf0] }
 0x513   : > { %v1952_v27 = vmul.f32 %v9464_v25, %v9464_v25  ;;  %v1953_v28 = vmul.f32 %v9466_v26, %v9466_v26  ;;  %2422 = vmatpush.bf16.msrb.mxu1 %v6562_v1  ;;  %v8269_v1 = vld [vmem:[#allocation5 + $0x8c] sm:$0xf] }
 0x514   : > { %2447 = vmatpush.bf16.msrb.mxu3 %v6614_v51  ;;  %2407 = vmatpush.bf16.msrb.mxu0 %v6450_v21  ;;  %v6667_v51 = vld [vmem:[#allocation5 + $0x1f8] sm:$0xf0]  ;;  %v6633_v21 = vld [vmem:[#allocation5 + $0x1a8] sm:$0xf] }
 0x515   : > { %v1957_v29 = vadd.f32 %v1953_v28, %v1952_v27  ;;  %v6438_v27 = vor.u32 %v8256_v22, %v6435_v23  ;;  %v8288_v28 = vld [vmem:[#allocation5 + $0x124] sm:$0xf]  ;;  %v6670_v19 = vor.u32 %v8313_v49, %v6667_v51  ;;  %v6634_v10 = vor.u32 %v8307_v6, %v6633_v21  ;;  %v6617_v22 = vld [vmem:[#allocation5 + $0x188] sm:$0xf]  ;;  %v8303_v23 = vld [vmem:[#allocation5 + $0x194] sm:$0xf0] }
 0x516   : > { %v6618_v31 = vor.u32 %v8303_v23, %v6617_v22  ;;  %v6585_v49 = vld [vmem:[#allocation5 + $0x148] sm:$0xf]  ;;  %v8261_v51 = vld [vmem:[#allocation5 + $0x4c] sm:$0xf]  ;;  %v6443_v21 = vld [vmem:[#allocation5 + $0x38] sm:$0xf0] }
 0x517   : > { %1958 = vadd.xlane.f32.xlu0 %v1957_v29  ;;  %v6563_v29 = vld [vmem:[#allocation5 + $0x130] sm:$0xf0]  ;;  %2436 = vmatpush.bf16.msrb.mxu2 %v6438_v27  ;;  %v6491_v27 = vld [vmem:[#allocation5 + $0x98] sm:$0xf0]  ;;  %v6462_v59 = vor.u32 %v8261_v51, %v6459_v52  ;;  %v8289_v6 = vld [vmem:[#allocation5 + $0x12c] sm:$0xf] }
 0x518   : > { %2448 = vmatpush.bf16.msrb.mxu3 %v6598_v61  ;;  %2408 = vmatpush.bf16.msrb.mxu0 %v6434_v18  ;;  %v6566_v30 = vor.u32 %v8288_v28, %v6563_v29  ;;  %v6526_v61 = vor.u32 %v8277_v56, %v6523_v58  ;;  %v8301_v28 = vld [vmem:[#allocation5 + $0x18c] sm:$0xf]  ;;  %v6494_v4 = vor.u32 %v8269_v1, %v6491_v27  ;;  %v6587_v56 = vld [vmem:[#allocation5 + $0x158] sm:$0xf0]  ;;  %v6729_v51 = vld [vmem:[#allocation7 + $0x70] sm:$0xf] }
 0x519   : > { %2423 = vmatpush.bf16.msrb.mxu1 %v6546_v36  ;;  %v6474_v36 = vor.u32 %v8267_v5, %v6473_v34  ;;  %v6590_v20 = vor.u32 %v8293_v17, %v6587_v56  ;;  %v6427_v22 = vld [vmem:[#allocation5 + $0x18] sm:$0xf0]  ;;  %v8285_v1 = vld [vmem:[#allocation5 + $0x10c] sm:$0xf]  ;;  %v8331_v52 = vld [vmem:[#allocation7 + $0x74] sm:$0xf0] }
 0x51a   : > { %v6555_v27 = vld [vmem:[#allocation5 + $0x118] sm:$0xf0]  ;;  %v6721_v56 = vld [vmem:[#allocation7 + $0x60] sm:$0xf] }
 0x51b   : > { %2437 = vmatpush.bf16.msrb.mxu2 %v6422_v37  ;;  %v8299_v37 = vld [vmem:[#allocation5 + $0x174] sm:$0xf0]  ;;  %v6558_v34 = vor.u32 %v8285_v1, %v6555_v27  ;;  %v8341_v1 = vld [vmem:[#allocation7 + $0xc4] sm:$0xf0] }
 0x51c   : > { %2449 = vmatpush.bf16.msrb.mxu3 %v6582_v11  ;;  %2409 = vmatpush.bf16.msrb.mxu0 %v6418_v33  ;;  %v8305_v11 = vld [vmem:[#allocation5 + $0x1ac] sm:$0xf]  ;;  %v6622_v33 = vor.u32 %v8301_v28, %v6619_v32 }
 0x51d   : > { %2472 = vmatpush.bf16.msra.mxu1 %v6666_v46  ;;  %v6638_v18 = vor.u32 %v8305_v11, %v6635_v12  ;;  %v6446_v12 = vor.u32 %v8257_v0, %v6443_v21  ;;  %v6785_v21 = vld [vmem:[#allocation7 + $0xe0] sm:$0xf] }
 0x51f   : > { %2486 = vmatpush.bf16.msra.mxu2 %v6542_v50  ;;  %v8295_v50 = vld [vmem:[#allocation5 + $0x154] sm:$0xf0] }
 0x520   : > { %2450 = vmatpush.bf16.msrb.mxu3 %v6566_v30  ;;  %2458 = vmatpush.bf16.msra.mxu0 %v6538_v45  ;;  %v6490_v30 = vor.u32 %v8271_v14, %v6489_v13  ;;  %v6457_v45 = vld [vmem:[#allocation5 + $0x48] sm:$0xf]  ;;  %v6586_v55 = vor.u32 %v8295_v50, %v6585_v49  ;;  %v8253_v14 = vld [vmem:[#allocation5 + $0xc] sm:$0xf] }
 0x521   : > { %2473 = vmatpush.bf16.msra.mxu1 %v6650_v57  ;;  %v6458_v54 = vor.u32 %v8263_v48, %v6457_v45  ;;  %v6441_v57 = vld [vmem:[#allocation5 + $0x28] sm:$0xf] }
 0x522   : > { %v6442_v9 = vor.u32 %v8259_v60, %v6441_v57  ;;  %v6553_v13 = vld [vmem:[#allocation5 + $0x108] sm:$0xf]  ;;  %v8347_v60 = vld [vmem:[#allocation7 + $0xf4] sm:$0xf0] }
 0x523   : > { %2487 = vmatpush.bf16.msra.mxu2 %v6526_v61  ;;  %v6569_v61 = vld [vmem:[#allocation5 + $0x128] sm:$0xf] }
 0x524   : > { %2451 = vmatpush.bf16.msrb.mxu3 %v6550_v41  ;;  %2459 = vmatpush.bf16.msra.mxu0 %v6522_v53  ;;  %v6602_v41 = vor.u32 %v8299_v37, %v6601_v35  ;;  %v1936_v37 = vld [vmem:[%s10050_s8] sm:$0x3]  ;;  %v8329_v57 = vld [vmem:[#allocation7 + $0x64] sm:$0xf0] }
 0x525   : > { %2474 = vmatpush.bf16.msra.mxu1 %v6634_v10  ;;  %v6425_v10 = vld [vmem:[#allocation5 + $0x8] sm:$0xf] }
 0x527   : > { %2488 = vmatpush.bf16.msra.mxu2 %v6510_v24  ;;  %v8255_v24 = vld [vmem:[#allocation5 + $0x14] sm:$0xf0] }
 0x528   : > { %2500 = vmatpush.bf16.msra.mxu3 %v6670_v19  ;;  %2460 = vmatpush.bf16.msra.mxu0 %v6506_v3 }
 0x529   : > { %2475 = vmatpush.bf16.msra.mxu1 %v6618_v31 }
 0x52b   : > { %2489 = vmatpush.bf16.msra.mxu2 %v6494_v4 }
 0x52c   : > { %2501 = vmatpush.bf16.msra.mxu3 %v6654_v62  ;;  %2461 = vmatpush.bf16.msra.mxu0 %v6490_v30  ;;  %v8291_v62 = vld [vmem:[#allocation5 + $0x134] sm:$0xf0]  ;;  %v6426_v30 = vor.u32 %v8255_v24, %v6425_v10  ;;  %v6777_v10 = vld [vmem:[#allocation7 + $0xd0] sm:$0xf] }
 0x52d   : > { %2476 = vmatpush.bf16.msra.mxu1 %v6602_v41  ;;  %v1989_v41 = vperm.slane %v1936_v37, 0  ;;  %v8343_v24 = vld [vmem:[#allocation7 + $0xd4] sm:$0xf0] }
 0x52f   : > { %2490 = vmatpush.bf16.msra.mxu2 %v6478_v42  ;;  %v1990_v42 = vperm.slane %v1936_v37, 1  ;;  %v8379_v37 = vld [vmem:[#allocation7 + $0x1f4] sm:$0xf0] }
 0x530   : > { %2502 = vmatpush.bf16.msra.mxu3 %v6638_v18  ;;  %2462 = vmatpush.bf16.msra.mxu0 %v6474_v36  ;;  %v6574_v18 = vor.u32 %v8289_v6, %v6571_v7  ;;  %v6705_v7 = vld [vmem:[#allocation7 + $0x40] sm:$0xf] }
 0x531   : > { %2477 = vmatpush.bf16.msra.mxu1 %v6586_v55 }
 0x533   : > { %2491 = vmatpush.bf16.msra.mxu2 %v6462_v59  ;;  %v6793_v59 = vld [vmem:[#allocation7 + $0xf0] sm:$0xf] }
 0x534   : > { %2503 = vmatpush.bf16.msra.mxu3 %v6622_v33  ;;  %2463 = vmatpush.bf16.msra.mxu0 %v6458_v54  ;;  %v6430_v33 = vor.u32 %v8253_v14, %v6427_v22  ;;  %v8363_v14 = vld [vmem:[#allocation7 + $0x174] sm:$0xf0] }
 0x537   : > { %2492 = vmatpush.bf16.msra.mxu2 %v6446_v12  ;;  %v6697_v12 = vld [vmem:[#allocation7 + $0x30] sm:$0xf] }
 0x538   : > { %2504 = vmatpush.bf16.msra.mxu3 %v6606_v47  ;;  %2464 = vmatpush.bf16.msra.mxu0 %v6442_v9  ;;  %v8325_v9 = vld [vmem:[#allocation7 + $0x44] sm:$0xf0] }
 0x53b   : > { %2493 = vmatpush.bf16.msra.mxu2 %v6430_v33 }
 0x53c   : > { %2505 = vmatpush.bf16.msra.mxu3 %v6590_v20  ;;  %2465 = vmatpush.bf16.msra.mxu0 %v6426_v30  ;;  %v8327_v20 = vld [vmem:[#allocation7 + $0x54] sm:$0xf0]  ;;  %v8321_v30 = vld [vmem:[#allocation7 + $0x24] sm:$0xf0] }
 0x540   : > { %2506 = vmatpush.bf16.msra.mxu3 %v6574_v18 }
 0x544   : > { %2507 = vmatpush.bf16.msra.mxu3 %v6558_v34  ;;  %v6761_v34 = vld [vmem:[#allocation7 + $0xb0] sm:$0xf] }
 0x582   : > { %v1956_v2 = vpop.xlane.xlu2 %1955 }
 0x583   : > { %v1960_v15 = vmul.f32 %v1956_v2, %v9165_v63  ;;  %v6570_v2 = vor.u32 %v8291_v62, %v6569_v61  ;;  %v6794_v61 = vor.u32 %v8347_v60, %v6793_v59  ;;  %v6713_v62 = vld [vmem:[#allocation7 + $0x50] sm:$0xf] }
 0x584   : > { %v6714_v0 = vor.u32 %v8327_v20, %v6713_v62  ;;  %v6905_v60 = vld [vmem:[#allocation7 + $0x1d0] sm:$0xf] }
 0x585   : > { %v9473_v29 = vadd.f32 1e-12, %v1960_v15  ;;  %v8287_v15 = vld [vmem:[#allocation5 + $0x114] sm:$0xf0]  ;;  %2478 = vmatpush.bf16.msra.mxu1 %v6570_v2  ;;  %v6706_v2 = vor.u32 %v8325_v9, %v6705_v7  ;;  %v6825_v20 = vld [vmem:[#allocation7 + $0x130] sm:$0xf] }
 0x586   : > { %v6554_v31 = vor.u32 %v8287_v15, %v6553_v13  ;;  %v8323_v13 = vld [vmem:[#allocation7 + $0x34] sm:$0xf0]  ;;  %v6857_v15 = vld [vmem:[#allocation7 + $0x170] sm:$0xf]  ;;  %v6723_v7 = vld [vmem:[#allocation7 + $0x68] sm:$0xf0] }
 0x587   : > { %8749 = vrsqrt.f32 %v9473_v29  ;;  %vm1970_vm9 = vweird.f32 %v9473_v29  ;;  %v6698_v18 = vor.u32 %v8323_v13, %v6697_v12  ;;  %v6858_v22 = vor.u32 %v8363_v14, %v6857_v15  ;;  %v8373_v12 = vld [vmem:[#allocation7 + $0x1c4] sm:$0xf0]  ;;  %v8346_v13 = vld [vmem:[#allocation7 + $0xf4] sm:$0xf]  ;;  %v6795_v15 = vld [vmem:[#allocation7 + $0xf8] sm:$0xf0] }
 0x588   : > { %v6798_v14 = vor.u32 %v8346_v13, %v6795_v15  ;;  %v8320_v13 = vld [vmem:[#allocation7 + $0x24] sm:$0xf]  ;;  %v6691_v15 = vld [vmem:[#allocation7 + $0x28] sm:$0xf0] }
 0x589   : > { %2479 = vmatpush.bf16.msra.mxu1 %v6554_v31  ;;  %v6849_v31 = vld [vmem:[#allocation7 + $0x160] sm:$0xf] }
 0x58a   : > { %v1959_v40 = vpop.xlane.xlu0 %1958 }
 0x58b   : > { %v1961_v46 = vmul.f32 %v1959_v40, %v9165_v63 }
 0x58d   : > { %v8750_v19 = vpop.eup %8749  ;;  %v9477_v53 = vadd.f32 1e-12, %v1961_v46 }
 0x58e   : > { %v1965_v58 = vmul.f32 %v8750_v19, %v9473_v29  ;;  %vm1971_vm8 = vweird.f32 %v8750_v19  ;;  %v1937_v29 = vld [vmem:[%s10051_s9] sm:$0x3] }
 0x58f   : > { %8751 = vrsqrt.f32 %v9477_v53  ;;  %vm1972_vm10 = vmor %vm1970_vm9, %vm1971_vm8  ;;  %vm1980_vm12 = vweird.f32 %v9477_v53  ;;  %v1998_v45 = vperm.slane %v1937_v29, 0  ;;  %v1999_v46 = vperm.slane %v1937_v29, 1 }
 0x590   : > { %v1966_v3 = vmul.f32 %v8750_v19, %v1965_v58  ;;  %v6722_v58 = vor.u32 %v8329_v57, %v6721_v56  ;;  %v6745_v57 = vld [vmem:[#allocation7 + $0x90] sm:$0xf] }
 0x592   : > { %v1967_v11 = vmul.f32 0.5, %v1966_v3  ;;  %v8345_v3 = vld [vmem:[#allocation7 + $0xe4] sm:$0xf0] }
 0x593   : > { %v6786_v6 = vor.u32 %v8345_v3, %v6785_v21  ;;  %v9509_v21 = vld [vmem:[%s10053_s11] sm:$0xf] }
 0x594   : > { %v1968_v23 = vsub.f32 1.5, %v1967_v11  ;;  %v6778_v11 = vor.u32 %v8343_v24, %v6777_v10  ;;  %v8333_v10 = vld [vmem:[#allocation7 + $0x84] sm:$0xf0]  ;;  %v6897_v24 = vld [vmem:[#allocation7 + $0x1c0] sm:$0xf] }
 0x595   : > { %v8752_v28 = vpop.eup %8751 }
 0x596   : > { %v1969_v32 = vmul.f32 %v8750_v19, %v1968_v23  ;;  %v1975_v4 = vmul.f32 %v8752_v28, %v9477_v53  ;;  %vm1981_vm11 = vweird.f32 %v8752_v28  ;;  %v6769_v23 = vld [vmem:[#allocation7 + $0xc0] sm:$0xf] }
 0x597   : > { %vm1982_vm13 = vmor %vm1980_vm12, %vm1981_vm11  ;;  %v6770_v27 = vor.u32 %v8341_v1, %v6769_v23  ;;  %v8353_v23 = vld [vmem:[#allocation7 + $0x124] sm:$0xf0]  ;;  %v2074_v1 = vperm.slane %v9509_v21, 0 }
 0x598   : > { %v1976_v5 = vmul.f32 %v8752_v28, %v1975_v4  ;;  %v1973_v35 = vsel %vm1972_vm10, %v8750_v19, %v1969_v32  ;;  %v8361_v4 = vld [vmem:[#allocation7 + $0x164] sm:$0xf0] }
 0x599   : > { %v1984_v39 = vmul.f32 %v1973_v35, %v9455_v16  ;;  %v1985_v40 = vmul.f32 %v1973_v35, %v9457_v8  ;;  %v6850_v33 = vor.u32 %v8361_v4, %v6849_v31  ;;  %v6921_v35 = vld [vmem:[#allocation7 + $0x1f0] sm:$0xf]  ;;  %v8371_v4 = vld [vmem:[#allocation7 + $0x1b4] sm:$0xf0] }
 0x59a   : > { %v1977_v36 = vmul.f32 0.5, %v1976_v5  ;;  %v8339_v5 = vld [vmem:[#allocation7 + $0xb4] sm:$0xf0] }
 0x59b   : > { %v1993_v16 = vmul.f32 %v1989_v41, %v1984_v39  ;;  %v1994_v49 = vmul.f32 %v1990_v42, %v1985_v40  ;;  %v6681_v39 = vld [vmem:[#allocation7 + $0x10] sm:$0xf]  ;;  %v8319_v40 = vld [vmem:[#allocation7 + $0x14] sm:$0xf0] }
 0x59c   : > { %v1978_v38 = vsub.f32 1.5, %v1977_v36  ;;  %v6762_v36 = vor.u32 %v8339_v5, %v6761_v34  ;;  %v6682_v29 = vor.u32 %v8319_v40, %v6681_v39  ;;  %v8344_v34 = vld [vmem:[#allocation7 + $0xe4] sm:$0xf]  ;;  %v6787_v5 = vld [vmem:[#allocation7 + $0xe8] sm:$0xf0] }
 0x59d   : > { %v9494_v17 = vadd.f32 %v1998_v45, %v1993_v16  ;;  %v9498_v54 = vadd.f32 %v1999_v46, %v1994_v49  ;;  %v6673_v49 = vld [vmem:[#allocation7] sm:$0xf]  ;;  %v8351_v39 = vld [vmem:[#allocation7 + $0x114] sm:$0xf0] }
 0x59e   : > { %v1979_v43 = vmul.f32 %v8752_v28, %v1978_v38  ;;  %v6922_v38 = vor.u32 %v8379_v37, %v6921_v35  ;;  %v6790_v37 = vor.u32 %v8344_v34, %v6787_v5  ;;  %v2076_v34 = vperm.slane %v9509_v21, 2 }
 0x5a0   : > { %v1983_v44 = vsel %vm1982_vm13, %v8752_v28, %v1979_v43  ;;  %v6689_v28 = vld [vmem:[#allocation7 + $0x20] sm:$0xf]  ;;  %vm5769_vm13 = vcmask 1040384  }
 0x5a1   : > { %v1986_v47 = vmul.f32 %v1983_v44, %v9464_v25  ;;  %v1987_v48 = vmul.f32 %v1983_v44, %v9466_v26  ;;  %v6730_v26 = vor.u32 %v8331_v52, %v6729_v51  ;;  %v6690_v32 = vor.u32 %v8321_v30, %v6689_v28  ;;  %v6753_v44 = vld [vmem:[#allocation7 + $0xa0] sm:$0xf]  ;;  %v8357_v52 = vld [vmem:[#allocation7 + $0x144] sm:$0xf0]  ;;  %v8326_v28 = vld [vmem:[#allocation7 + $0x54] sm:$0xf] }
 0x5a2   : > { %v6715_v30 = vld [vmem:[#allocation7 + $0x58] sm:$0xf0] }
 0x5a3   : > { %v1995_v8 = vmul.f32 %v1989_v41, %v1986_v47  ;;  %v1996_v50 = vmul.f32 %v1990_v42, %v1987_v48  ;;  %v6841_v41 = vld [vmem:[#allocation7 + $0x150] sm:$0xf]  ;;  %v8359_v42 = vld [vmem:[#allocation7 + $0x154] sm:$0xf0]  ;;  %v8377_v48 = vld [vmem:[#allocation7 + $0x1e4] sm:$0xf0]  ;;  %v6718_v31 = vor.u32 %v8326_v28, %v6715_v30 }
 0x5a4   : > { %v6842_v43 = vor.u32 %v8359_v42, %v6841_v41  ;;  %v8324_v41 = vld [vmem:[#allocation7 + $0x44] sm:$0xf]  ;;  %v6707_v42 = vld [vmem:[#allocation7 + $0x48] sm:$0xf0] }
 0x5a5   : > { %v9496_v19 = vadd.f32 %v1998_v45, %v1995_v8  ;;  %v9500_v53 = vadd.f32 %v1999_v46, %v1996_v50  ;;  %v8337_v45 = vld [vmem:[#allocation7 + $0xa4] sm:$0xf0]  ;;  %v6913_v46 = vld [vmem:[#allocation7 + $0x1e0] sm:$0xf] }
 0x5a6   : > { %v6754_v47 = vor.u32 %v8337_v45, %v6753_v44  ;;  %v6914_v16 = vor.u32 %v8377_v48, %v6913_v46  ;;  %v8317_v8 = vld [vmem:[#allocation7 + $0x4] sm:$0xf0]  ;;  %v6833_v50 = vld [vmem:[#allocation7 + $0x140] sm:$0xf]  ;;  %v8342_v48 = vld [vmem:[#allocation7 + $0xd4] sm:$0xf] }
 0x5a7   : > { %v2006_v55 = vpack.c.bf16 %v9496_v19, %v9494_v17  ;;  %v2007_v25 = vpack.c.bf16 %v9500_v53, %v9498_v54  ;;  %v6674_v51 = vor.u32 %v8317_v8, %v6673_v49  ;;  %v6881_v44 = vld [vmem:[#allocation7 + $0x1a0] sm:$0xf]  ;;  %v8369_v45 = vld [vmem:[#allocation7 + $0x1a4] sm:$0xf0]  ;;  %v2075_v49 = vperm.slane %v9509_v21, 1 }
 0x5a9   : > { %2410 = vmatmul.bf16.vlgmr.msrb.gmra.mxu0 %v2006_v55  ;;  %2424 = vmatmul.bf16.vlgmr.msrb.gmra.mxu1 %v2007_v25 }
 0x5aa   : > { %2438 = vmatmul.bf16.vlgmr.msrb.gmra.mxu2 %v2006_v55  ;;  %2452 = vmatmul.bf16.vlgmr.msrb.gmra.mxu3 %v2007_v25 }
 0x5ab   : > { %2980 = vmatpush.bf16.msrb.mxu0 %v6730_v26  ;;  %2994 = vmatpush.bf16.msrb.mxu1 %v6794_v61  ;;  %v6834_v26 = vor.u32 %v8357_v52, %v6833_v50  ;;  %v8375_v61 = vld [vmem:[#allocation7 + $0x1d4] sm:$0xf0]  ;;  %v6801_v50 = vld [vmem:[#allocation7 + $0x100] sm:$0xf] }
 0x5ac   : > { %3008 = vmatpush.bf16.msrb.mxu2 %v6858_v22  ;;  %3022 = vmatpush.bf16.msrb.mxu3 %v6922_v38  ;;  %v6906_v62 = vor.u32 %v8375_v61, %v6905_v60  ;;  %v6817_v22 = vld [vmem:[#allocation7 + $0x120] sm:$0xf]  ;;  %v6809_v38 = vld [vmem:[#allocation7 + $0x110] sm:$0xf]  ;;  %v8367_v60 = vld [vmem:[#allocation7 + $0x194] sm:$0xf0] }
 0x5af   : > { %2981 = vmatpush.bf16.msrb.mxu0 %v6722_v58  ;;  %2995 = vmatpush.bf16.msrb.mxu1 %v6786_v6  ;;  %v8335_v58 = vld [vmem:[#allocation7 + $0x94] sm:$0xf0]  ;;  %v8328_v6 = vld [vmem:[#allocation7 + $0x64] sm:$0xf] }
 0x5b0   : > { %3009 = vmatpush.bf16.msrb.mxu2 %v6850_v33  ;;  %3023 = vmatpush.bf16.msrb.mxu3 %v6914_v16  ;;  %v6746_v59 = vor.u32 %v8335_v58, %v6745_v57  ;;  %v6726_v9 = vor.u32 %v8328_v6, %v6723_v7  ;;  %v6779_v16 = vld [vmem:[#allocation7 + $0xd8] sm:$0xf0]  ;;  %v8340_v6 = vld [vmem:[#allocation7 + $0xc4] sm:$0xf]  ;;  %v6771_v7 = vld [vmem:[#allocation7 + $0xc8] sm:$0xf0] }
 0x5b1   : > { %v6782_v8 = vor.u32 %v8342_v48, %v6779_v16  ;;  %v6859_v58 = vld [vmem:[#allocation7 + $0x178] sm:$0xf0] }
 0x5b3   : > { %2982 = vmatpush.bf16.msrb.mxu0 %v6714_v0  ;;  %2996 = vmatpush.bf16.msrb.mxu1 %v6778_v11  ;;  %v8355_v0 = vld [vmem:[#allocation7 + $0x134] sm:$0xf0] }
 0x5b4   : > { %3010 = vmatpush.bf16.msrb.mxu2 %v6842_v43  ;;  %v6826_v3 = vor.u32 %v8355_v0, %v6825_v20  ;;  %3024 = vmatpush.bf16.msrb.mxu3 %v6906_v62  ;;  %v6710_v43 = vor.u32 %v8324_v41, %v6707_v42  ;;  %v6683_v41 = vld [vmem:[#allocation7 + $0x18] sm:$0xf0] }
 0x5b7   : > { %2983 = vmatpush.bf16.msrb.mxu0 %v6706_v2  ;;  %2997 = vmatpush.bf16.msrb.mxu1 %v6770_v27  ;;  %v6737_v2 = vld [vmem:[#allocation7 + $0x80] sm:$0xf]  ;;  %v6818_v27 = vor.u32 %v8353_v23, %v6817_v22  ;;  %v8360_v22 = vld [vmem:[#allocation7 + $0x164] sm:$0xf]  ;;  %v6851_v23 = vld [vmem:[#allocation7 + $0x168] sm:$0xf0] }
 0x5b8   : > { %3011 = vmatpush.bf16.msrb.mxu2 %v6834_v26  ;;  %v6738_v11 = vor.u32 %v8333_v10, %v6737_v2  ;;  %v6699_v26 = vld [vmem:[#allocation7 + $0x38] sm:$0xf0] }
 0x5b9   : > { %2466 = vmatmul.bf16.vlgmr.msra.gmra.mxu0 %v2006_v55  ;;  %2480 = vmatmul.bf16.vlgmr.msra.gmra.mxu1 %v2007_v25 }
 0x5ba   : > { %2494 = vmatmul.bf16.vlgmr.msra.gmra.mxu2 %v2006_v55  ;;  %2508 = vmatmul.bf16.vlgmr.msra.gmra.mxu3 %v2007_v25  ;;  %v8330_v55 = vld [vmem:[#allocation7 + $0x74] sm:$0xf]  ;;  %v6731_v25 = vld [vmem:[#allocation7 + $0x78] sm:$0xf0] }
 0x5bb   : > { %2984 = vmatpush.bf16.msrb.mxu0 %v6698_v18  ;;  %2998 = vmatpush.bf16.msrb.mxu1 %v6762_v36  ;;  %v6734_v56 = vor.u32 %v8330_v55, %v6731_v25  ;;  %v6898_v18 = vor.u32 %v8373_v12, %v6897_v24  ;;  %v8322_v25 = vld [vmem:[#allocation7 + $0x34] sm:$0xf]  ;;  %v6774_v24 = vor.u32 %v8340_v6, %v6771_v7  ;;  %v8356_v7 = vld [vmem:[#allocation7 + $0x144] sm:$0xf] }
 0x5bc   : > { %3012 = vmatpush.bf16.msrb.mxu2 %v6826_v3  ;;  %v6702_v57 = vor.u32 %v8322_v25, %v6699_v26 }
 0x5bd   : > { %3025 = vmatpush.bf16.msrb.mxu3 %v6898_v18 }
 0x5bf   : > { %2985 = vmatpush.bf16.msrb.mxu0 %v6690_v32  ;;  %2999 = vmatpush.bf16.msrb.mxu1 %v6754_v47  ;;  %v6889_v32 = vld [vmem:[#allocation7 + $0x1b0] sm:$0xf]  ;;  %v6882_v47 = vor.u32 %v8369_v45, %v6881_v44  ;;  %v8358_v44 = vld [vmem:[#allocation7 + $0x154] sm:$0xf]  ;;  %v6843_v45 = vld [vmem:[#allocation7 + $0x158] sm:$0xf0] }
 0x5c0   : > { %v6890_v33 = vor.u32 %v8371_v4, %v6889_v32  ;;  %3013 = vmatpush.bf16.msrb.mxu2 %v6818_v27  ;;  %v6865_v27 = vld [vmem:[#allocation7 + $0x180] sm:$0xf]  ;;  %v8365_v32 = vld [vmem:[#allocation7 + $0x184] sm:$0xf0]  ;;  %v8338_v4 = vld [vmem:[#allocation7 + $0xb4] sm:$0xf] }
 0x5c1   : > { %v6866_v5 = vor.u32 %v8365_v32, %v6865_v27  ;;  %v8354_v32 = vld [vmem:[#allocation7 + $0x134] sm:$0xf] }
 0x5c2   : > { %3026 = vmatpush.bf16.msrb.mxu3 %v6890_v33  ;;  %v6763_v33 = vld [vmem:[#allocation7 + $0xb8] sm:$0xf0] }
 0x5c3   : > { %2986 = vmatpush.bf16.msrb.mxu0 %v6682_v29  ;;  %3000 = vmatpush.bf16.msrb.mxu1 %v6746_v59  ;;  %v6810_v29 = vor.u32 %v8351_v39, %v6809_v38  ;;  %v6873_v59 = vld [vmem:[#allocation7 + $0x190] sm:$0xf] }
 0x5c4   : > { %v6874_v3 = vor.u32 %v8367_v60, %v6873_v59  ;;  %v6915_v59 = vld [vmem:[#allocation7 + $0x1e8] sm:$0xf0] }
 0x5c5   : > { %3014 = vmatpush.bf16.msrb.mxu2 %v6810_v29  ;;  %v8318_v29 = vld [vmem:[#allocation7 + $0x14] sm:$0xf] }
 0x5c6   : > { %3027 = vmatpush.bf16.msrb.mxu3 %v6882_v47 }
 0x5c7   : > { %2987 = vmatpush.bf16.msrb.mxu0 %v6674_v51  ;;  %3001 = vmatpush.bf16.msrb.mxu1 %v6738_v11  ;;  %v8349_v51 = vld [vmem:[#allocation7 + $0x104] sm:$0xf0] }
 0x5c8   : > { %v6802_v55 = vor.u32 %v8349_v51, %v6801_v50  ;;  %v8336_v50 = vld [vmem:[#allocation7 + $0xa4] sm:$0xf]  ;;  %v6755_v51 = vld [vmem:[#allocation7 + $0xa8] sm:$0xf0] }
 0x5ca   : > { %3015 = vmatpush.bf16.msrb.mxu2 %v6802_v55  ;;  %3028 = vmatpush.bf16.msrb.mxu3 %v6874_v3 }
 0x5cb   : > { %3036 = vmatpush.bf16.msra.mxu0 %v6734_v56  ;;  %3050 = vmatpush.bf16.msra.mxu1 %v6798_v14  ;;  %v8362_v56 = vld [vmem:[#allocation7 + $0x174] sm:$0xf]  ;;  %v6694_v14 = vor.u32 %v8320_v13, %v6691_v15  ;;  %v6907_v15 = vld [vmem:[#allocation7 + $0x1d8] sm:$0xf0] }
 0x5cc   : > { %v6862_v0 = vor.u32 %v8362_v56, %v6859_v58  ;;  %v6758_v58 = vor.u32 %v8336_v50, %v6755_v51  ;;  %v8374_v13 = vld [vmem:[#allocation7 + $0x1d4] sm:$0xf] }
 0x5cd   : > { %v6910_v27 = vor.u32 %v8374_v13, %v6907_v15 }
 0x5ce   : > { %3064 = vmatpush.bf16.msra.mxu2 %v6862_v0  ;;  %3029 = vmatpush.bf16.msrb.mxu3 %v6866_v5  ;;  %v6675_v0 = vld [vmem:[#allocation7 + $0x8] sm:$0xf0]  ;;  %v8332_v5 = vld [vmem:[#allocation7 + $0x84] sm:$0xf] }
 0x5cf   : > { %3037 = vmatpush.bf16.msra.mxu0 %v6726_v9  ;;  %3051 = vmatpush.bf16.msra.mxu1 %v6790_v37  ;;  %v6923_v37 = vld [vmem:[#allocation7 + $0x1f8] sm:$0xf0] }
 0x5d3   : > { %3038 = vmatpush.bf16.msra.mxu0 %v6718_v31  ;;  %3052 = vmatpush.bf16.msra.mxu1 %v6782_v8  ;;  %v6854_v31 = vor.u32 %v8360_v22, %v6851_v23  ;;  %v6846_v8 = vor.u32 %v8358_v44, %v6843_v45 }
 0x5d5   : > { %3065 = vmatpush.bf16.msra.mxu2 %v6854_v31 }
 0x5d7   : > { %3039 = vmatpush.bf16.msra.mxu0 %v6710_v43  ;;  %3053 = vmatpush.bf16.msra.mxu1 %v6774_v24  ;;  %v6686_v43 = vor.u32 %v8318_v29, %v6683_v41  ;;  %v8372_v29 = vld [vmem:[#allocation7 + $0x1c4] sm:$0xf]  ;;  %v6899_v41 = vld [vmem:[#allocation7 + $0x1c8] sm:$0xf0] }
 0x5d9   : > { %3066 = vmatpush.bf16.msra.mxu2 %v6846_v8 }
 0x5db   : > { %3040 = vmatpush.bf16.msra.mxu0 %v6702_v57  ;;  %v2077_v57 = vperm.slane %v9509_v21, 3 }
 0x5df   : > { %3041 = vmatpush.bf16.msra.mxu0 %v6694_v14 }
 0x5e3   : > { %3042 = vmatpush.bf16.msra.mxu0 %v6686_v43 }
 0x626   : > { %v2411_v35 = vpop.f32.mrf.mxu0  ;;  %v2425_v36 = vpop.f32.mrf.mxu1 }
 0x627   : > { %v2412_v40 = vadd.f32 %v2411_v35, %v2074_v1  ;;  %v6766_v35 = vor.u32 %v8338_v4, %v6763_v33  ;;  %v6827_v4 = vld [vmem:[#allocation7 + $0x138] sm:$0xf0] }
 0x629   : > { %v9514_v46 = vadd.f32 %v2425_v36, %v2412_v40  ;;  %v8378_v36 = vld [vmem:[#allocation7 + $0x1f4] sm:$0xf]  ;;  %3054 = vmatpush.bf16.msra.mxu1 %v6766_v35  ;;  %v6739_v35 = vld [vmem:[#allocation7 + $0x88] sm:$0xf0] }
 0x62a   : > { %v6926_v40 = vor.u32 %v8378_v36, %v6923_v37 }
 0x62b   : > { %v2514_v52 = vmul.f32 %v9514_v46, %v9514_v46 }
 0x62c   : > { %3078 = vmatpush.bf16.msra.mxu3 %v6926_v40  ;;  %v6742_v40 = vor.u32 %v8332_v5, %v6739_v35  ;;  %v8366_v35 = vld [vmem:[#allocation7 + $0x194] sm:$0xf] }
 0x62d   : > { %v2522_v61 = vmul.f32 %v2514_v52, %v9514_v46  ;;  %v2439_v62 = vpop.f32.mrf.mxu2  ;;  %v2453_v20 = vpop.f32.mrf.mxu3  ;;  %v8376_v52 = vld [vmem:[#allocation7 + $0x1e4] sm:$0xf]  ;;  %3055 = vmatpush.bf16.msra.mxu1 %v6758_v58  ;;  %v8370_v58 = vld [vmem:[#allocation7 + $0x1b4] sm:$0xf] }
 0x62e   : > { %v2440_v9 = vadd.f32 %v2439_v62, %v2075_v49  ;;  %v2413_v2 = vpop.f32.mrf.mxu0  ;;  %v2427_v10 = vpop.f32.mrf.mxu1  ;;  %v6918_v62 = vor.u32 %v8376_v52, %v6915_v59  ;;  %v6891_v59 = vld [vmem:[#allocation7 + $0x1b8] sm:$0xf0] }
 0x62f   : > { %v2530_v11 = vmul.f32 0.044715, %v2522_v61  ;;  %v2414_v12 = vadd.f32 %v2413_v2, %v2074_v1  ;;  %v8334_v2 = vld [vmem:[#allocation7 + $0x94] sm:$0xf] }
 0x630   : > { %v9524_v18 = vadd.f32 %v2453_v20, %v2440_v9  ;;  %v8316_v20 = vld [vmem:[#allocation7 + $0x4] sm:$0xf]  ;;  %v6835_v9 = vld [vmem:[#allocation7 + $0x148] sm:$0xf0]  ;;  %3079 = vmatpush.bf16.msra.mxu3 %v6918_v62  ;;  %v6894_v62 = vor.u32 %v8370_v58, %v6891_v59 }
 0x631   : > { %v2538_v28 = vadd.f32 %v2530_v11, %v9514_v46  ;;  %v9527_v30 = vadd.f32 %v2427_v10, %v2414_v12  ;;  %v6838_v11 = vor.u32 %v8356_v7, %v6835_v9  ;;  %v6747_v12 = vld [vmem:[#allocation7 + $0x98] sm:$0xf0] }
 0x632   : > { %v2515_v1 = vmul.f32 %v9524_v18, %v9524_v18  ;;  %v6750_v23 = vor.u32 %v8334_v2, %v6747_v12 }
 0x633   : > { %v2546_v38 = vmul.f32 0.7978846, %v2538_v28  ;;  %v2518_v39 = vmul.f32 %v9527_v30, %v9527_v30  ;;  %3067 = vmatpush.bf16.msra.mxu2 %v6838_v11  ;;  %v8368_v11 = vld [vmem:[#allocation7 + $0x1a4] sm:$0xf] }
 0x634   : > { %v2523_v42 = vmul.f32 %v2515_v1, %v9524_v18  ;;  %3056 = vmatpush.bf16.msra.mxu1 %v6750_v23  ;;  %v6830_v1 = vor.u32 %v8354_v32, %v6827_v4  ;;  %3080 = vmatpush.bf16.msra.mxu3 %v6910_v27  ;;  %v8348_v23 = vld [vmem:[#allocation7 + $0x104] sm:$0xf]  ;;  %v6803_v4 = vld [vmem:[#allocation7 + $0x108] sm:$0xf0] }
 0x635   : > { %v2526_v47 = vmul.f32 %v2518_v39, %v9527_v30  ;;  %v2441_v48 = vpop.f32.mrf.mxu2  ;;  %v2455_v16 = vpop.f32.mrf.mxu3  ;;  %8753 = vtanh.f32 %v2546_v38  ;;  %v6806_v5 = vor.u32 %v8348_v23, %v6803_v4 }
 0x636   : > { %v2531_v55 = vmul.f32 0.044715, %v2523_v42  ;;  %v2442_v25 = vadd.f32 %v2441_v48, %v2075_v49  ;;  %v2467_v26 = vpop.f32.mrf.mxu0  ;;  %v2481_v56 = vpop.f32.mrf.mxu1  ;;  %v6678_v49 = vor.u32 %v8316_v20, %v6675_v0  ;;  %v8352_v42 = vld [vmem:[#allocation7 + $0x124] sm:$0xf]  ;;  %v6819_v48 = vld [vmem:[#allocation7 + $0x128] sm:$0xf0] }
 0x637   : > { %v2534_v60 = vmul.f32 0.044715, %v2526_v47  ;;  %v2468_v61 = vadd.f32 %v2467_v26, %v2076_v34  ;;  %v6902_v47 = vor.u32 %v8372_v29, %v6899_v41  ;;  %3068 = vmatpush.bf16.msra.mxu2 %v6830_v1  ;;  %v6822_v50 = vor.u32 %v8352_v42, %v6819_v48 }
 0x638   : > { %v2539_v3 = vadd.f32 %v2531_v55, %v9524_v18  ;;  %v9542_v6 = vadd.f32 %v2455_v16, %v2442_v25  ;;  %3043 = vmatpush.bf16.msra.mxu0 %v6678_v49  ;;  %3057 = vmatpush.bf16.msra.mxu1 %v6742_v40  ;;  %v8350_v49 = vld [vmem:[#allocation7 + $0x114] sm:$0xf] }
 0x639   : > { %v2542_v10 = vadd.f32 %v2534_v60, %v9527_v30  ;;  %v9545_v24 = vadd.f32 %v2481_v56, %v2468_v61  ;;  %3081 = vmatpush.bf16.msra.mxu3 %v6902_v47 }
 0x63a   : > { %v2547_v14 = vmul.f32 0.7978846, %v2539_v3  ;;  %v2519_v22 = vmul.f32 %v9542_v6, %v9542_v6 }
 0x63b   : > { %v2550_v28 = vmul.f32 0.7978846, %v2542_v10  ;;  %v2516_v31 = vmul.f32 %v9545_v24, %v9545_v24  ;;  %v8754_v36 = vpop.eup %8753  ;;  %3069 = vmatpush.bf16.msra.mxu2 %v6822_v50  ;;  %v6811_v10 = vld [vmem:[#allocation7 + $0x118] sm:$0xf0] }
 0x63c   : > { %8755 = vtanh.f32 %v2547_v14  ;;  %v2527_v33 = vmul.f32 %v2519_v22, %v9542_v6  ;;  %v2562_v51 = vadd.f32 1.0, %v8754_v36  ;;  %v6814_v14 = vor.u32 %v8350_v49, %v6811_v10  ;;  %v6883_v22 = vld [vmem:[#allocation7 + $0x1a8] sm:$0xf0]  ;;  %v6875_v36 = vld [vmem:[#allocation7 + $0x198] sm:$0xf0] }
 0x63d   : > { %8757 = vtanh.f32 %v2550_v28  ;;  %v2524_v37 = vmul.f32 %v2516_v31, %v9545_v24  ;;  %v2495_v38 = vpop.f32.mrf.mxu2  ;;  %v2509_v39 = vpop.f32.mrf.mxu3  ;;  %3082 = vmatpush.bf16.msra.mxu3 %v6894_v62  ;;  %v6886_v32 = vor.u32 %v8368_v11, %v6883_v22 }
 0x63e   : > { %v2535_v43 = vmul.f32 0.044715, %v2527_v33  ;;  %v2496_v44 = vadd.f32 %v2495_v38, %v2077_v57  ;;  %v2469_v45 = vpop.f32.mrf.mxu0  ;;  %v2483_v25 = vpop.f32.mrf.mxu1  ;;  %v2570_v7 = vmul.f32 0.5, %v2562_v51 }
 0x63f   : > { %v2532_v16 = vmul.f32 0.044715, %v2524_v37  ;;  %v2470_v8 = vadd.f32 %v2469_v45, %v2076_v34  ;;  %3070 = vmatpush.bf16.msra.mxu2 %v6814_v14 }
 0x640   : > { %v2543_v52 = vadd.f32 %v2535_v43, %v9542_v6  ;;  %v9558_v55 = vadd.f32 %v2509_v39, %v2496_v44  ;;  %v2578_v37 = vmul.f32 %v2570_v7, %v9514_v46  ;;  %v8364_v46 = vld [vmem:[#allocation7 + $0x184] sm:$0xf] }
 0x641   : > { %v2540_v26 = vadd.f32 %v2532_v16, %v9545_v24  ;;  %v9561_v56 = vadd.f32 %v2483_v25, %v2470_v8  ;;  %3083 = vmatpush.bf16.msra.mxu3 %v6886_v32  ;;  %v6867_v16 = vld [vmem:[#allocation7 + $0x188] sm:$0xf0] }
 0x642   : > { %v8756_v60 = vpop.eup %8755  ;;  %v2551_v61 = vmul.f32 0.7978846, %v2543_v52  ;;  %v2517_v34 = vmul.f32 %v9558_v55, %v9558_v55 }
 0x643   : > { %v8758_v20 = vpop.eup %8757  ;;  %v2548_v0 = vmul.f32 0.7978846, %v2540_v26  ;;  %v2520_v3 = vmul.f32 %v9561_v56, %v9561_v56  ;;  %v2563_v12 = vadd.f32 1.0, %v8756_v60  ;;  %3071 = vmatpush.bf16.msra.mxu2 %v6806_v5 }
 0x644   : > { %8759 = vtanh.f32 %v2551_v61  ;;  %v2525_v9 = vmul.f32 %v2517_v34, %v9558_v55  ;;  %v2566_v2 = vadd.f32 1.0, %v8758_v20 }
 0x645   : > { %v2528_v13 = vmul.f32 %v2520_v3, %v9561_v56  ;;  %v2497_v15 = vpop.f32.mrf.mxu2  ;;  %8761 = vtanh.f32 %v2548_v0  ;;  %v2511_v1 = vpop.f32.mrf.mxu3  ;;  %v2571_v44 = vmul.f32 0.5, %v2563_v12 }
 0x646   : > { %v2533_v27 = vmul.f32 0.044715, %v2525_v9  ;;  %v2498_v28 = vadd.f32 %v2497_v15, %v2077_v57  ;;  %v2574_v31 = vmul.f32 0.5, %v2566_v2  ;;  %v6878_v57 = vor.u32 %v8366_v35, %v6875_v36 }
 0x647   : > { %v2536_v33 = vmul.f32 0.044715, %v2528_v13  ;;  %v2579_v52 = vmul.f32 %v2571_v44, %v9524_v18 }
 0x648   : > { %v2541_v38 = vadd.f32 %v2533_v27, %v9558_v55  ;;  %v2512_v39 = vadd.f32 %v2511_v1, %v2498_v28  ;;  %v2582_v40 = vmul.f32 %v2574_v31, %v9527_v30  ;;  %3084 = vmatpush.bf16.msra.mxu3 %v6878_v57  ;;  %v6870_v30 = vor.u32 %v8364_v46, %v6867_v16  ;;  %v2654_v28 = vld [vmem:[%s10055_s13] sm:$0x3] }
 0x649   : > { %v2544_v21 = vadd.f32 %v2536_v33, %v9561_v56  ;;  %v2656_v31 = vperm.slane %v2654_v28, 0 }
 0x64a   : > { %v8760_v29 = vpop.eup %8759  ;;  %v2549_v41 = vmul.f32 0.7978846, %v2541_v38  ;;  %v2521_v42 = vmul.f32 %v2512_v39, %v2512_v39  ;;  %v2586_v43 = vpack.c.bf16 %v2582_v40, %v2578_v37 }
 0x64b   : > { %v2552_v45 = vmul.f32 0.7978846, %v2544_v21  ;;  %v2567_v47 = vadd.f32 1.0, %v8760_v29  ;;  %v8762_v8 = vpop.eup %8761 }
 0x64c   : > { %v2529_v48 = vmul.f32 %v2521_v42, %v2512_v39  ;;  %2988 = vmatmul.bf16.vlgmr.msrb.gmra.mxu0 %v2586_v43  ;;  %v2564_v26 = vadd.f32 1.0, %v8762_v8  ;;  %3085 = vmatpush.bf16.msra.mxu3 %v6870_v30 }
 0x64d   : > { %8763 = vtanh.f32 %v2552_v45  ;;  %v2575_v50 = vmul.f32 0.5, %v2567_v47 }
 0x64e   : > { %8765 = vtanh.f32 %v2549_v41  ;;  %v2537_v51 = vmul.f32 0.044715, %v2529_v48  ;;  %v2572_v62 = vmul.f32 0.5, %v2564_v26  ;;  %v7098_v26 = vld [vmem:[#allocation3 + $0x450] sm:$0xf] }
 0x64f   : > { %v2583_v25 = vmul.f32 %v2575_v50, %v9542_v6 }
 0x650   : > { %v2545_v58 = vadd.f32 %v2537_v51, %v2512_v39  ;;  %v2580_v49 = vmul.f32 %v2572_v62, %v9545_v24  ;;  %v7100_v62 = vld [vmem:[#allocation3 + $0x468] sm:$0xf0] }
 0x651   : > { %v2587_v59 = vpack.c.bf16 %v2583_v25, %v2579_v52 }
 0x652   : > { %v2553_v60 = vmul.f32 0.7978846, %v2545_v58  ;;  %v8425_v58 = vld [vmem:[#allocation3 + $0x464] sm:$0xf0] }
 0x653   : > { %v8764_v61 = vpop.eup %8763  ;;  %3002 = vmatmul.bf16.vlgmr.msrb.gmra.mxu1 %v2587_v59 }
 0x654   : > { %v8766_v34 = vpop.eup %8765  ;;  %8767 = vtanh.f32 %v2553_v60  ;;  %v2568_v20 = vadd.f32 1.0, %v8764_v61  ;;  %v7099_v60 = vor.u32 %v8425_v58, %v7098_v26  ;;  %v8473_v61 = vld [vmem:[#allocation3 + $0x5e4] sm:$0xf0] }
 0x655   : > { %v2565_v3 = vadd.f32 1.0, %v8766_v34  ;;  %v8422_v34 = vld [vmem:[#allocation3 + $0x454] sm:$0xf] }
 0x656   : > { %v2576_v0 = vmul.f32 0.5, %v2568_v20  ;;  %3760 = vmatpush.bf16.msrb.mxu0 %v7099_v60 }
 0x657   : > { %v2573_v6 = vmul.f32 0.5, %v2565_v3  ;;  %v8470_v3 = vld [vmem:[#allocation3 + $0x5d4] sm:$0xf] }
 0x658   : > { %v2584_v7 = vmul.f32 %v2576_v0, %v9561_v56  ;;  %v7103_v0 = vor.u32 %v8422_v34, %v7100_v62 }
 0x659   : > { %v2581_v11 = vmul.f32 %v2573_v6, %v9558_v55  ;;  %v2657_v55 = vperm.slane %v2654_v28, 1 }
 0x65a   : > { %v8768_v18 = vpop.eup %8767  ;;  %v2588_v9 = vpack.c.bf16 %v2584_v7, %v2580_v49  ;;  %v7292_v49 = vld [vmem:[#allocation3 + $0x5e8] sm:$0xf0] }
 0x65b   : > { %v2569_v2 = vadd.f32 1.0, %v8768_v18  ;;  %v7295_v7 = vor.u32 %v8470_v3, %v7292_v49  ;;  %v7266_v18 = vld [vmem:[#allocation3 + $0x5a0] sm:$0xf] }
 0x65c   : > { %3016 = vmatmul.bf16.vlgmr.msrb.gmra.mxu2 %v2588_v9  ;;  %3044 = vmatmul.bf16.vlgmr.msra.gmra.mxu0 %v2586_v43 }
 0x65d   : > { %v2577_v10 = vmul.f32 0.5, %v2569_v2  ;;  %3788 = vmatpush.bf16.msrb.mxu2 %v7103_v0 }
 0x65f   : > { %v2585_v12 = vmul.f32 %v2577_v10, %v2512_v39  ;;  %v8416_v10 = vld [vmem:[#allocation3 + $0x424] sm:$0xf] }
 0x661   : > { %v2589_v13 = vpack.c.bf16 %v2585_v12, %v2581_v11  ;;  %v7076_v11 = vld [vmem:[#allocation3 + $0x438] sm:$0xf0]  ;;  %v8464_v12 = vld [vmem:[#allocation3 + $0x5a4] sm:$0xf] }
 0x663   : > { %3030 = vmatmul.bf16.vlgmr.msrb.gmra.mxu3 %v2589_v13  ;;  %3058 = vmatmul.bf16.vlgmr.msra.gmra.mxu1 %v2587_v59  ;;  %v7290_v59 = vld [vmem:[#allocation3 + $0x5d0] sm:$0xf] }
 0x664   : > { %v7291_v20 = vor.u32 %v8473_v61, %v7290_v59  ;;  %3802 = vmatpush.bf16.msrb.mxu3 %v7295_v7 }
 0x666   : > { %3774 = vmatpush.bf16.msrb.mxu1 %v7291_v20 }
 0x66c   : > { %3072 = vmatmul.bf16.vlgmr.msra.gmra.mxu2 %v2588_v9  ;;  %v8467_v9 = vld [vmem:[#allocation3 + $0x5b4] sm:$0xf0] }
 0x66d   : > { %v7267_v2 = vor.u32 %v8467_v9, %v7266_v18  ;;  %v8395_v18 = vld [vmem:[#allocation3 + $0x374] sm:$0xf0]  ;;  %v7170_v9 = vld [vmem:[#allocation3 + $0x4e0] sm:$0xf] }
 0x66f   : > { %3775 = vmatpush.bf16.msrb.mxu1 %v7267_v2  ;;  %v8443_v2 = vld [vmem:[#allocation3 + $0x4f4] sm:$0xf0] }
 0x673   : > { %3086 = vmatmul.bf16.vlgmr.msra.gmra.mxu3 %v2589_v13  ;;  %v7079_v13 = vor.u32 %v8416_v10, %v7076_v11  ;;  %v8392_v10 = vld [vmem:[#allocation3 + $0x364] sm:$0xf]  ;;  %v6980_v11 = vld [vmem:[#allocation3 + $0x378] sm:$0xf0] }
 0x675   : > { %3789 = vmatpush.bf16.msrb.mxu2 %v7079_v13  ;;  %v8440_v13 = vld [vmem:[#allocation3 + $0x4e4] sm:$0xf] }
 0x6c9   : > { %v2989_v15 = vpop.f32.mrf.mxu0 }
 0x6ca   : > { %v2990_v1 = vadd.f32 %v2989_v15, %v2656_v31  ;;  %v7268_v15 = vld [vmem:[#allocation3 + $0x5b8] sm:$0xf0] }
 0x6d0   : > { %v3003_v14 = vpop.f32.mrf.mxu1 }
 0x6d1   : > { %v2991_v22 = vpop.f32.mrf.mxu0  ;;  %v3004_v35 = vadd.f32 %v3003_v14, %v2990_v1  ;;  %v7050_v14 = vld [vmem:[#allocation3 + $0x3f0] sm:$0xf]  ;;  %v7026_v1 = vld [vmem:[#allocation3 + $0x3c0] sm:$0xf] }
 0x6d2   : > { %v2992_v29 = vadd.f32 %v2991_v22, %v2656_v31  ;;  %v7271_v22 = vor.u32 %v8464_v12, %v7268_v15  ;;  %v7052_v31 = vld [vmem:[#allocation3 + $0x408] sm:$0xf0]  ;;  %v6983_v12 = vor.u32 %v8392_v10, %v6980_v11  ;;  %v8462_v10 = vld [vmem:[#allocation3 + $0x58c] sm:$0xf0]  ;;  %v8411_v11 = vld [vmem:[#allocation3 + $0x3fc] sm:$0xf] }
 0x6d4   : > { %3803 = vmatpush.bf16.msrb.mxu3 %v7271_v22  ;;  %v7146_v22 = vld [vmem:[#allocation3 + $0x4b0] sm:$0xf] }
 0x6d8   : > { %v3005_v56 = vpop.f32.mrf.mxu1 }
 0x6d9   : > { %v3045_v32 = vpop.f32.mrf.mxu0  ;;  %v3006_v43 = vadd.f32 %v3005_v56, %v2992_v29  ;;  %v7242_v56 = vld [vmem:[#allocation3 + $0x570] sm:$0xf] }
 0x6da   : > { %v3046_v36 = vadd.f32 %v3045_v32, %v2657_v55  ;;  %v8458_v32 = vld [vmem:[#allocation3 + $0x574] sm:$0xf] }
 0x6df   : > { %v3017_v24 = vpop.f32.mrf.mxu2 }
 0x6e0   : > { %v3059_v4 = vpop.f32.mrf.mxu1  ;;  %v3018_v37 = vadd.f32 %v3017_v24, %v3004_v35  ;;  %v8413_v24 = vld [vmem:[#allocation3 + $0x404] sm:$0xf0]  ;;  %v7218_v35 = vld [vmem:[#allocation3 + $0x540] sm:$0xf] }
 0x6e1   : > { %v3060_v38 = vadd.f32 %v3059_v4, %v3046_v36  ;;  %v3047_v21 = vpop.f32.mrf.mxu0  ;;  %v7051_v28 = vor.u32 %v8413_v24, %v7050_v14  ;;  %v6954_v14 = vld [vmem:[#allocation3 + $0x330] sm:$0xf]  ;;  %v8389_v24 = vld [vmem:[#allocation3 + $0x344] sm:$0xf0] }
 0x6e2   : > { %v3048_v44 = vadd.f32 %v3047_v21, %v2657_v55  ;;  %v7244_v55 = vld [vmem:[#allocation3 + $0x588] sm:$0xf0]  ;;  %v7220_v21 = vld [vmem:[#allocation3 + $0x558] sm:$0xf0] }
 0x6e3   : > { %v7247_v36 = vor.u32 %v8458_v32, %v7244_v55  ;;  %v8434_v55 = vld [vmem:[#allocation3 + $0x4b4] sm:$0xf] }
 0x6e5   : > { %3804 = vmatpush.bf16.msrb.mxu3 %v7247_v36 }
 0x6e6   : > { %v3031_v23 = vpop.f32.mrf.mxu3 }
 0x6e7   : > { %v3019_v27 = vpop.f32.mrf.mxu2  ;;  %v3032_v39 = vadd.f32 %v3031_v23, %v3018_v37  ;;  %v8461_v23 = vld [vmem:[#allocation3 + $0x584] sm:$0xf0]  ;;  %v8455_v37 = vld [vmem:[#allocation3 + $0x554] sm:$0xf0] }
 0x6e8   : > { %v3061_v42 = vpop.f32.mrf.mxu1  ;;  %v3020_v46 = vadd.f32 %v3019_v27, %v3006_v43  ;;  %v8410_v27 = vld [vmem:[#allocation3 + $0x3f4] sm:$0xf]  ;;  %v7243_v4 = vor.u32 %v8461_v23, %v7242_v56  ;;  %v7219_v29 = vor.u32 %v8455_v37, %v7218_v35  ;;  %v8401_v43 = vld [vmem:[#allocation3 + $0x3a4] sm:$0xf0]  ;;  %v6955_v56 = vor.u32 %v8389_v24, %v6954_v14  ;;  %v7122_v35 = vld [vmem:[#allocation3 + $0x480] sm:$0xf] }
 0x6e9   : > { %v9584_v45 = vadd.f32 %v3032_v39, %v9494_v17  ;;  %v3062_v16 = vadd.f32 %v3061_v42, %v3048_v44  ;;  %v7028_v39 = vld [vmem:[#allocation3 + $0x3d8] sm:$0xf0]  ;;  %v7002_v42 = vld [vmem:[#allocation3 + $0x390] sm:$0xf]  ;;  %v8437_v23 = vld [vmem:[#allocation3 + $0x4c4] sm:$0xf0] }
 0x6ea   : > { %3776 = vmatpush.bf16.msrb.mxu1 %v7243_v4  ;;  %v7194_v44 = vld [vmem:[#allocation3 + $0x510] sm:$0xf]  ;;  %v7148_v4 = vld [vmem:[#allocation3 + $0x4c8] sm:$0xf0]  ;;  %v8431_v37 = vld [vmem:[#allocation3 + $0x494] sm:$0xf0] }
 0x6eb   : > { %v7034_v24 = vld [vmem:[#allocation3 + $0x3c8] sm:$0xf] }
 0x6ee   : > { %v3033_v33 = vpop.f32.mrf.mxu3  ;;  %3777 = vmatpush.bf16.msrb.mxu1 %v7219_v29  ;;  %v7124_v29 = vld [vmem:[#allocation3 + $0x498] sm:$0xf0] }
 0x6ef   : > { %v3073_v5 = vpop.f32.mrf.mxu2  ;;  %v3034_v50 = vadd.f32 %v3033_v33, %v3020_v46  ;;  %v7055_v33 = vor.u32 %v8410_v27, %v7052_v31  ;;  %v8449_v46 = vld [vmem:[#allocation3 + $0x524] sm:$0xf0]  ;;  %v8386_v27 = vld [vmem:[#allocation3 + $0x334] sm:$0xf]  ;;  %v7147_v31 = vor.u32 %v8437_v23, %v7146_v22  ;;  %v8408_v22 = vld [vmem:[#allocation3 + $0x3dc] sm:$0xf0] }
 0x6f0   : > { %v3074_v40 = vadd.f32 %v3073_v5, %v3060_v38  ;;  %v8407_v5 = vld [vmem:[#allocation3 + $0x3d4] sm:$0xf0]  ;;  %v8404_v38 = vld [vmem:[#allocation3 + $0x3c4] sm:$0xf]  ;;  %v7195_v26 = vor.u32 %v8449_v46, %v7194_v44  ;;  %v7035_v23 = vor.u32 %v8408_v22, %v7034_v24  ;;  %v8429_v22 = vld [vmem:[#allocation3 + $0x48c] sm:$0xf] }
 0x6f1   : > { %v9592_v25 = vadd.f32 %v3034_v50, %v9496_v19  ;;  %v7074_v19 = vld [vmem:[#allocation3 + $0x420] sm:$0xf]  ;;  %3790 = vmatpush.bf16.msrb.mxu2 %v7055_v33  ;;  %v8446_v50 = vld [vmem:[#allocation3 + $0x514] sm:$0xf]  ;;  %v7151_v33 = vor.u32 %v8434_v55, %v7148_v4  ;;  %v7298_v44 = vld [vmem:[#allocation3 + $0x5d8] sm:$0xf] }
 0x6f2   : > { %3778 = vmatpush.bf16.msrb.mxu1 %v7195_v26  ;;  %v8420_v26 = vld [vmem:[#allocation3 + $0x43c] sm:$0xf0]  ;;  %v8453_v4 = vld [vmem:[#allocation3 + $0x54c] sm:$0xf] }
 0x6f6   : > { %v3087_v57 = vpop.f32.mrf.mxu3 }
 0x6f7   : > { %v3088_v41 = vadd.f32 %v3087_v57, %v3074_v40  ;;  %v3075_v48 = vpop.f32.mrf.mxu2  ;;  %v8452_v40 = vld [vmem:[#allocation3 + $0x544] sm:$0xf]  ;;  %v7027_v57 = vor.u32 %v8407_v5, %v7026_v1  ;;  %v6930_v1 = vld [vmem:[#allocation3 + $0x300] sm:$0xf]  ;;  %v8383_v5 = vld [vmem:[#allocation3 + $0x314] sm:$0xf0] }
 0x6f8   : > { %v3076_v30 = vadd.f32 %v3075_v48, %v3062_v16  ;;  %v7223_v48 = vor.u32 %v8452_v40, %v7220_v21  ;;  %v8398_v16 = vld [vmem:[#allocation3 + $0x394] sm:$0xf]  ;;  %v6931_v36 = vor.u32 %v8383_v5, %v6930_v1  ;;  %v7123_v40 = vor.u32 %v8431_v37, %v7122_v35  ;;  %v7010_v5 = vld [vmem:[#allocation3 + $0x398] sm:$0xf]  ;;  %v8402_v35 = vld [vmem:[#allocation3 + $0x3ac] sm:$0xf0] }
 0x6f9   : > { %v9587_v47 = vadd.f32 %v3088_v41, %v9498_v54  ;;  %v7031_v41 = vor.u32 %v8404_v38, %v7028_v39  ;;  %v8380_v38 = vld [vmem:[#allocation3 + $0x304] sm:$0xf]  ;;  %v6932_v39 = vld [vmem:[#allocation3 + $0x318] sm:$0xf0]  ;;  %v7011_v37 = vor.u32 %v8402_v35, %v7010_v5 }
 0x6fa   : > { %3805 = vmatpush.bf16.msrb.mxu3 %v7223_v48  ;;  %v6935_v21 = vor.u32 %v8380_v38, %v6932_v39  ;;  %v8474_v48 = vld [vmem:[#allocation3 + $0x5ec] sm:$0xf0]  ;;  %v8399_v39 = vld [vmem:[#allocation3 + $0x39c] sm:$0xf] }
 0x6fb   : > { %v3098_v8 = vadd.f32 %v9587_v47, %v9584_v45  ;;  %3791 = vmatpush.bf16.msrb.mxu2 %v7031_v41  ;;  %v7106_v41 = vld [vmem:[#allocation3 + $0x458] sm:$0xf]  ;;  %v8450_v38 = vld [vmem:[#allocation3 + $0x52c] sm:$0xf0] }
 0x6fd   : > { %3099 = vadd.xlane.f32.xlu1 %v3098_v8  ;;  %v7004_v8 = vld [vmem:[#allocation3 + $0x3a8] sm:$0xf0] }
 0x6fe   : > { %v3089_v51 = vpop.f32.mrf.mxu3  ;;  %v7007_v58 = vor.u32 %v8398_v16, %v7004_v8  ;;  %v7299_v16 = vor.u32 %v8474_v48, %v7298_v44  ;;  %v8423_v8 = vld [vmem:[#allocation3 + $0x45c] sm:$0xf]  ;;  %v8396_v44 = vld [vmem:[#allocation3 + $0x37c] sm:$0xf0]  ;;  %v7178_v48 = vld [vmem:[#allocation3 + $0x4e8] sm:$0xf] }
 0x6ff   : > { %v3090_v52 = vadd.f32 %v3089_v51, %v3076_v30  ;;  %v7196_v30 = vld [vmem:[#allocation3 + $0x528] sm:$0xf0] }
 0x700   : > { %v7199_v59 = vor.u32 %v8446_v50, %v7196_v30  ;;  %3792 = vmatpush.bf16.msrb.mxu2 %v7007_v58  ;;  %v7108_v50 = vld [vmem:[#allocation3 + $0x470] sm:$0xf0]  ;;  %v8471_v30 = vld [vmem:[#allocation3 + $0x5dc] sm:$0xf] }
 0x701   : > { %v9595_v17 = vadd.f32 %v3090_v52, %v9500_v53  ;;  %v8419_v53 = vld [vmem:[#allocation3 + $0x434] sm:$0xf0]  ;;  %v7003_v52 = vor.u32 %v8401_v43, %v7002_v42  ;;  %v8426_v43 = vld [vmem:[#allocation3 + $0x46c] sm:$0xf0] }
 0x702   : > { %v7075_v6 = vor.u32 %v8419_v53, %v7074_v19  ;;  %3806 = vmatpush.bf16.msrb.mxu3 %v7199_v59  ;;  %v6978_v53 = vld [vmem:[#allocation3 + $0x360] sm:$0xf]  ;;  %v7107_v46 = vor.u32 %v8426_v43, %v7106_v41  ;;  %v7204_v41 = vld [vmem:[#allocation3 + $0x530] sm:$0xf0]  ;;  %v6986_v43 = vld [vmem:[#allocation3 + $0x368] sm:$0xf] }
 0x703   : > { %v3101_v54 = vadd.f32 %v9595_v17, %v9592_v25 }
 0x704   : > { %3761 = vmatpush.bf16.msrb.mxu0 %v7075_v6  ;;  %v6979_v6 = vor.u32 %v8395_v18, %v6978_v53  ;;  %3793 = vmatpush.bf16.msrb.mxu2 %v6983_v12  ;;  %v7058_v18 = vld [vmem:[#allocation3 + $0x3f8] sm:$0xf] }
 0x705   : > { %3102 = vadd.xlane.f32.xlu2 %v3101_v54 }
 0x708   : > { %3762 = vmatpush.bf16.msrb.mxu0 %v7051_v28  ;;  %v6956_v28 = vld [vmem:[#allocation3 + $0x348] sm:$0xf0] }
 0x709   : > { %v6959_v32 = vor.u32 %v8386_v27, %v6956_v28  ;;  %v8456_v27 = vld [vmem:[#allocation3 + $0x55c] sm:$0xf0]  ;;  %v8405_v28 = vld [vmem:[#allocation3 + $0x3cc] sm:$0xf] }
 0x70b   : > { %3794 = vmatpush.bf16.msrb.mxu2 %v6959_v32 }
 0x70c   : > { %3763 = vmatpush.bf16.msrb.mxu0 %v7027_v57  ;;  %v8428_v57 = vld [vmem:[#allocation3 + $0x484] sm:$0xf] }
 0x70d   : > { %v7127_v42 = vor.u32 %v8428_v57, %v7124_v29  ;;  %v8447_v29 = vld [vmem:[#allocation3 + $0x51c] sm:$0xf] }
 0x70f   : > { %3795 = vmatpush.bf16.msrb.mxu2 %v6935_v21 }
 0x710   : > { %3764 = vmatpush.bf16.msrb.mxu0 %v7003_v52  ;;  %v7300_v52 = vld [vmem:[#allocation3 + $0x5f0] sm:$0xf0] }
 0x711   : > { %v7303_v58 = vor.u32 %v8471_v30, %v7300_v52  ;;  %v8441_v52 = vld [vmem:[#allocation3 + $0x4ec] sm:$0xf] }
 0x714   : > { %3765 = vmatpush.bf16.msrb.mxu0 %v6979_v6  ;;  %v7250_v6 = vld [vmem:[#allocation3 + $0x578] sm:$0xf] }
 0x715   : > { %v7251_v12 = vor.u32 %v8462_v10, %v7250_v6  ;;  %v6938_v10 = vld [vmem:[#allocation3 + $0x308] sm:$0xf] }
 0x718   : > { %3766 = vmatpush.bf16.msrb.mxu0 %v6955_v56  ;;  %v7226_v56 = vld [vmem:[#allocation3 + $0x548] sm:$0xf] }
 0x719   : > { %v7227_v32 = vor.u32 %v8456_v27, %v7226_v56  ;;  %v7132_v56 = vld [vmem:[#allocation3 + $0x4a0] sm:$0xf0] }
 0x71a   : > { %v7135_v27 = vor.u32 %v8429_v22, %v7132_v56  ;;  %v8415_v22 = vld [vmem:[#allocation3 + $0x414] sm:$0xf0] }
 0x71c   : > { %3767 = vmatpush.bf16.msrb.mxu0 %v6931_v36  ;;  %v7202_v36 = vld [vmem:[#allocation3 + $0x518] sm:$0xf] }
 0x71d   : > { %v7203_v21 = vor.u32 %v8450_v38, %v7202_v36  ;;  %v3096_v38 = vld [vmem:[%s10056_s14] sm:$0x3] }
 0x720   : > { %3816 = vmatpush.bf16.msra.mxu0 %v7107_v46  ;;  %v6987_v46 = vor.u32 %v8396_v44, %v6986_v43 }
 0x770   : > { %v3100_v51 = vpop.xlane.xlu1 %3099 }
 0x771   : > { %v3104_v54 = vmul.f32 %v3100_v51, %v9165_v63  ;;  %v7111_v51 = vor.u32 %v8423_v8, %v7108_v50  ;;  %v8393_v8 = vld [vmem:[#allocation3 + $0x36c] sm:$0xf]  ;;  %v6988_v50 = vld [vmem:[#allocation3 + $0x380] sm:$0xf0] }
 0x773   : > { %v9601_v60 = vsub.f32 %v9584_v45, %v3104_v54  ;;  %v9604_v61 = vsub.f32 %v9587_v47, %v3104_v54  ;;  %v7082_v54 = vld [vmem:[#allocation3 + $0x428] sm:$0xf]  ;;  %3844 = vmatpush.bf16.msra.mxu2 %v7111_v51  ;;  %v6991_v51 = vor.u32 %v8393_v8, %v6988_v50 }
 0x774   : > { %v7083_v59 = vor.u32 %v8420_v26, %v7082_v54  ;;  %v7180_v54 = vld [vmem:[#allocation3 + $0x500] sm:$0xf0] }
 0x775   : > { %v3110_v34 = vmul.f32 %v9601_v60, %v9601_v60  ;;  %v3111_v62 = vmul.f32 %v9604_v61, %v9604_v61  ;;  %v7183_v26 = vor.u32 %v8441_v52, %v7180_v54 }
 0x776   : > { %3817 = vmatpush.bf16.msra.mxu0 %v7083_v59  ;;  %v6962_v59 = vld [vmem:[#allocation3 + $0x338] sm:$0xf] }
 0x777   : > { %v3114_v20 = vadd.f32 %v3111_v62, %v3110_v34  ;;  %v7274_v34 = vld [vmem:[#allocation3 + $0x5a8] sm:$0xf]  ;;  %v8468_v62 = vld [vmem:[#allocation3 + $0x5bc] sm:$0xf0] }
 0x778   : > { %v3103_v0 = vpop.xlane.xlu2 %3102 }
 0x779   : > { %v3105_v3 = vmul.f32 %v3103_v0, %v9165_v63  ;;  %3115 = vadd.xlane.f32.xlu0 %v3114_v20  ;;  %v8417_v20 = vld [vmem:[#allocation3 + $0x42c] sm:$0xf]  ;;  %v7275_v0 = vor.u32 %v8468_v62, %v7274_v34  ;;  %v8390_v34 = vld [vmem:[#allocation3 + $0x34c] sm:$0xf0]  ;;  %v7154_v62 = vld [vmem:[#allocation3 + $0x4b8] sm:$0xf] }
 0x77b   : > { %v9612_v45 = vsub.f32 %v9592_v25, %v3105_v3  ;;  %v9615_v47 = vsub.f32 %v9595_v17, %v3105_v3  ;;  %v7171_v25 = vor.u32 %v8443_v2, %v7170_v9  ;;  %v7172_v17 = vld [vmem:[#allocation3 + $0x4f8] sm:$0xf0]  ;;  %v7084_v3 = vld [vmem:[#allocation3 + $0x440] sm:$0xf0]  ;;  %v8414_v9 = vld [vmem:[#allocation3 + $0x40c] sm:$0xf0] }
 0x77c   : > { %v7175_v15 = vor.u32 %v8440_v13, %v7172_v17  ;;  %v7059_v2 = vor.u32 %v8414_v9, %v7058_v18  ;;  %v8459_v17 = vld [vmem:[#allocation3 + $0x57c] sm:$0xf]  ;;  %v7156_v9 = vld [vmem:[#allocation3 + $0x4d0] sm:$0xf0] }
 0x77d   : > { %v3112_v49 = vmul.f32 %v9612_v45, %v9612_v45  ;;  %v3113_v19 = vmul.f32 %v9615_v47, %v9615_v47  ;;  %3779 = vmatpush.bf16.msrb.mxu1 %v7171_v25  ;;  %v7060_v25 = vld [vmem:[#allocation3 + $0x410] sm:$0xf0]  ;;  %v8435_v18 = vld [vmem:[#allocation3 + $0x4bc] sm:$0xf] }
 0x77e   : > { %3807 = vmatpush.bf16.msrb.mxu3 %v7175_v15  ;;  %v7063_v13 = vor.u32 %v8411_v11, %v7060_v25  ;;  %v7252_v15 = vld [vmem:[#allocation3 + $0x590] sm:$0xf0]  ;;  %3818 = vmatpush.bf16.msra.mxu0 %v7059_v2  ;;  %v7159_v2 = vor.u32 %v8435_v18, %v7156_v9  ;;  %v8384_v11 = vld [vmem:[#allocation3 + $0x31c] sm:$0xf0]  ;;  %v7130_v25 = vld [vmem:[#allocation3 + $0x488] sm:$0xf] }
 0x77f   : > { %v3117_v7 = vadd.f32 %v3113_v19, %v3112_v49  ;;  %v8465_v49 = vld [vmem:[#allocation3 + $0x5ac] sm:$0xf]  ;;  %v7276_v19 = vld [vmem:[#allocation3 + $0x5c0] sm:$0xf0]  ;;  %v7255_v14 = vor.u32 %v8459_v17, %v7252_v15  ;;  %v7090_v18 = vld [vmem:[#allocation3 + $0x430] sm:$0xf] }
 0x780   : > { %v7279_v53 = vor.u32 %v8465_v49, %v7276_v19  ;;  %v8387_v49 = vld [vmem:[#allocation3 + $0x33c] sm:$0xf]  ;;  %v6964_v19 = vld [vmem:[#allocation3 + $0x350] sm:$0xf0]  ;;  %v8381_v17 = vld [vmem:[#allocation3 + $0x30c] sm:$0xf] }
 0x781   : > { %3118 = vadd.xlane.f32.xlu1 %v3117_v7  ;;  %3780 = vmatpush.bf16.msrb.mxu1 %v7147_v31  ;;  %v7087_v7 = vor.u32 %v8417_v20, %v7084_v3  ;;  %v7036_v31 = vld [vmem:[#allocation3 + $0x3e0] sm:$0xf0]  ;;  %v8438_v3 = vld [vmem:[#allocation3 + $0x4cc] sm:$0xf0]  ;;  %v8421_v9 = vld [vmem:[#allocation3 + $0x444] sm:$0xf0] }
 0x782   : > { %3808 = vmatpush.bf16.msrb.mxu3 %v7151_v33  ;;  %v7039_v55 = vor.u32 %v8405_v28, %v7036_v31  ;;  %v7228_v33 = vld [vmem:[#allocation3 + $0x560] sm:$0xf0]  ;;  %3819 = vmatpush.bf16.msra.mxu0 %v7035_v23 }
 0x783   : > { %3845 = vmatpush.bf16.msra.mxu2 %v7087_v7  ;;  %v7231_v1 = vor.u32 %v8453_v4, %v7228_v33  ;;  %v7155_v7 = vor.u32 %v8438_v3, %v7154_v62  ;;  %v6940_v15 = vld [vmem:[#allocation3 + $0x320] sm:$0xf0]  ;;  %v7116_v3 = vld [vmem:[#allocation3 + $0x478] sm:$0xf0] }
 0x784   : > { %v6943_v24 = vor.u32 %v8381_v17, %v6940_v15  ;;  %v7284_v17 = vld [vmem:[#allocation3 + $0x5c8] sm:$0xf0]  ;;  %v7091_v15 = vor.u32 %v8421_v9, %v7090_v18 }
 0x785   : > { %3781 = vmatpush.bf16.msrb.mxu1 %v7123_v40  ;;  %v7012_v40 = vld [vmem:[#allocation3 + $0x3b0] sm:$0xf0]  ;;  %v7188_v18 = vld [vmem:[#allocation3 + $0x508] sm:$0xf0] }
 0x786   : > { %3809 = vmatpush.bf16.msrb.mxu3 %v7127_v42  ;;  %v7015_v57 = vor.u32 %v8399_v39, %v7012_v40  ;;  %v7207_v42 = vor.u32 %v8447_v29, %v7204_v41  ;;  %3820 = vmatpush.bf16.msra.mxu0 %v7011_v37  ;;  %v3149_v29 = vperm.slane %v3096_v38, 0  ;;  %v3150_v41 = vperm.slane %v3096_v38, 1  ;;  %v7234_v38 = vld [vmem:[#allocation3 + $0x550] sm:$0xf] }
 0x787   : > { %3846 = vmatpush.bf16.msra.mxu2 %v7063_v13  ;;  %v8432_v13 = vld [vmem:[#allocation3 + $0x49c] sm:$0xf0] }
 0x789   : > { %3830 = vmatpush.bf16.msra.mxu1 %v7299_v16  ;;  %v8444_v16 = vld [vmem:[#allocation3 + $0x4fc] sm:$0xf0] }
 0x78a   : > { %3858 = vmatpush.bf16.msra.mxu3 %v7303_v58  ;;  %v7179_v30 = vor.u32 %v8444_v16, %v7178_v48  ;;  %3821 = vmatpush.bf16.msra.mxu0 %v6987_v46 }
 0x78b   : > { %3847 = vmatpush.bf16.msra.mxu2 %v7039_v55 }
 0x78d   : > { %3831 = vmatpush.bf16.msra.mxu1 %v7275_v0  ;;  %v6963_v0 = vor.u32 %v8390_v34, %v6962_v59  ;;  %v7306_v59 = vld [vmem:[#allocation3 + $0x5e0] sm:$0xf]  ;;  %v8424_v34 = vld [vmem:[#allocation3 + $0x464] sm:$0xf] }
 0x78e   : > { %3859 = vmatpush.bf16.msra.mxu3 %v7279_v53  ;;  %v6967_v53 = vor.u32 %v8387_v49, %v6964_v19  ;;  %v8472_v49 = vld [vmem:[#allocation3 + $0x5e4] sm:$0xf] }
 0x78f   : > { %3848 = vmatpush.bf16.msra.mxu2 %v7015_v57  ;;  %3822 = vmatpush.bf16.msra.mxu0 %v6963_v0  ;;  %v3097_v57 = vld [vmem:[%s10057_s15] sm:$0x3] }
 0x790   : > { %v3158_v48 = vperm.slane %v3097_v57, 0  ;;  %v3159_v46 = vperm.slane %v3097_v57, 1  ;;  %v8454_v57 = vld [vmem:[#allocation3 + $0x554] sm:$0xf] }
 0x791   : > { %3832 = vmatpush.bf16.msra.mxu1 %v7251_v12  ;;  %v6939_v12 = vor.u32 %v8384_v11, %v6938_v10  ;;  %v7282_v10 = vld [vmem:[#allocation3 + $0x5b0] sm:$0xf]  ;;  %v8469_v11 = vld [vmem:[#allocation3 + $0x5c4] sm:$0xf0] }
 0x792   : > { %3860 = vmatpush.bf16.msra.mxu3 %v7255_v14  ;;  %v7131_v14 = vor.u32 %v8432_v13, %v7130_v25  ;;  %v8418_v25 = vld [vmem:[#allocation3 + $0x434] sm:$0xf] }
 0x793   : > { %3849 = vmatpush.bf16.msra.mxu2 %v6991_v51  ;;  %3823 = vmatpush.bf16.msra.mxu0 %v6939_v12  ;;  %v7092_v12 = vld [vmem:[#allocation3 + $0x448] sm:$0xf0]  ;;  %v8466_v13 = vld [vmem:[#allocation3 + $0x5b4] sm:$0xf] }
 0x794   : > { %v7095_v56 = vor.u32 %v8418_v25, %v7092_v12  ;;  %v7162_v12 = vld [vmem:[#allocation3 + $0x4c0] sm:$0xf] }
 0x795   : > { %3833 = vmatpush.bf16.msra.mxu1 %v7227_v32 }
 0x796   : > { %3861 = vmatpush.bf16.msra.mxu3 %v7231_v1 }
 0x797   : > { %3850 = vmatpush.bf16.msra.mxu2 %v6967_v53 }
 0x799   : > { %3834 = vmatpush.bf16.msra.mxu1 %v7203_v21 }
 0x79a   : > { %3862 = vmatpush.bf16.msra.mxu3 %v7207_v42 }
 0x79b   : > { %3851 = vmatpush.bf16.msra.mxu2 %v6943_v24  ;;  %v7066_v24 = vld [vmem:[#allocation3 + $0x400] sm:$0xf] }
 0x79d   : > { %3835 = vmatpush.bf16.msra.mxu1 %v7179_v30 }
 0x79e   : > { %3863 = vmatpush.bf16.msra.mxu3 %v7183_v26  ;;  %v7114_v26 = vld [vmem:[#allocation3 + $0x460] sm:$0xf] }
 0x7a1   : > { %3836 = vmatpush.bf16.msra.mxu1 %v7155_v7 }
 0x7a2   : > { %3864 = vmatpush.bf16.msra.mxu3 %v7159_v2 }
 0x7a5   : > { %3837 = vmatpush.bf16.msra.mxu1 %v7131_v14  ;;  %v7283_v14 = vor.u32 %v8469_v11, %v7282_v10  ;;  %v8391_v10 = vld [vmem:[#allocation3 + $0x354] sm:$0xf0] }
 0x7a6   : > { %3865 = vmatpush.bf16.msra.mxu3 %v7135_v27  ;;  %v7258_v27 = vld [vmem:[#allocation3 + $0x580] sm:$0xf] }
 0x7ec   : > { %v3116_v58 = vpop.xlane.xlu0 %3115 }
 0x7ed   : > { %v3120_v20 = vmul.f32 %v3116_v58, %v9165_v63  ;;  %v8427_v58 = vld [vmem:[#allocation3 + $0x474] sm:$0xf0] }
 0x7ee   : > { %v7115_v7 = vor.u32 %v8427_v58, %v7114_v26  ;;  %v6994_v58 = vld [vmem:[#allocation3 + $0x370] sm:$0xf] }
 0x7ef   : > { %v3122_v6 = vadd.f32 1e-12, %v3120_v20 }
 0x7f1   : > { %8769 = vrsqrt.f32 %v3122_v6  ;;  %vm3130_vm15 = vweird.f32 %v3122_v6 }
 0x7f4   : > { %v3119_v23 = vpop.xlane.xlu1 %3118 }
 0x7f5   : > { %v3121_v28 = vmul.f32 %v3119_v23, %v9165_v63  ;;  %v7287_v23 = vor.u32 %v8466_v13, %v7284_v17  ;;  %v8439_v13 = vld [vmem:[#allocation3 + $0x4d4] sm:$0xf0]  ;;  %v8388_v17 = vld [vmem:[#allocation3 + $0x344] sm:$0xf] }
 0x7f7   : > { %v8770_v31 = vpop.eup %8769  ;;  %v3123_v32 = vadd.f32 1e-12, %v3121_v28  ;;  %v8463_v28 = vld [vmem:[#allocation3 + $0x594] sm:$0xf0] }
 0x7f8   : > { %v3125_v55 = vmul.f32 %v8770_v31, %v3122_v6  ;;  %vm3131_vm14 = vweird.f32 %v8770_v31  ;;  %v7119_v6 = vor.u32 %v8424_v34, %v7116_v3  ;;  %v7186_v3 = vld [vmem:[#allocation3 + $0x4f0] sm:$0xf] }
 0x7f9   : > { %8771 = vrsqrt.f32 %v3123_v32  ;;  %vm3132_vm0 = vmor %vm3130_vm15, %vm3131_vm14  ;;  %vm3140_vm2 = vweird.f32 %v3123_v32 }
 0x7fa   : > { %v3126_v4 = vmul.f32 %v8770_v31, %v3125_v55  ;;  %v8460_v55 = vld [vmem:[#allocation3 + $0x584] sm:$0xf] }
 0x7fc   : > { %v3127_v33 = vmul.f32 0.5, %v3126_v4  ;;  %v7260_v4 = vld [vmem:[#allocation3 + $0x598] sm:$0xf0] }
 0x7fe   : > { %v3128_v1 = vsub.f32 1.5, %v3127_v33  ;;  %v7067_v33 = vor.u32 %v8415_v22, %v7066_v24  ;;  %v7164_v24 = vld [vmem:[#allocation3 + $0x4d8] sm:$0xf0] }
 0x7ff   : > { %v8772_v5 = vpop.eup %8771 }
 0x800   : > { %v3129_v35 = vmul.f32 %v8770_v31, %v3128_v1  ;;  %v3135_v36 = vmul.f32 %v8772_v5, %v3123_v32  ;;  %vm3141_vm1 = vweird.f32 %v8772_v5  ;;  %v7068_v32 = vld [vmem:[#allocation3 + $0x418] sm:$0xf0]  ;;  %v7259_v1 = vor.u32 %v8463_v28, %v7258_v27  ;;  %v8385_v27 = vld [vmem:[#allocation3 + $0x324] sm:$0xf0] }
 0x801   : > { %vm3142_vm3 = vmor %vm3140_vm2, %vm3141_vm1 }
 0x802   : > { %v3136_v37 = vmul.f32 %v8772_v5, %v3135_v36  ;;  %v3133_v39 = vsel %vm3132_vm0, %v8770_v31, %v3129_v35  ;;  %v8412_v31 = vld [vmem:[#allocation3 + $0x404] sm:$0xf]  ;;  %v8409_v35 = vld [vmem:[#allocation3 + $0x3e4] sm:$0xf0] }
 0x803   : > { %v3144_v42 = vmul.f32 %v3133_v39, %v9601_v60  ;;  %v3145_v43 = vmul.f32 %v3133_v39, %v9604_v61  ;;  %v8475_v60 = vld [vmem:[#allocation3 + $0x5f4] sm:$0xf0]  ;;  %v7071_v36 = vor.u32 %v8412_v31, %v7068_v32  ;;  %v8457_v39 = vld [vmem:[#allocation3 + $0x564] sm:$0xf0]  ;;  %v7138_v32 = vld [vmem:[#allocation3 + $0x490] sm:$0xf] }
 0x804   : > { %v3137_v40 = vmul.f32 0.5, %v3136_v37  ;;  %v7307_v53 = vor.u32 %v8475_v60, %v7306_v59  ;;  %v7263_v37 = vor.u32 %v8460_v55, %v7260_v4  ;;  %v8397_v59 = vld [vmem:[#allocation3 + $0x384] sm:$0xf0]  ;;  %v8382_v4 = vld [vmem:[#allocation3 + $0x314] sm:$0xf] }
 0x805   : > { %v3153_v8 = vmul.f32 %v3149_v29, %v3144_v42  ;;  %v3154_v50 = vmul.f32 %v3150_v41, %v3145_v43  ;;  %v7235_v42 = vor.u32 %v8457_v39, %v7234_v38  ;;  %v7018_v43 = vld [vmem:[#allocation3 + $0x3a0] sm:$0xf]  ;;  %v6995_v9 = vor.u32 %v8397_v59, %v6994_v58  ;;  %v8433_v55 = vld [vmem:[#allocation3 + $0x4a4] sm:$0xf0] }
 0x806   : > { %v3138_v21 = vsub.f32 1.5, %v3137_v40  ;;  %v8406_v40 = vld [vmem:[#allocation3 + $0x3d4] sm:$0xf] }
 0x807   : > { %v9633_v61 = vadd.f32 %v3158_v48, %v3153_v8  ;;  %v9635_v62 = vadd.f32 %v3159_v46, %v3154_v50  ;;  %v8451_v8 = vld [vmem:[#allocation3 + $0x534] sm:$0xf0]  ;;  %v8400_v50 = vld [vmem:[#allocation3 + $0x3a4] sm:$0xf] }
 0x808   : > { %v3139_v44 = vmul.f32 %v8772_v5, %v3138_v21  ;;  %v7044_v21 = vld [vmem:[#allocation3 + $0x3e8] sm:$0xf0] }
 0x80a   : > { %v3143_v16 = vsel %vm3142_vm3, %v8772_v5, %v3139_v44  ;;  %v7042_v5 = vld [vmem:[#allocation3 + $0x3d0] sm:$0xf]  ;;  %v8403_v44 = vld [vmem:[#allocation3 + $0x3b4] sm:$0xf0] }
 0x80b   : > { %v3146_v30 = vmul.f32 %v3143_v16, %v9612_v45  ;;  %v3147_v51 = vmul.f32 %v3143_v16, %v9615_v47  ;;  %v7308_v45 = vld [vmem:[#allocation3 + $0x5f8] sm:$0xf0]  ;;  %v7210_v16 = vld [vmem:[#allocation3 + $0x520] sm:$0xf] }
 0x80c   : > { %v7311_v2 = vor.u32 %v8472_v49, %v7308_v45  ;;  %v7211_v26 = vor.u32 %v8451_v8, %v7210_v16  ;;  %v8445_v49 = vld [vmem:[#allocation3 + $0x504] sm:$0xf0]  ;;  %v8394_v45 = vld [vmem:[#allocation3 + $0x374] sm:$0xf] }
 0x80d   : > { %v3155_v52 = vmul.f32 %v3149_v29, %v3146_v30  ;;  %v3156_v54 = vmul.f32 %v3150_v41, %v3147_v51  ;;  %v7236_v29 = vld [vmem:[#allocation3 + $0x568] sm:$0xf0]  ;;  %v7043_v41 = vor.u32 %v8409_v35, %v7042_v5  ;;  %v7020_v30 = vld [vmem:[#allocation3 + $0x3b8] sm:$0xf0]  ;;  %v8448_v51 = vld [vmem:[#allocation3 + $0x524] sm:$0xf] }
 0x80e   : > { %v7023_v60 = vor.u32 %v8400_v50, %v7020_v30  ;;  %v7140_v5 = vld [vmem:[#allocation3 + $0x4a8] sm:$0xf0] }
 0x80f   : > { %v9637_v20 = vadd.f32 %v3158_v48, %v3155_v52  ;;  %v9639_v0 = vadd.f32 %v3159_v46, %v3156_v54  ;;  %v7047_v48 = vor.u32 %v8406_v40, %v7044_v21  ;;  %v7239_v46 = vor.u32 %v8454_v57, %v7236_v29  ;;  %v7212_v52 = vld [vmem:[#allocation3 + $0x538] sm:$0xf0] }
 0x810   : > { %v7019_v54 = vor.u32 %v8403_v44, %v7018_v43  ;;  %v7215_v34 = vor.u32 %v8448_v51, %v7212_v52 }
 0x811   : > { %v9643_v47 = vpack.c.bf16 %v9637_v20, %v9633_v61  ;;  %v9647_v19 = vpack.c.bf16 %v9639_v0, %v9635_v62 }
 0x813   : > { %3768 = vmatmul.bf16.vlgmr.msrb.gmra.mxu0 %v9643_v47  ;;  %3782 = vmatmul.bf16.vlgmr.msrb.gmra.mxu1 %v9647_v19 }
 0x814   : > { %3796 = vmatmul.bf16.vlgmr.msrb.gmra.mxu2 %v9643_v47  ;;  %3810 = vmatmul.bf16.vlgmr.msrb.gmra.mxu3 %v9647_v19 }
 0x815   : > { %3872 = vmatpush.bf16.msrb.mxu0 %v7115_v7  ;;  %3886 = vmatpush.bf16.msrb.mxu1 %v7307_v53  ;;  %v6996_v7 = vld [vmem:[#allocation3 + $0x388] sm:$0xf0]  ;;  %v8442_v53 = vld [vmem:[#allocation3 + $0x4f4] sm:$0xf] }
 0x816   : > { %3900 = vmatpush.bf16.msrb.mxu2 %v7119_v6  ;;  %3914 = vmatpush.bf16.msrb.mxu3 %v7311_v2  ;;  %v7187_v6 = vor.u32 %v8445_v49, %v7186_v3  ;;  %v6970_v2 = vld [vmem:[#allocation3 + $0x340] sm:$0xf]  ;;  %v6999_v11 = vor.u32 %v8394_v45, %v6996_v7  ;;  %v7191_v25 = vor.u32 %v8442_v53, %v7188_v18 }
 0x817   : > { %v6971_v22 = vor.u32 %v8391_v10, %v6970_v2 }
 0x819   : > { %3873 = vmatpush.bf16.msrb.mxu0 %v7091_v15  ;;  %3887 = vmatpush.bf16.msrb.mxu1 %v7283_v14  ;;  %v6972_v15 = vld [vmem:[#allocation3 + $0x358] sm:$0xf0]  ;;  %v8436_v14 = vld [vmem:[#allocation3 + $0x4c4] sm:$0xf] }
 0x81a   : > { %3901 = vmatpush.bf16.msrb.mxu2 %v7095_v56  ;;  %3915 = vmatpush.bf16.msrb.mxu3 %v7287_v23  ;;  %v7163_v56 = vor.u32 %v8439_v13, %v7162_v12  ;;  %v6946_v23 = vld [vmem:[#allocation3 + $0x310] sm:$0xf]  ;;  %v6975_v28 = vor.u32 %v8388_v17, %v6972_v15  ;;  %v7167_v31 = vor.u32 %v8436_v14, %v7164_v24 }
 0x81b   : > { %v6947_v35 = vor.u32 %v8385_v27, %v6946_v23 }
 0x81d   : > { %3874 = vmatpush.bf16.msrb.mxu0 %v7067_v33  ;;  %3888 = vmatpush.bf16.msrb.mxu1 %v7259_v1  ;;  %v6948_v33 = vld [vmem:[#allocation3 + $0x328] sm:$0xf0]  ;;  %v8430_v1 = vld [vmem:[#allocation3 + $0x494] sm:$0xf] }
 0x81e   : > { %3902 = vmatpush.bf16.msrb.mxu2 %v7071_v36  ;;  %3916 = vmatpush.bf16.msrb.mxu3 %v7263_v37  ;;  %v7139_v36 = vor.u32 %v8433_v55, %v7138_v32  ;;  %v6951_v37 = vor.u32 %v8382_v4, %v6948_v33  ;;  %v7143_v38 = vor.u32 %v8430_v1, %v7140_v5 }
 0x821   : > { %3875 = vmatpush.bf16.msrb.mxu0 %v7043_v41  ;;  %3889 = vmatpush.bf16.msrb.mxu1 %v7235_v42 }
 0x822   : > { %3903 = vmatpush.bf16.msrb.mxu2 %v7047_v48  ;;  %3917 = vmatpush.bf16.msrb.mxu3 %v7239_v46  ;;  %v6927_v46 = vld [vmem:[%s10047_s5 + $0x6] sm:$0x3f] }
 0x823   : > { %3824 = vmatmul.bf16.vlgmr.msra.gmra.mxu0 %v9643_v47  ;;  %3838 = vmatmul.bf16.vlgmr.msra.gmra.mxu1 %v9647_v19  ;;  %v3270_v16 = vperm.slane %v6927_v46, 2  ;;  %v3268_v52 = vperm.slane %v6927_v46, 0  ;;  %v3269_v18 = vperm.slane %v6927_v46, 1  ;;  %v3272_v17 = vperm.slane %v6927_v46, 4 }
 0x824   : > { %3852 = vmatmul.bf16.vlgmr.msra.gmra.mxu2 %v9643_v47  ;;  %3866 = vmatmul.bf16.vlgmr.msra.gmra.mxu3 %v9647_v19  ;;  %v3273_v32 = vperm.slane %v6927_v46, 5 }
 0x825   : > { %3876 = vmatpush.bf16.msrb.mxu0 %v7019_v54  ;;  %3890 = vmatpush.bf16.msrb.mxu1 %v7211_v26  ;;  %v3271_v54 = vperm.slane %v6927_v46, 3 }
 0x826   : > { %3904 = vmatpush.bf16.msrb.mxu2 %v7023_v60  ;;  %3918 = vmatpush.bf16.msrb.mxu3 %v7215_v34 }
 0x829   : > { %3877 = vmatpush.bf16.msrb.mxu0 %v6995_v9  ;;  %3891 = vmatpush.bf16.msrb.mxu1 %v7187_v6 }
 0x82a   : > { %3905 = vmatpush.bf16.msrb.mxu2 %v6999_v11  ;;  %3919 = vmatpush.bf16.msrb.mxu3 %v7191_v25 }
 0x82d   : > { %3878 = vmatpush.bf16.msrb.mxu0 %v6971_v22  ;;  %3892 = vmatpush.bf16.msrb.mxu1 %v7163_v56 }
 0x82e   : > { %3906 = vmatpush.bf16.msrb.mxu2 %v6975_v28  ;;  %3920 = vmatpush.bf16.msrb.mxu3 %v7167_v31 }
 0x831   : > { %3879 = vmatpush.bf16.msrb.mxu0 %v6947_v35  ;;  %3893 = vmatpush.bf16.msrb.mxu1 %v7139_v36 }
 0x832   : > { %3907 = vmatpush.bf16.msrb.mxu2 %v6951_v37  ;;  %3921 = vmatpush.bf16.msrb.mxu3 %v7143_v38 }
 0x834   : > { %3880 = vmatmul.bf16.vlgmr.msrb.gmra.mxu0 %v9643_v47  ;;  %3894 = vmatmul.bf16.vlgmr.msrb.gmra.mxu1 %v9647_v19 }
 0x835   : > { %3908 = vmatmul.bf16.vlgmr.msrb.gmra.mxu2 %v9643_v47  ;;  %3922 = vmatmul.bf16.vlgmr.msrb.gmra.mxu3 %v9647_v19 }
 0x890   : > { %v3769_v39 = vpop.f32.mrf.mxu0  ;;  %v3783_v40 = vpop.f32.mrf.mxu1 }
 0x891   : > { %v3770_v34 = vadd.f32 %v3769_v39, %v3268_v52 }
 0x893   : > { %v3784_v2 = vadd.f32 %v3783_v40, %v3770_v34 }
 0x897   : > { %v3797_v21 = vpop.f32.mrf.mxu2  ;;  %v3811_v57 = vpop.f32.mrf.mxu3 }
 0x898   : > { %v3771_v29 = vpop.f32.mrf.mxu0  ;;  %v3785_v41 = vpop.f32.mrf.mxu1  ;;  %v3798_v15 = vadd.f32 %v3797_v21, %v3269_v18 }
 0x899   : > { %v3772_v59 = vadd.f32 %v3771_v29, %v3268_v52 }
 0x89a   : > { %v3812_v23 = vadd.f32 %v3811_v57, %v3798_v15  ;;  %v8815_v57 = vld [vmem:[%s9144_s1] ss:$0 sm:$0xff]  ;;  %s710_s1 = scalar_lea.vmem %s10084_s25, %s5900_s4 }
 0x89b   : > { %v3786_v7 = vadd.f32 %v3785_v41, %v3772_v59  ;;  %v7460_v15 = vld [vmem:[%s10048_s6 + $0x160] sm:$0xf] }
 0x89d   : > { %v3961_v12 = vpack.c.bf16 %v3786_v7, %v3784_v2 }
 0x89f   : > { %v3799_v42 = vpop.f32.mrf.mxu2  ;;  %v3813_v43 = vpop.f32.mrf.mxu3 }
 0x8a0   : > { %v3825_v44 = vpop.f32.mrf.mxu0  ;;  %v3839_v48 = vpop.f32.mrf.mxu1  ;;  %v3800_v25 = vadd.f32 %v3799_v42, %v3269_v18 }
 0x8a1   : > { %v3826_v8 = vadd.f32 %v3825_v44, %v3270_v16 }
 0x8a2   : > { %v3814_v14 = vadd.f32 %v3813_v43, %v3800_v25  ;;  %v8491_v25 = vld [vmem:[%s10048_s6 + $0x174] sm:$0xf0] }
 0x8a3   : > { %v3840_v26 = vadd.f32 %v3839_v48, %v3826_v8 }
 0x8a4   : > { %v4019_v31 = vpack.c.bf16 %v3814_v14, %v3812_v23  ;;  %v8489_v14 = vld [vmem:[%s10048_s6 + $0x164] sm:$0xf0] }
 0x8a7   : > { %v3853_v50 = vpop.f32.mrf.mxu2  ;;  %v3867_v47 = vpop.f32.mrf.mxu3 }
 0x8a8   : > { %v3827_v30 = vpop.f32.mrf.mxu0  ;;  %v3841_v19 = vpop.f32.mrf.mxu1  ;;  %v3854_v3 = vadd.f32 %v3853_v50, %v3271_v54 }
 0x8a9   : > { %v3828_v51 = vadd.f32 %v3827_v30, %v3270_v16 }
 0x8aa   : > { %v3868_v10 = vadd.f32 %v3867_v47, %v3854_v3 }
 0x8ab   : > { %v3842_v58 = vadd.f32 %v3841_v19, %v3828_v51 }
 0x8ad   : > { %v3962_v60 = vpack.c.bf16 %v3842_v58, %v3840_v26 }
 0x8af   : > { %v3855_v49 = vpop.f32.mrf.mxu2  ;;  %v3869_v45 = vpop.f32.mrf.mxu3  ;;  %3971 = vmatpush.bf16.xpose.msra.mxu0 %v3962_v60 }
 0x8b0   : > { %v3856_v53 = vadd.f32 %v3855_v49, %v3271_v54 }
 0x8b1   : > { %v3881_v9 = vpop.f32.mrf.mxu0  ;;  %v3895_v6 = vpop.f32.mrf.mxu1 }
 0x8b2   : > { %v3870_v11 = vadd.f32 %v3869_v45, %v3856_v53  ;;  %v3882_v24 = vadd.f32 %v3881_v9, %v3272_v17 }
 0x8b4   : > { %v4020_v13 = vpack.c.bf16 %v3870_v11, %v3868_v10  ;;  %v3896_v4 = vadd.f32 %v3895_v6, %v3882_v24  ;;  %v7468_v11 = vld [vmem:[%s10048_s6 + $0x170] sm:$0xf] }
 0x8b6   : > { %4029 = vmatpush.bf16.xpose.msra.mxu2 %v4020_v13  ;;  %3972 = vmatmul.bf16.vlgmr.msra.gmra.mxu0 %v3961_v12  ;;  %v8490_v12 = vld [vmem:[%s10048_s6 + $0x174] sm:$0xf]  ;;  %v7469_v13 = vor.u32 %v8491_v25, %v7468_v11  ;;  %v8504_v11 = vld [vmem:[%s10048_s6 + $0x1e4] sm:$0xf]  ;;  %v7398_v25 = vld [vmem:[%s10048_s6 + $0x1e8] sm:$0xf0] }
 0x8b8   : > { %v3909_v22 = vpop.f32.mrf.mxu2  ;;  %v3923_v56 = vpop.f32.mrf.mxu3 }
 0x8b9   : > { %v3883_v27 = vpop.f32.mrf.mxu0  ;;  %v3897_v55 = vpop.f32.mrf.mxu1  ;;  %v3910_v5 = vadd.f32 %v3909_v22, %v3273_v32  ;;  %v8488_v22 = vld [vmem:[%s10048_s6 + $0x164] sm:$0xf] }
 0x8ba   : > { %v3884_v28 = vadd.f32 %v3883_v27, %v3272_v17  ;;  %v7470_v17 = vld [vmem:[%s10048_s6 + $0x178] sm:$0xf0]  ;;  %v7461_v27 = vor.u32 %v8489_v14, %v7460_v15  ;;  %v8478_v15 = vld [vmem:[%s10048_s6 + $0x114] sm:$0xf] }
 0x8bb   : > { %v3924_v38 = vadd.f32 %v3923_v56, %v3910_v5  ;;  %v7473_v24 = vor.u32 %v8490_v12, %v7470_v17  ;;  %v7462_v56 = vld [vmem:[%s10048_s6 + $0x168] sm:$0xf0]  ;;  %v7420_v12 = vld [vmem:[%s10048_s6 + $0x110] sm:$0xf]  ;;  %v8479_v17 = vld [vmem:[%s10048_s6 + $0x114] sm:$0xf0] }
 0x8bc   : > { %v3898_v33 = vadd.f32 %v3897_v55, %v3884_v28  ;;  %v7465_v28 = vor.u32 %v8488_v22, %v7462_v56  ;;  %v8486_v55 = vld [vmem:[%s10048_s6 + $0x154] sm:$0xf]  ;;  %v7422_v14 = vld [vmem:[%s10048_s6 + $0x118] sm:$0xf0]  ;;  %v7388_v56 = vld [vmem:[%s10048_s6 + $0x1d0] sm:$0xf] }
 0x8bd   : > { %4030 = vmatmul.bf16.vlgmr.msra.gmra.mxu2 %v4019_v31  ;;  %v7452_v31 = vld [vmem:[%s10048_s6 + $0x150] sm:$0xf]  ;;  %v7425_v22 = vor.u32 %v8478_v15, %v7422_v14 }
 0x8be   : > { %v3963_v1 = vpack.c.bf16 %v3898_v33, %v3896_v4  ;;  %4265 = vmatpush.bf16.msrb.mxu2 %v7469_v13  ;;  %v7454_v4 = vld [vmem:[%s10048_s6 + $0x158] sm:$0xf0]  ;;  %v7404_v33 = vld [vmem:[%s10048_s6 + $0x1f0] sm:$0xf]  ;;  %v7401_v13 = vor.u32 %v8504_v11, %v7398_v25  ;;  %v7474_v11 = vld [vmem:[%s10049_s7 + $0x2] sm:$0x3] }
 0x8bf   : > { %v4300_v15 = vperm.slane %v7474_v11, 0  ;;  %v4301_v14 = vperm.slane %v7474_v11, 1  ;;  %v7688_v11 = vld [vmem:[#allocation5 + $0x3a0] sm:$0xf] }
 0x8c0   : > { %v3911_v35 = vpop.f32.mrf.mxu2  ;;  %4011 = vmatpush.bf16.msra.mxu1 %v3963_v1  ;;  %v3925_v37 = vpop.f32.mrf.mxu3 }
 0x8c1   : > { %v3912_v36 = vadd.f32 %v3911_v35, %v3273_v32  ;;  %v8487_v32 = vld [vmem:[%s10048_s6 + $0x154] sm:$0xf0] }
 0x8c2   : > { %4266 = vmatpush.bf16.msrb.mxu2 %v7461_v27  ;;  %v7453_v5 = vor.u32 %v8487_v32, %v7452_v31  ;;  %v8507_v35 = vld [vmem:[%s10048_s6 + $0x1f4] sm:$0xf0]  ;;  %v8502_v27 = vld [vmem:[%s10048_s6 + $0x1d4] sm:$0xf]  ;;  %v7390_v31 = vld [vmem:[%s10048_s6 + $0x1d8] sm:$0xf0] }
 0x8c3   : > { %v3926_v39 = vadd.f32 %v3925_v37, %v3912_v36  ;;  %v8506_v36 = vld [vmem:[%s10048_s6 + $0x1f4] sm:$0xf]  ;;  %v7406_v37 = vld [vmem:[%s10048_s6 + $0x1f8] sm:$0xf0]  ;;  %v7393_v32 = vor.u32 %v8502_v27, %v7390_v31 }
 0x8c5   : > { %v4021_v40 = vpack.c.bf16 %v3926_v39, %v3924_v38  ;;  %v7457_v38 = vor.u32 %v8486_v55, %v7454_v4  ;;  %v7444_v39 = vld [vmem:[%s10048_s6 + $0x140] sm:$0xf]  ;;  %v8477_v4 = vld [vmem:[%s10048_s6 + $0x104] sm:$0xf0] }
 0x8c6   : > { %4267 = vmatpush.bf16.msrb.mxu2 %v7453_v5  ;;  %v7412_v55 = vld [vmem:[%s10048_s6 + $0x100] sm:$0xf]  ;;  %v7414_v5 = vld [vmem:[%s10048_s6 + $0x108] sm:$0xf0] }
 0x8c7   : > { %4069 = vmatpush.bf16.msra.mxu3 %v4021_v40  ;;  %v8485_v40 = vld [vmem:[%s10048_s6 + $0x144] sm:$0xf0] }
 0x8cb   : > { %4279 = vmatpush.bf16.msrb.mxu3 %v7473_v24  ;;  %v7421_v24 = vor.u32 %v8479_v17, %v7420_v12 }
 0x8cf   : > { %4280 = vmatpush.bf16.msrb.mxu3 %v7465_v28 }
 0x8d3   : > { %4281 = vmatpush.bf16.msrb.mxu3 %v7457_v38  ;;  %v8500_v38 = vld [vmem:[%s10048_s6 + $0x1c4] sm:$0xf] }
 0x933   : > { %v3973_v21 = vpop.f32.mrf.mxu0 }
 0x934   : > { %v3974_v29 = vadd.f32 %v8815_v57, %v3973_v21  ;;  %v7405_v21 = vor.u32 %v8507_v35, %v7404_v33  ;;  %v8476_v33 = vld [vmem:[%s10048_s6 + $0x104] sm:$0xf] }
 0x935   : > { %v7417_v35 = vor.u32 %v8476_v33, %v7414_v5 }
 0x936   : > { %v3978_v41 = vsel %vm1606_vm7, %v3974_v29, -inf  ;;  %4157 = vmatpush.bf16.msrb.mxu0 %v7405_v21 }
 0x937   : > { %3979 = vmax.xlane.f32.xlu2 %v3978_v41  ;;  %v7446_v41 = vld [vmem:[%s10048_s6 + $0x148] sm:$0xf0] }
 0x93b   : > { %v3975_v42 = vpop.f32.mrf.mxu0 }
 0x93c   : > { %v3976_v43 = vadd.f32 %v8815_v57, %v3975_v42  ;;  %v7445_v42 = vor.u32 %v8485_v40, %v7444_v39  ;;  %v7382_v40 = vld [vmem:[%s10048_s6 + $0x1c8] sm:$0xf0] }
 0x93d   : > { %v7385_v21 = vor.u32 %v8500_v38, %v7382_v40  ;;  %v7720_v38 = vld [vmem:[#allocation5 + $0x3e0] sm:$0xf]  ;;  %v8570_v40 = vld [vmem:[#allocation5 + $0x3ec] sm:$0xf0] }
 0x93e   : > { %v3981_v44 = vsel %vm1606_vm7, %v3976_v43, -inf  ;;  %4268 = vmatpush.bf16.msrb.mxu2 %v7445_v42 }
 0x93f   : > { %3982 = vmax.xlane.f32.xlu0 %v3981_v44 }
 0x940   : > { %v4031_v48 = vpop.f32.mrf.mxu2 }
 0x941   : > { %v4032_v46 = vadd.f32 %v8815_v57, %v4031_v48  ;;  %v7436_v48 = vld [vmem:[%s10048_s6 + $0x130] sm:$0xf] }
 0x943   : > { %v4036_v16 = vsel %vm1606_vm7, %v4032_v46, -inf }
 0x944   : > { %4037 = vmax.xlane.f32.xlu1 %v4036_v16  ;;  %v8482_v16 = vld [vmem:[%s10048_s6 + $0x134] sm:$0xf] }
 0x948   : > { %v4033_v8 = vpop.f32.mrf.mxu2 }
 0x949   : > { %v4034_v50 = vadd.f32 %v8815_v57, %v4033_v8  ;;  %v7409_v57 = vor.u32 %v8506_v36, %v7406_v37  ;;  %v7438_v8 = vld [vmem:[%s10048_s6 + $0x138] sm:$0xf0]  ;;  %v7380_v36 = vld [vmem:[%s10048_s6 + $0x1c0] sm:$0xf]  ;;  %v8501_v37 = vld [vmem:[%s10048_s6 + $0x1c4] sm:$0xf0] }
 0x94a   : > { %v7381_v39 = vor.u32 %v8501_v37, %v7380_v36 }
 0x94b   : > { %v4039_v47 = vsel %vm1606_vm7, %v4034_v50, -inf  ;;  %4171 = vmatpush.bf16.msrb.mxu1 %v7409_v57  ;;  %v7372_v57 = vld [vmem:[%s10048_s6 + $0x1b0] sm:$0xf] }
 0x94c   : > { %4040 = vmax.xlane.f32.xlu2 %v4039_v47 }
 0x94f   : > { %4172 = vmatpush.bf16.msrb.mxu1 %v7401_v13 }
 0x953   : > { %4173 = vmatpush.bf16.msrb.mxu1 %v7393_v32 }
 0x957   : > { %4174 = vmatpush.bf16.msrb.mxu1 %v7385_v21  ;;  %v8536_v21 = vld [vmem:[#allocation5 + $0x2e4] sm:$0xf] }
 0x9aa   : > { %v3980_v30 = vpop.xlane.xlu2 %3979 }
 0x9ab   : > { %v3984_v19 = vsub.f32 %v3974_v29, %v3980_v30  ;;  %v8484_v29 = vld [vmem:[%s10048_s6 + $0x144] sm:$0xf] }
 0x9ac   : > { %v7449_v44 = vor.u32 %v8484_v29, %v7446_v41  ;;  %v8499_v29 = vld [vmem:[%s10048_s6 + $0x1b4] sm:$0xf0]  ;;  %v8498_v41 = vld [vmem:[%s10048_s6 + $0x1b4] sm:$0xf] }
 0x9ad   : > { %v3986_v51 = vmul.f32 1.442695, %v3984_v19  ;;  %v7373_v42 = vor.u32 %v8499_v29, %v7372_v57  ;;  %v7594_v57 = vld [vmem:[#allocation5 + $0x2f0] sm:$0xf0]  ;;  %v7721_v29 = vor.u32 %v8570_v40, %v7720_v38  ;;  %v8520_v40 = vld [vmem:[#allocation5 + $0x264] sm:$0xf] }
 0x9ae   : > { %4282 = vmatpush.bf16.msrb.mxu3 %v7449_v44 }
 0x9af   : > { %8773 = vpow2.f32 %v3986_v51 }
 0x9b2   : > { %v3983_v52 = vpop.xlane.xlu0 %3982 }
 0x9b3   : > { %v3985_v54 = vsub.f32 %v3976_v43, %v3983_v52  ;;  %v7441_v52 = vor.u32 %v8482_v16, %v7438_v8  ;;  %v8496_v16 = vld [vmem:[%s10048_s6 + $0x1a4] sm:$0xf] }
 0x9b5   : > { %v9669_v26 = vpop.eup %8773  ;;  %v3988_v58 = vmul.f32 1.442695, %v3985_v54  ;;  %4283 = vmatpush.bf16.msrb.mxu3 %v7441_v52 }
 0x9b6   : > { %v3990_v59 = vsel %vm1606_vm7, %v9669_v26, 0.0 }
 0x9b7   : > { %8775 = vpow2.f32 %v3988_v58  ;;  %v4038_v60 = vpop.xlane.xlu1 %4037  ;;  %3991 = vadd.xlane.f32.xlu0 %v3990_v59 }
 0x9b8   : > { %v4042_v34 = vsub.f32 %v4032_v46, %v4038_v60  ;;  %v8483_v46 = vld [vmem:[%s10048_s6 + $0x134] sm:$0xf0] }
 0x9b9   : > { %v7437_v19 = vor.u32 %v8483_v46, %v7436_v48  ;;  %v7364_v48 = vld [vmem:[%s10048_s6 + $0x1a0] sm:$0xf]  ;;  %v8497_v46 = vld [vmem:[%s10048_s6 + $0x1a4] sm:$0xf0] }
 0x9ba   : > { %v4044_v3 = vmul.f32 1.442695, %v4042_v34  ;;  %v7365_v8 = vor.u32 %v8497_v46, %v7364_v48  ;;  %v8534_v48 = vld [vmem:[#allocation5 + $0x2cc] sm:$0xf0] }
 0x9bb   : > { %4269 = vmatpush.bf16.msrb.mxu2 %v7437_v19  ;;  %v8495_v19 = vld [vmem:[%s10048_s6 + $0x194] sm:$0xf0]  ;;  %v8566_v46 = vld [vmem:[#allocation5 + $0x3cc] sm:$0xf0] }
 0x9bc   : > { %8777 = vpow2.f32 %v4044_v3 }
 0x9bd   : > { %v8776_v49 = vpop.eup %8775 }
 0x9be   : > { %v3993_v45 = vsel %vm1606_vm7, %v8776_v49, 0.0 }
 0x9bf   : > { %v4041_v7 = vpop.xlane.xlu2 %4040  ;;  %3994 = vadd.xlane.f32.xlu1 %v3993_v45  ;;  %v8481_v45 = vld [vmem:[%s10048_s6 + $0x124] sm:$0xf0] }
 0x9c0   : > { %v4043_v53 = vsub.f32 %v4034_v50, %v4041_v7  ;;  %v8480_v7 = vld [vmem:[%s10048_s6 + $0x124] sm:$0xf] }
 0x9c2   : > { %v9674_v18 = vpop.eup %8777  ;;  %v4046_v9 = vmul.f32 1.442695, %v4043_v53 }
 0x9c3   : > { %v4048_v6 = vsel %vm1606_vm7, %v9674_v18, 0.0 }
 0x9c4   : > { %8779 = vpow2.f32 %v4046_v9  ;;  %4049 = vadd.xlane.f32.xlu2 %v4048_v6  ;;  %v7396_v9 = vld [vmem:[%s10048_s6 + $0x1e0] sm:$0xf]  ;;  %v8505_v6 = vld [vmem:[%s10048_s6 + $0x1e4] sm:$0xf0] }
 0x9ca   : > { %v9678_v2 = vpop.eup %8779 }
 0x9cb   : > { %v4051_v10 = vsel %vm1606_vm7, %v9678_v2, 0.0 }
 0x9cc   : > { %4052 = vadd.xlane.f32.xlu0 %v4051_v10  ;;  %v7397_v10 = vor.u32 %v8505_v6, %v7396_v9 }
 0x9ce   : > { %4158 = vmatpush.bf16.msrb.mxu0 %v7397_v10 }
 0xa2a   : > { %v3992_v23 = vpop.xlane.xlu0 %3991 }
 0xa2b   : > { %8781 = vrcp.f32 %v3992_v23  ;;  %v8503_v23 = vld [vmem:[%s10048_s6 + $0x1d4] sm:$0xf0] }
 0xa2c   : > { %v7389_v28 = vor.u32 %v8503_v23, %v7388_v56 }
 0xa2e   : > { %4159 = vmatpush.bf16.msrb.mxu0 %v7389_v28 }
 0xa31   : > { %v8782_v43 = vpop.eup %8781 }
 0xa32   : > { %v3995_v1 = vpop.xlane.xlu1 %3994  ;;  %v3998_v47 = vmul.f32 %v8782_v43, %v9669_v26  ;;  %4160 = vmatpush.bf16.msrb.mxu0 %v7381_v39  ;;  %v7374_v43 = vld [vmem:[%s10048_s6 + $0x1b8] sm:$0xf0] }
 0xa33   : > { %8783 = vrcp.f32 %v3995_v1  ;;  %v7413_v1 = vor.u32 %v8477_v4, %v7412_v55  ;;  %v7377_v44 = vor.u32 %v8498_v41, %v7374_v43  ;;  %v7597_v41 = vor.u32 %v8536_v21, %v7594_v57  ;;  %v7722_v43 = vld [vmem:[#allocation5 + $0x3f0] sm:$0xf0] }
 0xa34   : > { %v7530_v21 = vld [vmem:[#allocation5 + $0x270] sm:$0xf0] }
 0xa35   : > { %4175 = vmatpush.bf16.msrb.mxu1 %v7377_v44  ;;  %v7576_v44 = vld [vmem:[#allocation5 + $0x2c0] sm:$0xf] }
 0xa36   : > { %4161 = vmatpush.bf16.msrb.mxu0 %v7373_v42  ;;  %v8568_v42 = vld [vmem:[#allocation5 + $0x3e4] sm:$0xf] }
 0xa37   : > { %v4050_v51 = vpop.xlane.xlu2 %4049 }
 0xa38   : > { %8785 = vrcp.f32 %v4050_v51  ;;  %v8494_v51 = vld [vmem:[%s10048_s6 + $0x194] sm:$0xf] }
 0xa39   : > { %v8784_v50 = vpop.eup %8783 }
 0xa3a   : > { %v3999_v30 = vmul.f32 %v8784_v50, %v8776_v49  ;;  %v7428_v49 = vld [vmem:[%s10048_s6 + $0x120] sm:$0xf]  ;;  %v7366_v50 = vld [vmem:[%s10048_s6 + $0x1a8] sm:$0xf0]  ;;  %4162 = vmatpush.bf16.msrb.mxu0 %v7365_v8 }
 0xa3b   : > { %v7429_v53 = vor.u32 %v8481_v45, %v7428_v49 }
 0xa3c   : > { %v4000_v54 = vpack.c.bf16 %v3999_v30, %v3998_v47  ;;  %v7369_v47 = vor.u32 %v8496_v16, %v7366_v50  ;;  %v7356_v30 = vld [vmem:[%s10048_s6 + $0x190] sm:$0xf]  ;;  %v7577_v16 = vor.u32 %v8534_v48, %v7576_v44  ;;  %v8532_v50 = vld [vmem:[#allocation5 + $0x2c4] sm:$0xf]  ;;  %v7512_v44 = vld [vmem:[#allocation5 + $0x240] sm:$0xf] }
 0xa3d   : > { %4270 = vmatpush.bf16.msrb.mxu2 %v7429_v53  ;;  %v7357_v52 = vor.u32 %v8495_v19, %v7356_v30  ;;  %v8564_v30 = vld [vmem:[#allocation5 + $0x3c4] sm:$0xf]  ;;  %v7640_v48 = vld [vmem:[#allocation5 + $0x340] sm:$0xf] }
 0xa3e   : > { %7344 = vmatmul.msk.bf16.vlgmr.msra.gmra.mxu1 %vm1606_vm7, %v4000_v54  ;;  %v8786_v59 = vpop.eup %8785  ;;  %v7358_v54 = vld [vmem:[%s10048_s6 + $0x198] sm:$0xf0] }
 0xa3f   : > { %v4053_v58 = vpop.xlane.xlu0 %4052  ;;  %v4056_v34 = vmul.f32 %v8786_v59, %v9674_v18  ;;  %v7430_v18 = vld [vmem:[%s10048_s6 + $0x128] sm:$0xf0]  ;;  %4176 = vmatpush.bf16.msrb.mxu1 %v7369_v47  ;;  %4163 = vmatpush.bf16.msrb.mxu0 %v7357_v52  ;;  %v7348_v59 = vld [vmem:[%s10048_s6 + $0x180] sm:$0xf]  ;;  %v7578_v47 = vld [vmem:[#allocation5 + $0x2d0] sm:$0xf0] }
 0xa40   : > { %8787 = vrcp.f32 %v4053_v58  ;;  %v7361_v58 = vor.u32 %v8494_v51, %v7358_v54  ;;  %v7581_v19 = vor.u32 %v8532_v50, %v7578_v47  ;;  %v7706_v51 = vld [vmem:[#allocation5 + $0x3d0] sm:$0xf0] }
 0xa41   : > { %4271 = vmatpush.bf16.msrb.mxu2 %v7421_v24  ;;  %v7709_v52 = vor.u32 %v8564_v30, %v7706_v51  ;;  %v8548_v30 = vld [vmem:[#allocation5 + $0x344] sm:$0xf] }
 0xa43   : > { %4177 = vmatpush.bf16.msrb.mxu1 %v7361_v58 }
 0xa45   : > { %4272 = vmatpush.bf16.msrb.mxu2 %v7413_v1 }
 0xa46   : > { %v8788_v60 = vpop.eup %8787 }
 0xa47   : > { %v4057_v26 = vmul.f32 %v8788_v60, %v9678_v2  ;;  %v7433_v2 = vor.u32 %v8480_v7, %v7430_v18  ;;  %v8493_v60 = vld [vmem:[%s10048_s6 + $0x184] sm:$0xf0] }
 0xa49   : > { %v4058_v3 = vpack.c.bf16 %v4057_v26, %v4056_v34  ;;  %4284 = vmatpush.bf16.msrb.mxu3 %v7433_v2  ;;  %v8492_v34 = vld [vmem:[%s10048_s6 + $0x184] sm:$0xf]  ;;  %v7349_v26 = vor.u32 %v8493_v60, %v7348_v59  ;;  %4806 = vmatpush.bf16.msra.mxu2 %v7597_v41 }
 0xa4a   : > { %v8552_v41 = vld [vmem:[#allocation5 + $0x364] sm:$0xf] }
 0xa4b   : > { %7345 = vmatmul.msk.bf16.vlgmr.msra.gmra.mxu3 %vm1606_vm7, %v4058_v3  ;;  %v7350_v3 = vld [vmem:[%s10048_s6 + $0x188] sm:$0xf0]  ;;  %4164 = vmatpush.bf16.msrb.mxu0 %v7349_v26 }
 0xa4c   : > { %v7353_v49 = vor.u32 %v8492_v34, %v7350_v3 }
 0xa4d   : > { %4285 = vmatpush.bf16.msrb.mxu3 %v7425_v22  ;;  %4807 = vmatpush.bf16.msra.mxu2 %v7581_v19  ;;  %v7642_v19 = vld [vmem:[#allocation5 + $0x350] sm:$0xf0] }
 0xa4e   : > { %4178 = vmatpush.bf16.msrb.mxu1 %v7353_v49  ;;  %v7645_v51 = vor.u32 %v8548_v30, %v7642_v19 }
 0xa51   : > { %4286 = vmatpush.bf16.msrb.mxu3 %v7417_v35 }
 0xa52   : > { %4792 = vmatpush.bf16.msra.mxu1 %v7721_v29  ;;  %v7533_v29 = vor.u32 %v8520_v40, %v7530_v21  ;;  %v8567_v40 = vld [vmem:[#allocation5 + $0x3d4] sm:$0xf0]  ;;  %v8533_v21 = vld [vmem:[#allocation5 + $0x2cc] sm:$0xf] }
 0xabb   : > { %v4013_v45 = vpop.f32.mrf.mxu1 }
 0xac3   : > { %v4015_v7 = vpop.f32.mrf.mxu1 }
 0xac4   : > { %v4018_v53 = vpack.c.bf16 %v4015_v7, %v4013_v45 }
 0xac6   : > { %4273 = vmatmul.bf16.vlgmr.msrb.gmra.mxu2 %v4018_v53  ;;  %4287 = vmatmul.bf16.vlgmr.msrb.gmra.mxu3 %v4018_v53 }
 0xace   : > { %v4071_v18 = vpop.f32.mrf.mxu3 }
 0xad6   : > { %v4073_v9 = vpop.f32.mrf.mxu3 }
 0xad7   : > { %v4076_v6 = vpack.c.bf16 %v4073_v9, %v4071_v18 }
 0xad9   : > { %4165 = vmatmul.bf16.vlgmr.msrb.gmra.mxu0 %v4076_v6  ;;  %4179 = vmatmul.bf16.vlgmr.msrb.gmra.mxu1 %v4076_v6 }
 0xb49   : > { %v4274_v2 = vpop.f32.mrf.mxu2  ;;  %v4288_v10 = vpop.f32.mrf.mxu3 }
 0xb51   : > { %v4276_v27 = vpop.f32.mrf.mxu2  ;;  %v4290_v28 = vpop.f32.mrf.mxu3 }
 0xb56   : > { %v4166_v25 = vpop.f32.mrf.mxu0  ;;  %v4180_v12 = vpop.f32.mrf.mxu1 }
 0xb57   : > { %v4275_v13 = vadd.f32 %v4274_v2, %v4166_v25  ;;  %v4289_v17 = vadd.f32 %v4288_v10, %v4180_v12  ;;  %v7560_v2 = vld [vmem:[#allocation5 + $0x2a0] sm:$0xf]  ;;  %v8530_v10 = vld [vmem:[#allocation5 + $0x2ac] sm:$0xf0] }
 0xb58   : > { %v7561_v25 = vor.u32 %v8530_v10, %v7560_v2  ;;  %v8562_v12 = vld [vmem:[#allocation5 + $0x3ac] sm:$0xf0]  ;;  %v7480_v10 = vld [vmem:[#allocation5 + $0x200] sm:$0xf] }
 0xb59   : > { %v4293_v24 = vadd.f32 %v4275_v13, %v9633_v61  ;;  %v4294_v22 = vadd.f32 %v4289_v17, %v9635_v62  ;;  %v7592_v61 = vld [vmem:[#allocation5 + $0x2e0] sm:$0xf]  ;;  %v8538_v62 = vld [vmem:[#allocation5 + $0x2ec] sm:$0xf0]  ;;  %v8528_v13 = vld [vmem:[#allocation5 + $0x2a4] sm:$0xf] }
 0xb5a   : > { %v7593_v39 = vor.u32 %v8538_v62, %v7592_v61  ;;  %v7562_v17 = vld [vmem:[#allocation5 + $0x2b0] sm:$0xf0]  ;;  %v8522_v61 = vld [vmem:[#allocation5 + $0x26c] sm:$0xf0]  ;;  %v7656_v62 = vld [vmem:[#allocation5 + $0x360] sm:$0xf] }
 0xb5b   : > { %v4304_v56 = vadd.f32 %v4300_v15, %v4293_v24  ;;  %v4305_v23 = vadd.f32 %v4301_v14, %v4294_v22  ;;  %v8560_v24 = vld [vmem:[#allocation5 + $0x3a4] sm:$0xf]  ;;  %v7690_v22 = vld [vmem:[#allocation5 + $0x3b0] sm:$0xf0] }
 0xb5c   : > { %4778 = vmatpush.bf16.msra.mxu0 %v7593_v39  ;;  %v8554_v39 = vld [vmem:[#allocation5 + $0x36c] sm:$0xf0] }
 0xb5d   : > { %v4312_v31 = vadd.f32 %v4305_v23, %v4304_v56  ;;  %v7657_v57 = vor.u32 %v8554_v39, %v7656_v62  ;;  %v7712_v39 = vld [vmem:[#allocation5 + $0x3c8] sm:$0xf] }
 0xb5e   : > { %v4168_v32 = vpop.f32.mrf.mxu0  ;;  %v4182_v55 = vpop.f32.mrf.mxu1 }
 0xb5f   : > { %v4277_v4 = vadd.f32 %v4276_v27, %v4168_v32  ;;  %v4291_v33 = vadd.f32 %v4290_v28, %v4182_v55  ;;  %4313 = vadd.xlane.f32.xlu1 %v4312_v31  ;;  %v8526_v27 = vld [vmem:[#allocation5 + $0x28c] sm:$0xf0]  ;;  %v7672_v28 = vld [vmem:[#allocation5 + $0x380] sm:$0xf]  ;;  %v8524_v55 = vld [vmem:[#allocation5 + $0x284] sm:$0xf] }
 0xb60   : > { %4779 = vmatpush.bf16.msra.mxu0 %v7577_v16  ;;  %v8558_v32 = vld [vmem:[#allocation5 + $0x38c] sm:$0xf0]  ;;  %v8516_v16 = vld [vmem:[#allocation5 + $0x244] sm:$0xf] }
 0xb61   : > { %v4295_v1 = vadd.f32 %v4277_v4, %v9637_v20  ;;  %v4296_v5 = vadd.f32 %v4291_v33, %v9639_v0  ;;  %v7725_v20 = vor.u32 %v8568_v42, %v7722_v43  ;;  %v7704_v0 = vld [vmem:[#allocation5 + $0x3c0] sm:$0xf]  ;;  %v7546_v4 = vld [vmem:[#allocation5 + $0x290] sm:$0xf0]  ;;  %v7673_v33 = vor.u32 %v8558_v32, %v7672_v28  ;;  %v8539_v28 = vld [vmem:[#allocation5 + $0x2f4] sm:$0xf0] }
 0xb62   : > { %v7705_v8 = vor.u32 %v8566_v46, %v7704_v0  ;;  %v7658_v42 = vld [vmem:[#allocation5 + $0x370] sm:$0xf0]  ;;  %v8550_v46 = vld [vmem:[#allocation5 + $0x34c] sm:$0xf0]  ;;  %v8571_v32 = vld [vmem:[#allocation5 + $0x3f4] sm:$0xf0] }
 0xb63   : > { %v4306_v35 = vadd.f32 %v4300_v15, %v4295_v1  ;;  %v4307_v36 = vadd.f32 %v4301_v14, %v4296_v5  ;;  %4820 = vmatpush.bf16.msra.mxu3 %v7725_v20  ;;  %v7689_v15 = vor.u32 %v8562_v12, %v7688_v11  ;;  %v7565_v14 = vor.u32 %v8528_v13, %v7562_v17  ;;  %v8556_v5 = vld [vmem:[#allocation5 + $0x384] sm:$0xf]  ;;  %v8518_v20 = vld [vmem:[#allocation5 + $0x24c] sm:$0xf0] }
 0xb64   : > { %4793 = vmatpush.bf16.msra.mxu1 %v7705_v8  ;;  %4780 = vmatpush.bf16.msra.mxu0 %v7561_v25  ;;  %v7549_v1 = vor.u32 %v8524_v55, %v7546_v4  ;;  %v7661_v43 = vor.u32 %v8552_v41, %v7658_v42  ;;  %v7513_v0 = vor.u32 %v8518_v20, %v7512_v44  ;;  %v7514_v8 = vld [vmem:[#allocation5 + $0x250] sm:$0xf0]  ;;  %v8510_v11 = vld [vmem:[#allocation5 + $0x20c] sm:$0xf0]  ;;  %v7608_v25 = vld [vmem:[#allocation5 + $0x300] sm:$0xf] }
 0xb65   : > { %v4315_v37 = vadd.f32 %v4307_v36, %v4306_v35  ;;  %4808 = vmatpush.bf16.msra.mxu2 %v7565_v14  ;;  %v7641_v50 = vor.u32 %v8550_v46, %v7640_v48  ;;  %v7517_v47 = vor.u32 %v8516_v16, %v7514_v8  ;;  %v7481_v12 = vor.u32 %v8510_v11, %v7480_v10  ;;  %v8542_v13 = vld [vmem:[#allocation5 + $0x30c] sm:$0xf0]  ;;  %v8508_v17 = vld [vmem:[#allocation5 + $0x204] sm:$0xf]  ;;  %v8565_v41 = vld [vmem:[#allocation5 + $0x3cc] sm:$0xf] }
 0xb66   : > { %v7609_v14 = vor.u32 %v8542_v13, %v7608_v25  ;;  %v7714_v42 = vld [vmem:[#allocation5 + $0x3d8] sm:$0xf0]  ;;  %v7568_v20 = vld [vmem:[#allocation5 + $0x2a8] sm:$0xf]  ;;  %v8531_v48 = vld [vmem:[#allocation5 + $0x2b4] sm:$0xf0] }
 0xb67   : > { %4316 = vadd.xlane.f32.xlu2 %v4315_v37  ;;  %4821 = vmatpush.bf16.msra.mxu3 %v7709_v52  ;;  %v7528_v37 = vld [vmem:[#allocation5 + $0x260] sm:$0xf]  ;;  %v7717_v44 = vor.u32 %v8565_v41, %v7714_v42  ;;  %v7569_v46 = vor.u32 %v8531_v48, %v7568_v20  ;;  %v8563_v16 = vld [vmem:[#allocation5 + $0x3b4] sm:$0xf0]  ;;  %v8529_v8 = vld [vmem:[#allocation5 + $0x2ac] sm:$0xf] }
 0xb68   : > { %4794 = vmatpush.bf16.msra.mxu1 %v7689_v15  ;;  %v7529_v38 = vor.u32 %v8522_v61, %v7528_v37  ;;  %v7496_v52 = vld [vmem:[#allocation5 + $0x220] sm:$0xf]  ;;  %v7482_v15 = vld [vmem:[#allocation5 + $0x210] sm:$0xf0]  ;;  %v7584_v37 = vld [vmem:[#allocation5 + $0x2c8] sm:$0xf] }
 0xb69   : > { %4809 = vmatpush.bf16.msra.mxu2 %v7549_v1  ;;  %v7602_v1 = vld [vmem:[#allocation5 + $0x2f8] sm:$0xf0]  ;;  %v8535_v61 = vld [vmem:[#allocation5 + $0x2d4] sm:$0xf0]  ;;  %v8557_v10 = vld [vmem:[#allocation5 + $0x38c] sm:$0xf] }
 0xb6a   : > { %v7682_v11 = vld [vmem:[#allocation5 + $0x398] sm:$0xf0]  ;;  %v7536_v13 = vld [vmem:[#allocation5 + $0x268] sm:$0xf]  ;;  %v8515_v42 = vld [vmem:[#allocation5 + $0x234] sm:$0xf0] }
 0xb6b   : > { %v8513_v48 = vld [vmem:[#allocation5 + $0x22c] sm:$0xf] }
 0xb6c   : > { %4795 = vmatpush.bf16.msra.mxu1 %v7673_v33  ;;  %v8537_v33 = vld [vmem:[#allocation5 + $0x2ec] sm:$0xf] }
 0xb6d   : > { %4810 = vmatpush.bf16.msra.mxu2 %v7533_v29  ;;  %v7586_v29 = vld [vmem:[#allocation5 + $0x2d8] sm:$0xf0] }
 0xb70   : > { %4796 = vmatpush.bf16.msra.mxu1 %v7657_v57  ;;  %v7713_v57 = vor.u32 %v8567_v40, %v7712_v39 }
 0xb71   : > { %4811 = vmatpush.bf16.msra.mxu2 %v7517_v47 }
 0xb74   : > { %4797 = vmatpush.bf16.msra.mxu1 %v7641_v50  ;;  %v7570_v50 = vld [vmem:[#allocation5 + $0x2b8] sm:$0xf0] }
 0xb75   : > { %v7573_v19 = vor.u32 %v8529_v8, %v7570_v50  ;;  %v7634_v8 = vld [vmem:[#allocation5 + $0x338] sm:$0xf0] }
 0xbd2   : > { %v4314_v54 = vpop.xlane.xlu1 %4313 }
 0xbd3   : > { %v4318_v58 = vmul.f32 %v4314_v54, %v9165_v63  ;;  %v8514_v54 = vld [vmem:[#allocation5 + $0x22c] sm:$0xf0] }
 0xbd5   : > { %v9887_v59 = vsub.f32 %v4304_v56, %v4318_v58  ;;  %v9889_v60 = vsub.f32 %v4305_v23, %v4318_v58  ;;  %v7693_v56 = vor.u32 %v8560_v24, %v7690_v22  ;;  %v7544_v23 = vld [vmem:[#allocation5 + $0x280] sm:$0xf]  ;;  %v7485_v24 = vor.u32 %v8508_v17, %v7482_v15  ;;  %v8540_v22 = vld [vmem:[#allocation5 + $0x304] sm:$0xf]  ;;  %v8523_v17 = vld [vmem:[#allocation5 + $0x274] sm:$0xf0] }
 0xbd6   : > { %v7545_v31 = vor.u32 %v8526_v27, %v7544_v23  ;;  %v7624_v58 = vld [vmem:[#allocation5 + $0x320] sm:$0xf]  ;;  %v7600_v23 = vld [vmem:[#allocation5 + $0x2e8] sm:$0xf] }
 0xbd7   : > { %v4324_v34 = vmul.f32 %v9887_v59, %v9887_v59  ;;  %v4325_v26 = vmul.f32 %v9889_v60, %v9889_v60  ;;  %4822 = vmatpush.bf16.msra.mxu3 %v7693_v56  ;;  %v7610_v56 = vld [vmem:[#allocation5 + $0x310] sm:$0xf0]  ;;  %v7601_v55 = vor.u32 %v8539_v28, %v7600_v23  ;;  %v7664_v15 = vld [vmem:[#allocation5 + $0x368] sm:$0xf] }
 0xbd8   : > { %4781 = vmatpush.bf16.msra.mxu0 %v7545_v31  ;;  %v7613_v27 = vor.u32 %v8540_v22, %v7610_v56  ;;  %v7728_v31 = vld [vmem:[#allocation5 + $0x3e8] sm:$0xf]  ;;  %v8521_v22 = vld [vmem:[#allocation5 + $0x26c] sm:$0xf]  ;;  %v7538_v56 = vld [vmem:[#allocation5 + $0x278] sm:$0xf0] }
 0xbd9   : > { %v4328_v3 = vadd.f32 %v4325_v26, %v4324_v34  ;;  %v7497_v34 = vor.u32 %v8514_v54, %v7496_v52  ;;  %v8546_v26 = vld [vmem:[#allocation5 + $0x32c] sm:$0xf0]  ;;  %v7729_v4 = vor.u32 %v8571_v32, %v7728_v31  ;;  %v7698_v52 = vld [vmem:[#allocation5 + $0x3b8] sm:$0xf0]  ;;  %v7541_v28 = vor.u32 %v8521_v22, %v7538_v56  ;;  %v8553_v31 = vld [vmem:[#allocation5 + $0x36c] sm:$0xf] }
 0xbda   : > { %v4317_v49 = vpop.xlane.xlu2 %4316  ;;  %v7666_v32 = vld [vmem:[#allocation5 + $0x378] sm:$0xf0]  ;;  %v7476_v56 = vld [vmem:[%s10051_s9 + $0x2] sm:$0x3] }
 0xbdb   : > { %v4319_v45 = vmul.f32 %v4317_v49, %v9165_v63  ;;  %4329 = vadd.xlane.f32.xlu0 %v4328_v3  ;;  %v8512_v3 = vld [vmem:[#allocation5 + $0x224] sm:$0xf]  ;;  %v7498_v49 = vld [vmem:[#allocation5 + $0x230] sm:$0xf0] }
 0xbdc   : > { %4782 = vmatpush.bf16.msra.mxu0 %v7529_v38  ;;  %v7585_v38 = vor.u32 %v8535_v61, %v7584_v37  ;;  %v7522_v37 = vld [vmem:[#allocation5 + $0x258] sm:$0xf0]  ;;  %v8549_v61 = vld [vmem:[#allocation5 + $0x34c] sm:$0xf] }
 0xbdd   : > { %v9896_v7 = vsub.f32 %v4306_v35, %v4319_v45  ;;  %v9898_v53 = vsub.f32 %v4307_v36, %v4319_v45  ;;  %v7674_v35 = vld [vmem:[#allocation5 + $0x390] sm:$0xf0]  ;;  %v7625_v45 = vor.u32 %v8546_v26, %v7624_v58  ;;  %v8527_v26 = vld [vmem:[#allocation5 + $0x294] sm:$0xf0] }
 0xbde   : > { %v7677_v36 = vor.u32 %v8556_v5, %v7674_v35  ;;  %v8569_v5 = vld [vmem:[#allocation5 + $0x3ec] sm:$0xf]  ;;  %v7605_v35 = vor.u32 %v8537_v33, %v7602_v1  ;;  %v7669_v33 = vor.u32 %v8553_v31, %v7666_v32  ;;  %v8519_v1 = vld [vmem:[#allocation5 + $0x254] sm:$0xf0]  ;;  %v4372_v32 = vperm.slane %v7476_v56, 0 }
 0xbdf   : > { %v4326_v18 = vmul.f32 %v9896_v7, %v9896_v7  ;;  %v4327_v9 = vmul.f32 %v9898_v53, %v9898_v53  ;;  %4798 = vmatpush.bf16.msra.mxu1 %v7625_v45 }
 0xbe0   : > { %4823 = vmatpush.bf16.msra.mxu3 %v7677_v36  ;;  %4783 = vmatpush.bf16.msra.mxu0 %v7513_v0  ;;  %v7730_v36 = vld [vmem:[#allocation5 + $0x3f8] sm:$0xf0]  ;;  %v7696_v0 = vld [vmem:[#allocation5 + $0x3a8] sm:$0xf] }
 0xbe1   : > { %v4331_v6 = vadd.f32 %v4327_v9, %v4326_v18  ;;  %v7501_v18 = vor.u32 %v8512_v3, %v7498_v49  ;;  %v8544_v9 = vld [vmem:[#allocation5 + $0x324] sm:$0xf]  ;;  %v7733_v62 = vor.u32 %v8569_v5, %v7730_v36  ;;  %v7697_v30 = vor.u32 %v8563_v16, %v7696_v0  ;;  %v7680_v3 = vld [vmem:[#allocation5 + $0x388] sm:$0xf]  ;;  %v8517_v36 = vld [vmem:[#allocation5 + $0x24c] sm:$0xf] }
 0xbe2   : > { %v7648_v5 = vld [vmem:[#allocation5 + $0x348] sm:$0xf]  ;;  %v7525_v41 = vor.u32 %v8517_v36, %v7522_v37  ;;  %v7506_v0 = vld [vmem:[#allocation5 + $0x238] sm:$0xf0]  ;;  %v8545_v16 = vld [vmem:[#allocation5 + $0x32c] sm:$0xf] }
 0xbe3   : > { %4332 = vadd.xlane.f32.xlu1 %v4331_v6  ;;  %v7626_v6 = vld [vmem:[#allocation5 + $0x330] sm:$0xf0]  ;;  %4812 = vmatpush.bf16.msra.mxu2 %v7501_v18  ;;  %v8559_v18 = vld [vmem:[#allocation5 + $0x394] sm:$0xf0] }
 0xbe4   : > { %4824 = vmatpush.bf16.msra.mxu3 %v7661_v43  ;;  %4784 = vmatpush.bf16.msra.mxu0 %v7497_v34  ;;  %v7629_v2 = vor.u32 %v8544_v9, %v7626_v6  ;;  %v7589_v43 = vor.u32 %v8533_v21, %v7586_v29  ;;  %v7552_v34 = vld [vmem:[#allocation5 + $0x288] sm:$0xf]  ;;  %v8525_v9 = vld [vmem:[#allocation5 + $0x28c] sm:$0xf]  ;;  %v7681_v6 = vor.u32 %v8559_v18, %v7680_v3  ;;  %v7650_v21 = vld [vmem:[#allocation5 + $0x358] sm:$0xf0] }
 0xbe5   : > { %4799 = vmatpush.bf16.msra.mxu1 %v7609_v14  ;;  %v7553_v45 = vor.u32 %v8527_v26, %v7552_v34  ;;  %v7537_v14 = vor.u32 %v8523_v17, %v7536_v13  ;;  %v7653_v20 = vor.u32 %v8549_v61, %v7650_v21  ;;  %v7637_v34 = vor.u32 %v8545_v16, %v7634_v8  ;;  %v8509_v26 = vld [vmem:[#allocation5 + $0x20c] sm:$0xf]  ;;  %v7490_v3 = vld [vmem:[#allocation5 + $0x218] sm:$0xf0]  ;;  %v7793_v61 = vld [vmem:[#allocation7 + $0x270] sm:$0xf] }
 0xbe6   : > { %v8541_v18 = vld [vmem:[#allocation5 + $0x30c] sm:$0xf]  ;;  %v7769_v8 = vld [vmem:[#allocation7 + $0x240] sm:$0xf] }
 0xbe7   : > { %4813 = vmatpush.bf16.msra.mxu2 %v7485_v24  ;;  %v8555_v24 = vld [vmem:[#allocation5 + $0x374] sm:$0xf0] }
 0xbe8   : > { %4825 = vmatpush.bf16.msra.mxu3 %v7645_v51  ;;  %4785 = vmatpush.bf16.msra.mxu0 %v7481_v12  ;;  %v8561_v51 = vld [vmem:[#allocation5 + $0x3ac] sm:$0xf]  ;;  %v7685_v12 = vor.u32 %v8557_v10, %v7682_v11 }
 0xbe9   : > { %4848 = vmatpush.bf16.msrb.mxu1 %v7729_v4  ;;  %v7701_v58 = vor.u32 %v8561_v51, %v7698_v52  ;;  %v7509_v52 = vor.u32 %v8513_v48, %v7506_v0  ;;  %v7849_v0 = vld [vmem:[#allocation7 + $0x2e0] sm:$0xf] }
 0xbeb   : > { %4862 = vmatpush.bf16.msrb.mxu2 %v7605_v35  ;;  %v8551_v35 = vld [vmem:[#allocation5 + $0x354] sm:$0xf0] }
 0xbec   : > { %4826 = vmatpush.bf16.msra.mxu3 %v7629_v2  ;;  %4834 = vmatpush.bf16.msrb.mxu0 %v7601_v55  ;;  %v7554_v2 = vld [vmem:[#allocation5 + $0x298] sm:$0xf0]  ;;  %v7520_v55 = vld [vmem:[#allocation5 + $0x248] sm:$0xf]  ;;  %v7649_v40 = vor.u32 %v8551_v35, %v7648_v5 }
 0xbed   : > { %4849 = vmatpush.bf16.msrb.mxu1 %v7713_v57  ;;  %v7557_v25 = vor.u32 %v8525_v9, %v7554_v2  ;;  %v7521_v39 = vor.u32 %v8519_v1, %v7520_v55  ;;  %v7504_v57 = vld [vmem:[#allocation5 + $0x228] sm:$0xf]  ;;  %v7618_v9 = vld [vmem:[#allocation5 + $0x318] sm:$0xf0]  ;;  %v4373_v55 = vperm.slane %v7476_v56, 1 }
 0xbee   : > { %v7505_v50 = vor.u32 %v8515_v42, %v7504_v57  ;;  %v7621_v13 = vor.u32 %v8541_v18, %v7618_v9  ;;  %v8603_v42 = vld [vmem:[#allocation7 + $0x2f4] sm:$0xf0]  ;;  %v8597_v18 = vld [vmem:[#allocation7 + $0x2c4] sm:$0xf0]  ;;  %v7745_v56 = vld [vmem:[#allocation7 + $0x210] sm:$0xf] }
 0xbef   : > { %4863 = vmatpush.bf16.msrb.mxu2 %v7589_v43  ;;  %v7632_v43 = vld [vmem:[#allocation5 + $0x328] sm:$0xf] }
 0xbf0   : > { %4827 = vmatpush.bf16.msra.mxu3 %v7613_v27  ;;  %4835 = vmatpush.bf16.msrb.mxu0 %v7585_v38  ;;  %v7665_v27 = vor.u32 %v8555_v24, %v7664_v15  ;;  %v7475_v15 = vld [vmem:[%s10050_s8 + $0x2] sm:$0x3] }
 0xbf1   : > { %4850 = vmatpush.bf16.msrb.mxu1 %v7697_v30  ;;  %v7488_v30 = vld [vmem:[#allocation5 + $0x208] sm:$0xf] }
 0xbf3   : > { %4864 = vmatpush.bf16.msrb.mxu2 %v7573_v19  ;;  %v8511_v19 = vld [vmem:[#allocation5 + $0x214] sm:$0xf0] }
 0xbf4   : > { %4876 = vmatpush.bf16.msrb.mxu3 %v7733_v62  ;;  %4836 = vmatpush.bf16.msrb.mxu0 %v7569_v46  ;;  %v7489_v2 = vor.u32 %v8511_v19, %v7488_v30  ;;  %v7841_v30 = vld [vmem:[#allocation7 + $0x2d0] sm:$0xf]  ;;  %v8599_v19 = vld [vmem:[#allocation7 + $0x2d4] sm:$0xf0] }
 0xbf5   : > { %4851 = vmatpush.bf16.msrb.mxu1 %v7681_v6 }
 0xbf7   : > { %4865 = vmatpush.bf16.msrb.mxu2 %v7557_v25 }
 0xbf8   : > { %4877 = vmatpush.bf16.msrb.mxu3 %v7717_v44  ;;  %4837 = vmatpush.bf16.msrb.mxu0 %v7553_v45  ;;  %v8547_v44 = vld [vmem:[#allocation5 + $0x334] sm:$0xf0] }
 0xbf9   : > { %4852 = vmatpush.bf16.msrb.mxu1 %v7665_v27 }
 0xbfb   : > { %4866 = vmatpush.bf16.msrb.mxu2 %v7541_v28 }
 0xbfc   : > { %4878 = vmatpush.bf16.msrb.mxu3 %v7701_v58  ;;  %4838 = vmatpush.bf16.msrb.mxu0 %v7537_v14  ;;  %v8543_v58 = vld [vmem:[#allocation5 + $0x314] sm:$0xf0] }
 0xbfd   : > { %4853 = vmatpush.bf16.msrb.mxu1 %v7649_v40 }
 0xbff   : > { %4867 = vmatpush.bf16.msrb.mxu2 %v7525_v41  ;;  %v8585_v41 = vld [vmem:[#allocation7 + $0x264] sm:$0xf0] }
 0xc00   : > { %4879 = vmatpush.bf16.msrb.mxu3 %v7685_v12  ;;  %4839 = vmatpush.bf16.msrb.mxu0 %v7521_v39  ;;  %v7493_v12 = vor.u32 %v8509_v26, %v7490_v3  ;;  %v8619_v26 = vld [vmem:[#allocation7 + $0x374] sm:$0xf0] }
 0xc03   : > { %4868 = vmatpush.bf16.msrb.mxu2 %v7509_v52  ;;  %v7761_v52 = vld [vmem:[#allocation7 + $0x230] sm:$0xf] }
 0xc04   : > { %4880 = vmatpush.bf16.msrb.mxu3 %v7669_v33  ;;  %4840 = vmatpush.bf16.msrb.mxu0 %v7505_v50  ;;  %v8581_v50 = vld [vmem:[#allocation7 + $0x244] sm:$0xf0] }
 0xc07   : > { %4869 = vmatpush.bf16.msrb.mxu2 %v7493_v12 }
 0xc08   : > { %4881 = vmatpush.bf16.msrb.mxu3 %v7653_v20  ;;  %4841 = vmatpush.bf16.msrb.mxu0 %v7489_v2  ;;  %v8583_v20 = vld [vmem:[#allocation7 + $0x254] sm:$0xf0]  ;;  %v8577_v2 = vld [vmem:[#allocation7 + $0x224] sm:$0xf0] }
 0xc0c   : > { %4882 = vmatpush.bf16.msrb.mxu3 %v7637_v34 }
 0xc10   : > { %4883 = vmatpush.bf16.msrb.mxu3 %v7621_v13  ;;  %v7825_v13 = vld [vmem:[#allocation7 + $0x2b0] sm:$0xf] }
 0xc4e   : > { %v4330_v47 = vpop.xlane.xlu0 %4329 }
 0xc4f   : > { %v4334_v54 = vmul.f32 %v4330_v47, %v9165_v63  ;;  %v7633_v47 = vor.u32 %v8547_v44, %v7632_v43  ;;  %v7777_v44 = vld [vmem:[#allocation7 + $0x250] sm:$0xf] }
 0xc50   : > { %v7778_v48 = vor.u32 %v8583_v20, %v7777_v44  ;;  %v8611_v44 = vld [vmem:[#allocation7 + $0x334] sm:$0xf0]  ;;  %v9935_v20 = vld [vmem:[%s10053_s11 + $0x4] sm:$0xf] }
 0xc51   : > { %v9905_v49 = vadd.f32 1e-12, %v4334_v54  ;;  %v7616_v54 = vld [vmem:[#allocation5 + $0x308] sm:$0xf]  ;;  %4854 = vmatpush.bf16.msrb.mxu1 %v7633_v47  ;;  %v7770_v47 = vor.u32 %v8581_v50, %v7769_v8  ;;  %v7801_v8 = vld [vmem:[#allocation7 + $0x280] sm:$0xf] }
 0xc52   : > { %v7617_v10 = vor.u32 %v8543_v58, %v7616_v54  ;;  %v8579_v54 = vld [vmem:[#allocation7 + $0x234] sm:$0xf0]  ;;  %v7921_v58 = vld [vmem:[#allocation7 + $0x370] sm:$0xf]  ;;  %v8589_v50 = vld [vmem:[#allocation7 + $0x284] sm:$0xf0] }
 0xc53   : > { %8789 = vrsqrt.f32 %v9905_v49  ;;  %vm4344_vm5 = vweird.f32 %v9905_v49  ;;  %v7762_v34 = vor.u32 %v8579_v54, %v7761_v52  ;;  %v7922_v3 = vor.u32 %v8619_v26, %v7921_v58  ;;  %v7859_v52 = vld [vmem:[#allocation7 + $0x2f8] sm:$0xf0]  ;;  %v8609_v26 = vld [vmem:[#allocation7 + $0x324] sm:$0xf0] }
 0xc55   : > { %4855 = vmatpush.bf16.msrb.mxu1 %v7617_v10  ;;  %v7913_v10 = vld [vmem:[#allocation7 + $0x360] sm:$0xf] }
 0xc56   : > { %v4333_v23 = vpop.xlane.xlu1 %4332 }
 0xc57   : > { %v4335_v4 = vmul.f32 %v4333_v23, %v9165_v63  ;;  %v4363_v23 = vperm.slane %v7475_v15, 0 }
 0xc59   : > { %v8790_v62 = vpop.eup %8789  ;;  %v9909_v38 = vadd.f32 1e-12, %v4335_v4 }
 0xc5a   : > { %v4339_v29 = vmul.f32 %v8790_v62, %v9905_v49  ;;  %vm4345_vm4 = vweird.f32 %v8790_v62  ;;  %v4364_v49 = vperm.slane %v7475_v15, 1  ;;  %v7985_v15 = vld [vmem:[#allocation7 + $0x3f0] sm:$0xf] }
 0xc5b   : > { %8791 = vrsqrt.f32 %v9909_v38  ;;  %vm4346_vm6 = vmor %vm4344_vm5, %vm4345_vm4  ;;  %vm4354_vm8 = vweird.f32 %v9909_v38 }
 0xc5c   : > { %v4340_v46 = vmul.f32 %v8790_v62, %v4339_v29  ;;  %v7785_v29 = vld [vmem:[#allocation7 + $0x260] sm:$0xf] }
 0xc5e   : > { %v4341_v51 = vmul.f32 0.5, %v4340_v46  ;;  %v8601_v46 = vld [vmem:[#allocation7 + $0x2e4] sm:$0xf0] }
 0xc5f   : > { %v7850_v16 = vor.u32 %v8601_v46, %v7849_v0  ;;  %v8584_v0 = vld [vmem:[#allocation7 + $0x264] sm:$0xf]  ;;  %v7787_v46 = vld [vmem:[#allocation7 + $0x268] sm:$0xf0] }
 0xc60   : > { %v4342_v45 = vsub.f32 1.5, %v4341_v51  ;;  %v7842_v51 = vor.u32 %v8599_v19, %v7841_v30  ;;  %v7802_v30 = vor.u32 %v8589_v50, %v7801_v8  ;;  %v8629_v19 = vld [vmem:[#allocation7 + $0x3c4] sm:$0xf0] }
 0xc61   : > { %v8792_v6 = vpop.eup %8791 }
 0xc62   : > { %v4343_v11 = vmul.f32 %v8790_v62, %v4342_v45  ;;  %v4349_v25 = vmul.f32 %v8792_v6, %v9909_v38  ;;  %vm4355_vm7 = vweird.f32 %v8792_v6  ;;  %v7833_v45 = vld [vmem:[#allocation7 + $0x2c0] sm:$0xf] }
 0xc63   : > { %vm4356_vm9 = vmor %vm4354_vm8, %vm4355_vm7  ;;  %v7834_v9 = vor.u32 %v8597_v18, %v7833_v45  ;;  %v8582_v18 = vld [vmem:[#allocation7 + $0x254] sm:$0xf] }
 0xc64   : > { %v4350_v17 = vmul.f32 %v8792_v6, %v4349_v25  ;;  %v4347_v14 = vsel %vm4346_vm6, %v8790_v62, %v4343_v11  ;;  %v8587_v62 = vld [vmem:[#allocation7 + $0x274] sm:$0xf0]  ;;  %v8617_v25 = vld [vmem:[#allocation7 + $0x364] sm:$0xf0] }
 0xc65   : > { %v4358_v27 = vmul.f32 %v4347_v14, %v9887_v59  ;;  %v4359_v28 = vmul.f32 %v4347_v14, %v9889_v60  ;;  %v7794_v57 = vor.u32 %v8587_v62, %v7793_v61  ;;  %v7914_v12 = vor.u32 %v8617_v25, %v7913_v10  ;;  %v8613_v62 = vld [vmem:[#allocation7 + $0x344] sm:$0xf0]  ;;  %v8627_v10 = vld [vmem:[#allocation7 + $0x3b4] sm:$0xf0]  ;;  %v8600_v25 = vld [vmem:[#allocation7 + $0x2e4] sm:$0xf] }
 0xc66   : > { %v4351_v24 = vmul.f32 0.5, %v4350_v17  ;;  %v8595_v17 = vld [vmem:[#allocation7 + $0x2b4] sm:$0xf0] }
 0xc67   : > { %v4367_v33 = vmul.f32 %v4363_v23, %v4358_v27  ;;  %v4368_v1 = vmul.f32 %v4364_v49, %v4359_v28  ;;  %v7826_v14 = vor.u32 %v8595_v17, %v7825_v13  ;;  %v7905_v27 = vld [vmem:[#allocation7 + $0x350] sm:$0xf]  ;;  %v8615_v28 = vld [vmem:[#allocation7 + $0x354] sm:$0xf0] }
 0xc68   : > { %v4352_v22 = vsub.f32 1.5, %v4351_v24  ;;  %v8635_v24 = vld [vmem:[#allocation7 + $0x3f4] sm:$0xf0] }
 0xc69   : > { %v9926_v59 = vadd.f32 %v4372_v32, %v4367_v33  ;;  %v9928_v60 = vadd.f32 %v4373_v55, %v4368_v1  ;;  %v8633_v1 = vld [vmem:[#allocation7 + $0x3e4] sm:$0xf0] }
 0xc6a   : > { %v4353_v31 = vmul.f32 %v8792_v6, %v4352_v22  ;;  %v7986_v22 = vor.u32 %v8635_v24, %v7985_v15  ;;  %v8607_v24 = vld [vmem:[#allocation7 + $0x314] sm:$0xf0] }
 0xc6c   : > { %v4357_v4 = vsel %vm4356_vm9, %v8792_v6, %v4353_v31  ;;  %v7753_v6 = vld [vmem:[#allocation7 + $0x220] sm:$0xf]  ;;  %v7906_v31 = vor.u32 %v8615_v28, %v7905_v27 }
 0xc6d   : > { %v4360_v5 = vmul.f32 %v4357_v4, %v9896_v7  ;;  %v4361_v35 = vmul.f32 %v4357_v4, %v9898_v53  ;;  %v7786_v7 = vor.u32 %v8585_v41, %v7785_v29  ;;  %v7857_v53 = vld [vmem:[#allocation7 + $0x2f0] sm:$0xf]  ;;  %v7754_v11 = vor.u32 %v8577_v2, %v7753_v6  ;;  %v7977_v4 = vld [vmem:[#allocation7 + $0x3e0] sm:$0xf]  ;;  %v8591_v29 = vld [vmem:[#allocation7 + $0x294] sm:$0xf0] }
 0xc6e   : > { %v7858_v43 = vor.u32 %v8603_v42, %v7857_v53  ;;  %v8631_v53 = vld [vmem:[#allocation7 + $0x3d4] sm:$0xf0]  ;;  %v7953_v2 = vld [vmem:[#allocation7 + $0x3b0] sm:$0xf]  ;;  %v7945_v28 = vld [vmem:[#allocation7 + $0x3a0] sm:$0xf] }
 0xc6f   : > { %v4369_v36 = vmul.f32 %v4363_v23, %v4360_v5  ;;  %v4370_v37 = vmul.f32 %v4364_v49, %v4361_v35  ;;  %v8575_v23 = vld [vmem:[#allocation7 + $0x214] sm:$0xf0]  ;;  %v7978_v5 = vor.u32 %v8633_v1, %v7977_v4  ;;  %v7737_v35 = vld [vmem:[#allocation7 + $0x200] sm:$0xf]  ;;  %v8598_v4 = vld [vmem:[#allocation7 + $0x2d4] sm:$0xf] }
 0xc70   : > { %v7746_v49 = vor.u32 %v8575_v23, %v7745_v56  ;;  %v8580_v23 = vld [vmem:[#allocation7 + $0x244] sm:$0xf]  ;;  %v4451_v1 = vperm.slane %v9935_v20, 1 }
 0xc71   : > { %v4378_v39 = vadd.f32 %v4372_v32, %v4369_v36  ;;  %v4379_v38 = vadd.f32 %v4373_v55, %v4370_v37  ;;  %v7817_v32 = vld [vmem:[#allocation7 + $0x2a0] sm:$0xf]  ;;  %v8593_v55 = vld [vmem:[#allocation7 + $0x2a4] sm:$0xf0] }
 0xc72   : > { %v7818_v33 = vor.u32 %v8593_v55, %v7817_v32  ;;  %v8573_v36 = vld [vmem:[#allocation7 + $0x204] sm:$0xf0]  ;;  %v7897_v37 = vld [vmem:[#allocation7 + $0x340] sm:$0xf] }
 0xc73   : > { %v4380_v40 = vpack.c.bf16 %v4378_v39, %v9926_v59  ;;  %v4381_v21 = vpack.c.bf16 %v4379_v38, %v9928_v60  ;;  %v7738_v61 = vor.u32 %v8573_v36, %v7737_v35  ;;  %v8586_v39 = vld [vmem:[#allocation7 + $0x274] sm:$0xf]  ;;  %v7795_v38 = vld [vmem:[#allocation7 + $0x278] sm:$0xf0]  ;;  %v7865_v35 = vld [vmem:[#allocation7 + $0x300] sm:$0xf] }
 0xc74   : > { %v8605_v36 = vld [vmem:[#allocation7 + $0x304] sm:$0xf0] }
 0xc75   : > { %4786 = vmatmul.bf16.vlgmr.msra.gmra.mxu0 %v4380_v40  ;;  %4800 = vmatmul.bf16.vlgmr.msra.gmra.mxu1 %v4381_v21 }
 0xc76   : > { %4814 = vmatmul.bf16.vlgmr.msra.gmra.mxu2 %v4380_v40  ;;  %4828 = vmatmul.bf16.vlgmr.msra.gmra.mxu3 %v4381_v21 }
 0xc77   : > { %5358 = vmatpush.bf16.msra.mxu0 %v7794_v57  ;;  %5371 = vmatpush.bf16.msra.mxu1 %v7858_v43  ;;  %v7809_v57 = vld [vmem:[#allocation7 + $0x290] sm:$0xf] }
 0xc78   : > { %5384 = vmatpush.bf16.msra.mxu2 %v7922_v3  ;;  %5397 = vmatpush.bf16.msra.mxu3 %v7986_v22  ;;  %v7810_v41 = vor.u32 %v8591_v29, %v7809_v57  ;;  %v7889_v43 = vld [vmem:[#allocation7 + $0x330] sm:$0xf]  ;;  %v4450_v3 = vperm.slane %v9935_v20, 0  ;;  %v8623_v29 = vld [vmem:[#allocation7 + $0x394] sm:$0xf0] }
 0xc79   : > { %v7937_v57 = vld [vmem:[#allocation7 + $0x390] sm:$0xf] }
 0xc7b   : > { %5359 = vmatpush.bf16.msra.mxu0 %v7786_v7  ;;  %5372 = vmatpush.bf16.msra.mxu1 %v7850_v16  ;;  %v7969_v7 = vld [vmem:[#allocation7 + $0x3d0] sm:$0xf]  ;;  %v7790_v16 = vor.u32 %v8584_v0, %v7787_v46 }
 0xc7c   : > { %5385 = vmatpush.bf16.msra.mxu2 %v7914_v12  ;;  %5398 = vmatpush.bf16.msra.mxu3 %v7978_v5  ;;  %v7970_v42 = vor.u32 %v8631_v53, %v7969_v7  ;;  %v7851_v12 = vld [vmem:[#allocation7 + $0x2e8] sm:$0xf0] }
 0xc7d   : > { %v7854_v15 = vor.u32 %v8600_v25, %v7851_v12  ;;  %v8634_v12 = vld [vmem:[#allocation7 + $0x3f4] sm:$0xf] }
 0xc7f   : > { %5360 = vmatpush.bf16.msra.mxu0 %v7778_v48  ;;  %5373 = vmatpush.bf16.msra.mxu1 %v7842_v51  ;;  %v7890_v48 = vor.u32 %v8611_v44, %v7889_v43  ;;  %v8602_v51 = vld [vmem:[#allocation7 + $0x2f4] sm:$0xf]  ;;  %v7938_v43 = vor.u32 %v8623_v29, %v7937_v57  ;;  %v8596_v44 = vld [vmem:[#allocation7 + $0x2c4] sm:$0xf] }
 0xc80   : > { %5386 = vmatpush.bf16.msra.mxu2 %v7906_v31  ;;  %5399 = vmatpush.bf16.msra.mxu3 %v7970_v42  ;;  %v7862_v58 = vor.u32 %v8602_v51, %v7859_v52  ;;  %v8625_v31 = vld [vmem:[#allocation7 + $0x3a4] sm:$0xf0]  ;;  %v8572_v29 = vld [vmem:[#allocation7 + $0x204] sm:$0xf] }
 0xc81   : > { %v7946_v55 = vor.u32 %v8625_v31, %v7945_v28 }
 0xc83   : > { %5361 = vmatpush.bf16.msra.mxu0 %v7770_v47  ;;  %5374 = vmatpush.bf16.msra.mxu1 %v7834_v9  ;;  %v7961_v47 = vld [vmem:[#allocation7 + $0x3c0] sm:$0xf]  ;;  %v7779_v9 = vld [vmem:[#allocation7 + $0x258] sm:$0xf0] }
 0xc84   : > { %v7962_v54 = vor.u32 %v8629_v19, %v7961_v47  ;;  %v7782_v6 = vor.u32 %v8582_v18, %v7779_v9  ;;  %v7755_v19 = vld [vmem:[#allocation7 + $0x228] sm:$0xf0]  ;;  %v8621_v9 = vld [vmem:[#allocation7 + $0x384] sm:$0xf0] }
 0xc85   : > { %4842 = vmatmul.bf16.vlgmr.msrb.gmra.mxu0 %v4380_v40  ;;  %4856 = vmatmul.bf16.vlgmr.msrb.gmra.mxu1 %v4381_v21 }
 0xc86   : > { %4870 = vmatmul.bf16.vlgmr.msrb.gmra.mxu2 %v4380_v40  ;;  %4884 = vmatmul.bf16.vlgmr.msrb.gmra.mxu3 %v4381_v21  ;;  %v7898_v40 = vor.u32 %v8613_v62, %v7897_v37  ;;  %v7798_v21 = vor.u32 %v8586_v39, %v7795_v38  ;;  %v8578_v62 = vld [vmem:[#allocation7 + $0x234] sm:$0xf]  ;;  %v7763_v39 = vld [vmem:[#allocation7 + $0x238] sm:$0xf0] }
 0xc87   : > { %5362 = vmatpush.bf16.msra.mxu0 %v7762_v34  ;;  %5375 = vmatpush.bf16.msra.mxu1 %v7826_v14  ;;  %v7881_v34 = vld [vmem:[#allocation7 + $0x320] sm:$0xf]  ;;  %v7873_v14 = vld [vmem:[#allocation7 + $0x310] sm:$0xf]  ;;  %v8618_v38 = vld [vmem:[#allocation7 + $0x374] sm:$0xf] }
 0xc88   : > { %5387 = vmatpush.bf16.msra.mxu2 %v7898_v40  ;;  %v7882_v45 = vor.u32 %v8609_v26, %v7881_v34  ;;  %5400 = vmatpush.bf16.msra.mxu3 %v7962_v54  ;;  %v7874_v56 = vor.u32 %v8607_v24, %v7873_v14  ;;  %v7766_v40 = vor.u32 %v8578_v62, %v7763_v39  ;;  %v8616_v54 = vld [vmem:[#allocation7 + $0x364] sm:$0xf]  ;;  %v7929_v34 = vld [vmem:[#allocation7 + $0x380] sm:$0xf]  ;;  %v8574_v24 = vld [vmem:[#allocation7 + $0x214] sm:$0xf] }
 0xc8b   : > { %5363 = vmatpush.bf16.msra.mxu0 %v7754_v11  ;;  %5376 = vmatpush.bf16.msra.mxu1 %v7818_v33  ;;  %v7954_v11 = vor.u32 %v8627_v10, %v7953_v2  ;;  %v7843_v33 = vld [vmem:[#allocation7 + $0x2d8] sm:$0xf0]  ;;  %v4452_v10 = vperm.slane %v9935_v20, 2 }
 0xc8c   : > { %5388 = vmatpush.bf16.msra.mxu2 %v7890_v48  ;;  %v7846_v5 = vor.u32 %v8598_v4, %v7843_v33  ;;  %v7835_v48 = vld [vmem:[#allocation7 + $0x2c8] sm:$0xf0]  ;;  %v7827_v2 = vld [vmem:[#allocation7 + $0x2b8] sm:$0xf0]  ;;  %v8592_v33 = vld [vmem:[#allocation7 + $0x2a4] sm:$0xf] }
 0xc8d   : > { %5401 = vmatpush.bf16.msra.mxu3 %v7954_v11  ;;  %v7838_v8 = vor.u32 %v8596_v44, %v7835_v48  ;;  %v7930_v11 = vor.u32 %v8621_v9, %v7929_v34 }
 0xc8f   : > { %5364 = vmatpush.bf16.msra.mxu0 %v7746_v49  ;;  %5377 = vmatpush.bf16.msra.mxu1 %v7810_v41  ;;  %v7771_v49 = vld [vmem:[#allocation7 + $0x248] sm:$0xf0] }
 0xc90   : > { %5389 = vmatpush.bf16.msra.mxu2 %v7882_v45  ;;  %v7774_v27 = vor.u32 %v8580_v23, %v7771_v49  ;;  %v8614_v49 = vld [vmem:[#allocation7 + $0x354] sm:$0xf] }
 0xc91   : > { %5402 = vmatpush.bf16.msra.mxu3 %v7946_v55 }
 0xc93   : > { %5365 = vmatpush.bf16.msra.mxu0 %v7738_v61  ;;  %5378 = vmatpush.bf16.msra.mxu1 %v7802_v30  ;;  %v7866_v61 = vor.u32 %v8605_v36, %v7865_v35  ;;  %v8576_v30 = vld [vmem:[#allocation7 + $0x224] sm:$0xf] }
 0xc94   : > { %5390 = vmatpush.bf16.msra.mxu2 %v7874_v56  ;;  %v7758_v52 = vor.u32 %v8576_v30, %v7755_v19  ;;  %v8632_v35 = vld [vmem:[#allocation7 + $0x3e4] sm:$0xf]  ;;  %v4453_v30 = vperm.slane %v9935_v20, 3 }
 0xc95   : > { %5403 = vmatpush.bf16.msra.mxu3 %v7938_v43  ;;  %v7899_v43 = vld [vmem:[#allocation7 + $0x348] sm:$0xf0] }
 0xc97   : > { %5410 = vmatpush.bf16.msrb.mxu0 %v7798_v21  ;;  %5423 = vmatpush.bf16.msrb.mxu1 %v7862_v58  ;;  %v7923_v21 = vld [vmem:[#allocation7 + $0x378] sm:$0xf0]  ;;  %v7915_v58 = vld [vmem:[#allocation7 + $0x368] sm:$0xf0] }
 0xc98   : > { %v7926_v42 = vor.u32 %v8618_v38, %v7923_v21  ;;  %5391 = vmatpush.bf16.msra.mxu2 %v7866_v61  ;;  %v7918_v18 = vor.u32 %v8616_v54, %v7915_v58  ;;  %v7979_v38 = vld [vmem:[#allocation7 + $0x3e8] sm:$0xf0] }
 0xc99   : > { %5404 = vmatpush.bf16.msra.mxu3 %v7930_v11  ;;  %v7982_v57 = vor.u32 %v8632_v35, %v7979_v38 }
 0xc9b   : > { %5411 = vmatpush.bf16.msrb.mxu0 %v7790_v16  ;;  %5424 = vmatpush.bf16.msrb.mxu1 %v7854_v15 }
 0xc9c   : > { %5436 = vmatpush.bf16.msrb.mxu2 %v7926_v42  ;;  %v8612_v42 = vld [vmem:[#allocation7 + $0x344] sm:$0xf] }
 0xc9f   : > { %5412 = vmatpush.bf16.msrb.mxu0 %v7782_v6  ;;  %5425 = vmatpush.bf16.msrb.mxu1 %v7846_v5  ;;  %v8594_v6 = vld [vmem:[#allocation7 + $0x2b4] sm:$0xf]  ;;  %v7819_v5 = vld [vmem:[#allocation7 + $0x2a8] sm:$0xf0] }
 0xca0   : > { %v7830_v25 = vor.u32 %v8594_v6, %v7827_v2  ;;  %5437 = vmatpush.bf16.msrb.mxu2 %v7918_v18  ;;  %v7822_v39 = vor.u32 %v8592_v33, %v7819_v5  ;;  %v7891_v18 = vld [vmem:[#allocation7 + $0x338] sm:$0xf0] }
 0xca3   : > { %5413 = vmatpush.bf16.msrb.mxu0 %v7774_v27  ;;  %5426 = vmatpush.bf16.msrb.mxu1 %v7838_v8  ;;  %v7907_v27 = vld [vmem:[#allocation7 + $0x358] sm:$0xf0]  ;;  %v8630_v8 = vld [vmem:[#allocation7 + $0x3d4] sm:$0xf] }
 0xca4   : > { %v7910_v4 = vor.u32 %v8614_v49, %v7907_v27 }
 0xca6   : > { %5438 = vmatpush.bf16.msrb.mxu2 %v7910_v4 }
 0xca7   : > { %5414 = vmatpush.bf16.msrb.mxu0 %v7766_v40  ;;  %5427 = vmatpush.bf16.msrb.mxu1 %v7830_v25 }
 0xcab   : > { %5415 = vmatpush.bf16.msrb.mxu0 %v7758_v52  ;;  %5428 = vmatpush.bf16.msrb.mxu1 %v7822_v39  ;;  %v7971_v52 = vld [vmem:[#allocation7 + $0x3d8] sm:$0xf0] }
 0xcac   : > { %v7974_v34 = vor.u32 %v8630_v8, %v7971_v52 }
 0xcf2   : > { %v4787_v13 = vpop.f32.mrf.mxu0  ;;  %v4801_v17 = vpop.f32.mrf.mxu1 }
 0xcf3   : > { %v4788_v22 = vadd.f32 %v4787_v13, %v4450_v3  ;;  %v7987_v13 = vld [vmem:[#allocation7 + $0x3f8] sm:$0xf0] }
 0xcf4   : > { %v7990_v14 = vor.u32 %v8634_v12, %v7987_v13  ;;  %v8588_v12 = vld [vmem:[#allocation7 + $0x284] sm:$0xf]  ;;  %v7803_v13 = vld [vmem:[#allocation7 + $0x288] sm:$0xf0] }
 0xcf5   : > { %v9940_v32 = vadd.f32 %v4801_v17, %v4788_v22  ;;  %v7747_v22 = vld [vmem:[#allocation7 + $0x218] sm:$0xf0] }
 0xcf6   : > { %v7750_v23 = vor.u32 %v8574_v24, %v7747_v22  ;;  %5449 = vmatpush.bf16.msrb.mxu3 %v7990_v14  ;;  %v7806_v22 = vor.u32 %v8588_v12, %v7803_v13 }
 0xcf7   : > { %v4890_v37 = vmul.f32 %v9940_v32, %v9940_v32 }
 0xcf8   : > { %5416 = vmatpush.bf16.msrb.mxu0 %v7750_v23 }
 0xcf9   : > { %v4898_v41 = vmul.f32 %v4890_v37, %v9940_v32  ;;  %v4815_v7 = vpop.f32.mrf.mxu2  ;;  %v4829_v53 = vpop.f32.mrf.mxu3 }
 0xcfa   : > { %v4816_v0 = vadd.f32 %v4815_v7, %v4451_v1  ;;  %v4789_v46 = vpop.f32.mrf.mxu0  ;;  %v4803_v16 = vpop.f32.mrf.mxu1  ;;  %5450 = vmatpush.bf16.msrb.mxu3 %v7982_v57 }
 0xcfb   : > { %v4906_v50 = vmul.f32 0.044715, %v4898_v41  ;;  %v4790_v47 = vadd.f32 %v4789_v46, %v4450_v3  ;;  %v7739_v41 = vld [vmem:[#allocation7 + $0x208] sm:$0xf0]  ;;  %v8590_v46 = vld [vmem:[#allocation7 + $0x294] sm:$0xf] }
 0xcfc   : > { %v9950_v51 = vadd.f32 %v4829_v53, %v4816_v0  ;;  %v7902_v0 = vor.u32 %v8612_v42, %v7899_v43  ;;  %v7875_v43 = vld [vmem:[#allocation7 + $0x318] sm:$0xf0] }
 0xcfd   : > { %v4914_v26 = vadd.f32 %v4906_v50, %v9940_v32  ;;  %v9953_v45 = vadd.f32 %v4803_v16, %v4790_v47  ;;  %v7811_v16 = vld [vmem:[#allocation7 + $0x298] sm:$0xf0] }
 0xcfe   : > { %v4891_v3 = vmul.f32 %v9950_v51, %v9950_v51  ;;  %v7814_v19 = vor.u32 %v8590_v46, %v7811_v16  ;;  %5439 = vmatpush.bf16.msrb.mxu2 %v7902_v0  ;;  %5451 = vmatpush.bf16.msrb.mxu3 %v7974_v34  ;;  %v7867_v34 = vld [vmem:[#allocation7 + $0x308] sm:$0xf0] }
 0xcff   : > { %v4922_v17 = vmul.f32 0.7978846, %v4914_v26  ;;  %v4894_v15 = vmul.f32 %v9953_v45, %v9953_v45  ;;  %v8610_v26 = vld [vmem:[#allocation7 + $0x334] sm:$0xf] }
 0xd00   : > { %v4899_v56 = vmul.f32 %v4891_v3, %v9950_v51  ;;  %5429 = vmatpush.bf16.msrb.mxu1 %v7814_v19  ;;  %v7894_v6 = vor.u32 %v8610_v26, %v7891_v18 }
 0xd01   : > { %v4902_v28 = vmul.f32 %v4894_v15, %v9953_v45  ;;  %v4817_v31 = vpop.f32.mrf.mxu2  ;;  %v4831_v55 = vpop.f32.mrf.mxu3  ;;  %8793 = vtanh.f32 %v4922_v17  ;;  %v8628_v17 = vld [vmem:[#allocation7 + $0x3c4] sm:$0xf] }
 0xd02   : > { %v4907_v36 = vmul.f32 0.044715, %v4899_v56  ;;  %v4818_v37 = vadd.f32 %v4817_v31, %v4451_v1  ;;  %v4843_v61 = vpop.f32.mrf.mxu0  ;;  %v4857_v62 = vpop.f32.mrf.mxu1  ;;  %v7742_v1 = vor.u32 %v8572_v29, %v7739_v41  ;;  %v7963_v56 = vld [vmem:[#allocation7 + $0x3c8] sm:$0xf0]  ;;  %5440 = vmatpush.bf16.msrb.mxu2 %v7894_v6  ;;  %v8606_v41 = vld [vmem:[#allocation7 + $0x314] sm:$0xf] }
 0xd03   : > { %v4910_v40 = vmul.f32 0.044715, %v4902_v28  ;;  %v4844_v21 = vadd.f32 %v4843_v61, %v4452_v10  ;;  %v7966_v27 = vor.u32 %v8628_v17, %v7963_v56  ;;  %v8608_v28 = vld [vmem:[#allocation7 + $0x324] sm:$0xf]  ;;  %v7883_v31 = vld [vmem:[#allocation7 + $0x328] sm:$0xf0]  ;;  %v7878_v8 = vor.u32 %v8606_v41, %v7875_v43 }
 0xd04   : > { %v4915_v7 = vadd.f32 %v4907_v36, %v9950_v51  ;;  %v9967_v53 = vadd.f32 %v4831_v55, %v4818_v37  ;;  %5417 = vmatpush.bf16.msrb.mxu0 %v7742_v1  ;;  %5430 = vmatpush.bf16.msrb.mxu1 %v7806_v22  ;;  %v7886_v35 = vor.u32 %v8608_v28, %v7883_v31  ;;  %v8626_v61 = vld [vmem:[#allocation7 + $0x3b4] sm:$0xf] }
 0xd05   : > { %v4918_v44 = vadd.f32 %v4910_v40, %v9953_v45  ;;  %v9970_v48 = vadd.f32 %v4857_v62, %v4844_v21  ;;  %5452 = vmatpush.bf16.msrb.mxu3 %v7966_v27  ;;  %v7955_v62 = vld [vmem:[#allocation7 + $0x3b8] sm:$0xf0]  ;;  %v8622_v6 = vld [vmem:[#allocation7 + $0x394] sm:$0xf] }
 0xd06   : > { %v4923_v50 = vmul.f32 0.7978846, %v4915_v7  ;;  %v4895_v47 = vmul.f32 %v9967_v53, %v9967_v53  ;;  %v7958_v40 = vor.u32 %v8626_v61, %v7955_v62  ;;  %5441 = vmatpush.bf16.msrb.mxu2 %v7886_v35 }
 0xd07   : > { %v4926_v54 = vmul.f32 0.7978846, %v4918_v44  ;;  %v4892_v58 = vmul.f32 %v9970_v48, %v9970_v48  ;;  %v8794_v2 = vpop.eup %8793  ;;  %v8624_v44 = vld [vmem:[#allocation7 + $0x3a4] sm:$0xf] }
 0xd08   : > { %8795 = vtanh.f32 %v4923_v50  ;;  %v4903_v9 = vmul.f32 %v4895_v47, %v9967_v53  ;;  %v4938_v55 = vadd.f32 1.0, %v8794_v2  ;;  %v7947_v50 = vld [vmem:[#allocation7 + $0x3a8] sm:$0xf0]  ;;  %v8604_v47 = vld [vmem:[#allocation7 + $0x304] sm:$0xf] }
 0xd09   : > { %8797 = vtanh.f32 %v4926_v54  ;;  %v4900_v3 = vmul.f32 %v4892_v58, %v9970_v48  ;;  %v4871_v11 = vpop.f32.mrf.mxu2  ;;  %v4885_v25 = vpop.f32.mrf.mxu3  ;;  %5453 = vmatpush.bf16.msrb.mxu3 %v7958_v40  ;;  %v7950_v58 = vor.u32 %v8624_v44, %v7947_v50  ;;  %v7939_v2 = vld [vmem:[#allocation7 + $0x398] sm:$0xf0] }
 0xd0a   : > { %v4911_v15 = vmul.f32 0.044715, %v4903_v9  ;;  %v4872_v14 = vadd.f32 %v4871_v11, %v4453_v30  ;;  %v4845_v24 = vpop.f32.mrf.mxu0  ;;  %v4859_v5 = vpop.f32.mrf.mxu1  ;;  %v4946_v7 = vmul.f32 0.5, %v4938_v55  ;;  %5442 = vmatpush.bf16.msrb.mxu2 %v7878_v8  ;;  %v7870_v9 = vor.u32 %v8604_v47, %v7867_v34 }
 0xd0b   : > { %v4908_v23 = vmul.f32 0.044715, %v4900_v3  ;;  %v4846_v49 = vadd.f32 %v4845_v24, %v4452_v10  ;;  %v7942_v20 = vor.u32 %v8622_v6, %v7939_v2 }
 0xd0c   : > { %v4919_v4 = vadd.f32 %v4911_v15, %v9967_v53  ;;  %v9984_v33 = vadd.f32 %v4885_v25, %v4872_v14  ;;  %v4954_v3 = vmul.f32 %v4946_v7, %v9940_v32  ;;  %v8620_v32 = vld [vmem:[#allocation7 + $0x384] sm:$0xf] }
 0xd0d   : > { %v4916_v36 = vadd.f32 %v4908_v23, %v9970_v48  ;;  %v9987_v37 = vadd.f32 %v4859_v5, %v4846_v49  ;;  %5454 = vmatpush.bf16.msrb.mxu3 %v7950_v58  ;;  %v7931_v49 = vld [vmem:[#allocation7 + $0x388] sm:$0xf0] }
 0xd0e   : > { %v8796_v10 = vpop.eup %8795  ;;  %v4927_v39 = vmul.f32 0.7978846, %v4919_v4  ;;  %v4893_v38 = vmul.f32 %v9984_v33, %v9984_v33  ;;  %5443 = vmatpush.bf16.msrb.mxu2 %v7870_v9  ;;  %v7934_v28 = vor.u32 %v8620_v32, %v7931_v49  ;;  %v8667_v49 = vld [vmem:[#allocation8 + $0xf4] sm:$0xf0] }
 0xd0f   : > { %v8798_v21 = vpop.eup %8797  ;;  %v4924_v57 = vmul.f32 0.7978846, %v4916_v36  ;;  %v4896_v29 = vmul.f32 %v9987_v37, %v9987_v37  ;;  %v4939_v0 = vadd.f32 1.0, %v8796_v10 }
 0xd10   : > { %v4942_v1 = vadd.f32 1.0, %v8798_v21  ;;  %8799 = vtanh.f32 %v4927_v39  ;;  %v4901_v42 = vmul.f32 %v4893_v38, %v9984_v33 }
 0xd11   : > { %v4904_v46 = vmul.f32 %v4896_v29, %v9987_v37  ;;  %v4873_v16 = vpop.f32.mrf.mxu2  ;;  %8801 = vtanh.f32 %v4924_v57  ;;  %v4887_v18 = vpop.f32.mrf.mxu3  ;;  %v4947_v24 = vmul.f32 0.5, %v4939_v0  ;;  %5455 = vmatpush.bf16.msrb.mxu3 %v7942_v20 }
 0xd12   : > { %v4950_v19 = vmul.f32 0.5, %v4942_v1  ;;  %v4909_v52 = vmul.f32 0.044715, %v4901_v42  ;;  %v4874_v54 = vadd.f32 %v4873_v16, %v4453_v30 }
 0xd13   : > { %v4912_v26 = vmul.f32 0.044715, %v4904_v46  ;;  %v4955_v55 = vmul.f32 %v4947_v24, %v9950_v51 }
 0xd14   : > { %v4958_v11 = vmul.f32 %v4950_v19, %v9953_v45  ;;  %v4917_v25 = vadd.f32 %v4909_v52, %v9984_v33  ;;  %v4888_v12 = vadd.f32 %v4887_v18, %v4874_v54 }
 0xd15   : > { %v4920_v13 = vadd.f32 %v4912_v26, %v9987_v37  ;;  %5456 = vmatpush.bf16.msrb.mxu3 %v7934_v28 }
 0xd16   : > { %v8800_v30 = vpop.eup %8799  ;;  %v4962_v17 = vpack.c.bf16 %v4958_v11, %v4954_v3  ;;  %v4925_v15 = vmul.f32 0.7978846, %v4917_v25  ;;  %v4897_v14 = vmul.f32 %v4888_v12, %v4888_v12 }
 0xd17   : > { %v4943_v22 = vadd.f32 1.0, %v8800_v30  ;;  %v4928_v56 = vmul.f32 0.7978846, %v4920_v13  ;;  %v8802_v45 = vpop.eup %8801 }
 0xd18   : > { %v4905_v23 = vmul.f32 %v4897_v14, %v4888_v12  ;;  %5366 = vmatmul.bf16.vlgmr.msra.gmra.mxu0 %v4962_v17  ;;  %v4940_v5 = vadd.f32 1.0, %v8802_v45  ;;  %v8650_v45 = vld [vmem:[#allocation8 + $0x74] sm:$0xf] }
 0xd19   : > { %v4951_v27 = vmul.f32 0.5, %v4943_v22  ;;  %8803 = vtanh.f32 %v4928_v56  ;;  %v8051_v22 = vld [vmem:[#allocation8 + $0x70] sm:$0xf]  ;;  %v8651_v56 = vld [vmem:[#allocation8 + $0x74] sm:$0xf0] }
 0xd1a   : > { %8805 = vtanh.f32 %v4925_v15  ;;  %v4913_v31 = vmul.f32 0.044715, %v4905_v23  ;;  %v4948_v39 = vmul.f32 0.5, %v4940_v5  ;;  %v8115_v23 = vld [vmem:[#allocation8 + $0xf0] sm:$0xf]  ;;  %v8052_v32 = vor.u32 %v8651_v56, %v8051_v22 }
 0xd1b   : > { %v4959_v4 = vmul.f32 %v4951_v27, %v9967_v53  ;;  %v8053_v27 = vld [vmem:[#allocation8 + $0x78] sm:$0xf0]  ;;  %v8116_v28 = vor.u32 %v8667_v49, %v8115_v23  ;;  %v8658_v56 = vld [vmem:[#allocation8 + $0xb4] sm:$0xf]  ;;  %v8011_v49 = vld [vmem:[#allocation8 + $0x20] sm:$0xf] }
 0xd1c   : > { %v4921_v35 = vadd.f32 %v4913_v31, %v4888_v12  ;;  %v4956_v57 = vmul.f32 %v4948_v39, %v9970_v48  ;;  %v8056_v31 = vor.u32 %v8650_v45, %v8053_v27  ;;  %5707 = vmatpush.bf16.msra.mxu0 %v8052_v32  ;;  %v8043_v39 = vld [vmem:[#allocation8 + $0x60] sm:$0xf]  ;;  %v8085_v23 = vld [vmem:[#allocation8 + $0xb8] sm:$0xf0]  ;;  %v8641_v45 = vld [vmem:[#allocation8 + $0x24] sm:$0xf0] }
 0xd1d   : > { %v4963_v36 = vpack.c.bf16 %v4959_v4, %v4955_v55  ;;  %v8666_v55 = vld [vmem:[#allocation8 + $0xf4] sm:$0xf]  ;;  %v8117_v4 = vld [vmem:[#allocation8 + $0xf8] sm:$0xf0]  ;;  %v8088_v32 = vor.u32 %v8658_v56, %v8085_v23  ;;  %v8075_v27 = vld [vmem:[#allocation8 + $0xa0] sm:$0xf] }
 0xd1e   : > { %v4929_v61 = vmul.f32 0.7978846, %v4921_v35  ;;  %v8120_v5 = vor.u32 %v8666_v55, %v8117_v4  ;;  %v8640_v55 = vld [vmem:[#allocation8 + $0x24] sm:$0xf]  ;;  %v8013_v4 = vld [vmem:[#allocation8 + $0x28] sm:$0xf0] }
 0xd1f   : > { %v8804_v62 = vpop.eup %8803  ;;  %5379 = vmatmul.bf16.vlgmr.msra.gmra.mxu1 %v4963_v36  ;;  %v5541_v23 = vld [vmem:[%s10082_s24] sm:$0x3] }
 0xd20   : > { %v8806_v10 = vpop.eup %8805  ;;  %v4944_v38 = vadd.f32 1.0, %v8804_v62  ;;  %8807 = vtanh.f32 %v4929_v61  ;;  %5720 = vmatpush.bf16.msra.mxu1 %v8116_v28  ;;  %v8012_v28 = vor.u32 %v8641_v45, %v8011_v49 }
 0xd21   : > { %v4941_v21 = vadd.f32 1.0, %v8806_v10 }
 0xd22   : > { %v4952_v40 = vmul.f32 0.5, %v4944_v38  ;;  %v8649_v38 = vld [vmem:[#allocation8 + $0x64] sm:$0xf0] }
 0xd23   : > { %v4949_v53 = vmul.f32 0.5, %v4941_v21  ;;  %v8044_v21 = vor.u32 %v8649_v38, %v8043_v39  ;;  %v8639_v39 = vld [vmem:[#allocation8 + $0x14] sm:$0xf0]  ;;  %v8067_v38 = vld [vmem:[#allocation8 + $0x90] sm:$0xf] }
 0xd24   : > { %v4960_v29 = vmul.f32 %v4952_v40, %v9987_v37  ;;  %v8107_v40 = vld [vmem:[#allocation8 + $0xe0] sm:$0xf] }
 0xd25   : > { %v4957_v42 = vmul.f32 %v4949_v53, %v9984_v33  ;;  %v7734_v33 = vld [vmem:[%s10055_s13 + $0x2] sm:$0x3]  ;;  %5708 = vmatpush.bf16.msra.mxu0 %v8044_v21  ;;  %v8655_v21 = vld [vmem:[#allocation8 + $0x94] sm:$0xf0] }
 0xd26   : > { %v8808_v51 = vpop.eup %8807  ;;  %v4964_v41 = vpack.c.bf16 %v4960_v29, %v4956_v57  ;;  %v5034_v58 = vperm.slane %v7734_v33, 0  ;;  %v5035_v34 = vperm.slane %v7734_v33, 1  ;;  %v8665_v57 = vld [vmem:[#allocation8 + $0xe4] sm:$0xf0]  ;;  %v8648_v29 = vld [vmem:[#allocation8 + $0x64] sm:$0xf] }
 0xd27   : > { %v4945_v7 = vadd.f32 1.0, %v8808_v51  ;;  %v8045_v51 = vld [vmem:[#allocation8 + $0x68] sm:$0xf0]  ;;  %v8027_v33 = vld [vmem:[#allocation8 + $0x40] sm:$0xf] }
 0xd28   : > { %5392 = vmatmul.bf16.vlgmr.msra.gmra.mxu2 %v4964_v41  ;;  %5418 = vmatmul.bf16.vlgmr.msrb.gmra.mxu0 %v4962_v17  ;;  %v8048_v53 = vor.u32 %v8648_v29, %v8045_v51  ;;  %v8005_v29 = vld [vmem:[#allocation8 + $0x18] sm:$0xf0]  ;;  %v8068_v51 = vor.u32 %v8655_v21, %v8067_v38 }
 0xd29   : > { %v4953_v1 = vmul.f32 0.5, %v4945_v7  ;;  %5733 = vmatpush.bf16.msra.mxu2 %v8056_v31  ;;  %v8664_v7 = vld [vmem:[#allocation8 + $0xe4] sm:$0xf]  ;;  %v8657_v31 = vld [vmem:[#allocation8 + $0xa4] sm:$0xf0] }
 0xd2b   : > { %v4961_v43 = vmul.f32 %v4953_v1, %v4888_v12  ;;  %v8109_v1 = vld [vmem:[#allocation8 + $0xe8] sm:$0xf0] }
 0xd2d   : > { %v4965_v44 = vpack.c.bf16 %v4961_v43, %v4957_v42  ;;  %v8112_v42 = vor.u32 %v8664_v7, %v8109_v1  ;;  %5734 = vmatpush.bf16.msra.mxu2 %v8048_v53  ;;  %v8035_v43 = vld [vmem:[#allocation8 + $0x50] sm:$0xf]  ;;  %v8654_v53 = vld [vmem:[#allocation8 + $0x94] sm:$0xf]  ;;  %v8069_v7 = vld [vmem:[#allocation8 + $0x98] sm:$0xf0] }
 0xd2e   : > { %v8072_v1 = vor.u32 %v8654_v53, %v8069_v7  ;;  %v5775_v53 = vld [vmem:[#allocation2] sm:$0x1] }
 0xd2f   : > { %5405 = vmatmul.bf16.vlgmr.msra.gmra.mxu3 %v4965_v44  ;;  %5431 = vmatmul.bf16.vlgmr.msrb.gmra.mxu1 %v4963_v36 }
 0xd30   : > { %5746 = vmatpush.bf16.msra.mxu3 %v8120_v5  ;;  %v8076_v5 = vor.u32 %v8657_v31, %v8075_v27  ;;  %v5704_v27 = vperm.slane %v5541_v23, 1 }
 0xd34   : > { %5747 = vmatpush.bf16.msra.mxu3 %v8112_v42  ;;  %v7995_v42 = vld [vmem:[#allocation8] sm:$0xf] }
 0xd38   : > { %5444 = vmatmul.bf16.vlgmr.msrb.gmra.mxu2 %v4964_v41  ;;  %v8108_v41 = vor.u32 %v8665_v57, %v8107_v40  ;;  %v8638_v57 = vld [vmem:[#allocation8 + $0x14] sm:$0xf] }
 0xd3a   : > { %5721 = vmatpush.bf16.msra.mxu1 %v8108_v41  ;;  %v8008_v41 = vor.u32 %v8638_v57, %v8005_v29 }
 0xd3f   : > { %5457 = vmatmul.bf16.vlgmr.msrb.gmra.mxu3 %v4965_v44  ;;  %v8647_v44 = vld [vmem:[#allocation8 + $0x54] sm:$0xf0] }
 0xd95   : > { %v5367_v0 = vpop.f32.mrf.mxu0 }
 0xd96   : > { %v5368_v18 = vadd.f32 %v5367_v0, %v5034_v58  ;;  %v8099_v0 = vld [vmem:[#allocation8 + $0xd0] sm:$0xf]  ;;  %v8091_v58 = vld [vmem:[#allocation8 + $0xc0] sm:$0xf] }
 0xd9c   : > { %v5380_v46 = vpop.f32.mrf.mxu1 }
 0xd9d   : > { %v5369_v48 = vpop.f32.mrf.mxu0  ;;  %v5381_v6 = vadd.f32 %v5380_v46, %v5368_v18  ;;  %v8036_v46 = vor.u32 %v8647_v44, %v8035_v43  ;;  %v8644_v18 = vld [vmem:[#allocation8 + $0x44] sm:$0xf]  ;;  %v8637_v43 = vld [vmem:[#allocation8 + $0x4] sm:$0xf0]  ;;  %v8059_v44 = vld [vmem:[#allocation8 + $0x80] sm:$0xf] }
 0xd9e   : > { %v8663_v48 = vld [vmem:[#allocation8 + $0xd4] sm:$0xf0] }
 0xd9f   : > { %5709 = vmatpush.bf16.msra.mxu0 %v8036_v46  ;;  %v8653_v46 = vld [vmem:[#allocation8 + $0x84] sm:$0xf0] }
 0xda4   : > { %v5382_v16 = vpop.f32.mrf.mxu1 }
 0xda5   : > { %v5419_v37 = vpop.f32.mrf.mxu0  ;;  %v8646_v16 = vld [vmem:[#allocation8 + $0x54] sm:$0xf] }
 0xda6   : > { %v5420_v2 = vadd.f32 %v5419_v37, %v5035_v34  ;;  %v8037_v37 = vld [vmem:[#allocation8 + $0x58] sm:$0xf0] }
 0xdab   : > { %v5393_v8 = vpop.f32.mrf.mxu2 }
 0xdac   : > { %v5432_v50 = vpop.f32.mrf.mxu1  ;;  %v5394_v3 = vadd.f32 %v5393_v8, %v5381_v6  ;;  %v8100_v8 = vor.u32 %v8663_v48, %v8099_v0  ;;  %v7996_v0 = vor.u32 %v8637_v43, %v7995_v42  ;;  %v8636_v48 = vld [vmem:[#allocation8 + $0x4] sm:$0xf] }
 0xdad   : > { %v5421_v47 = vpop.f32.mrf.mxu0  ;;  %v5433_v11 = vadd.f32 %v5432_v50, %v5420_v2  ;;  %v8040_v50 = vor.u32 %v8646_v16, %v8037_v37  ;;  %v7997_v16 = vld [vmem:[#allocation8 + $0x8] sm:$0xf0]  ;;  %v8060_v37 = vor.u32 %v8653_v46, %v8059_v44 }
 0xdae   : > { %v8662_v47 = vld [vmem:[#allocation8 + $0xd4] sm:$0xf]  ;;  %5722 = vmatpush.bf16.msra.mxu1 %v8100_v8  ;;  %v8000_v8 = vor.u32 %v8636_v48, %v7997_v16 }
 0xdaf   : > { %5735 = vmatpush.bf16.msra.mxu2 %v8040_v50  ;;  %v8652_v50 = vld [vmem:[#allocation8 + $0x84] sm:$0xf] }
 0xdb2   : > { %v5406_v19 = vpop.f32.mrf.mxu3 }
 0xdb3   : > { %v5395_v52 = vpop.f32.mrf.mxu2  ;;  %v5407_v25 = vadd.f32 %v5406_v19, %v5394_v3  ;;  %v8101_v19 = vld [vmem:[#allocation8 + $0xd8] sm:$0xf0]  ;;  %v8660_v3 = vld [vmem:[#allocation8 + $0xc4] sm:$0xf] }
 0xdb4   : > { %v5434_v54 = vpop.f32.mrf.mxu1  ;;  %v8104_v52 = vor.u32 %v8662_v47, %v8101_v19  ;;  %v8061_v47 = vld [vmem:[#allocation8 + $0x88] sm:$0xf0] }
 0xdb5   : > { %v5462_v17 = vadd.f32 %v5407_v25, %v9926_v59  ;;  %v8645_v54 = vld [vmem:[#allocation8 + $0x44] sm:$0xf0]  ;;  %v8064_v19 = vor.u32 %v8652_v50, %v8061_v47 }
 0xdb6   : > { %5748 = vmatpush.bf16.msra.mxu3 %v8104_v52  ;;  %v8028_v34 = vor.u32 %v8645_v54, %v8027_v33 }
 0xdb8   : > { %5710 = vmatpush.bf16.msra.mxu0 %v8028_v34 }
 0xdba   : > { %v5408_v26 = vpop.f32.mrf.mxu3 }
 0xdbb   : > { %v5445_v9 = vpop.f32.mrf.mxu2  ;;  %v8661_v26 = vld [vmem:[#allocation8 + $0xc4] sm:$0xf0] }
 0xdbc   : > { %v5446_v12 = vadd.f32 %v5445_v9, %v5433_v11  ;;  %v8029_v9 = vld [vmem:[#allocation8 + $0x48] sm:$0xf0]  ;;  %v8092_v6 = vor.u32 %v8661_v26, %v8091_v58 }
 0xdbd   : > { %v8032_v2 = vor.u32 %v8644_v18, %v8029_v9  ;;  %v8093_v11 = vld [vmem:[#allocation8 + $0xc8] sm:$0xf0]  ;;  %v7991_v9 = vld [vmem:[%s10056_s14 + $0x2] sm:$0x3] }
 0xdbe   : > { %v8096_v25 = vor.u32 %v8660_v3, %v8093_v11  ;;  %5723 = vmatpush.bf16.msra.mxu1 %v8092_v6  ;;  %v7992_v3 = vld [vmem:[%s10057_s15 + $0x2] sm:$0x3]  ;;  %v5494_v11 = vperm.slane %v7991_v9, 0 }
 0xdbf   : > { %5736 = vmatpush.bf16.msra.mxu2 %v8032_v2 }
 0xdc0   : > { %5749 = vmatpush.bf16.msra.mxu3 %v8096_v25 }
 0xdc2   : > { %v5458_v13 = vpop.f32.mrf.mxu3 }
 0xdc3   : > { %v5459_v20 = vadd.f32 %v5458_v13, %v5446_v12  ;;  %v5447_v30 = vpop.f32.mrf.mxu2  ;;  %v8019_v12 = vld [vmem:[#allocation8 + $0x30] sm:$0xf]  ;;  %v8643_v13 = vld [vmem:[#allocation8 + $0x34] sm:$0xf0] }
 0xdc4   : > { %v8020_v30 = vor.u32 %v8643_v13, %v8019_v12  ;;  %5750 = vmatpush.bf16.msra.mxu3 %v8088_v32  ;;  %v5703_v32 = vperm.slane %v5541_v23, 0 }
 0xdc5   : > { %v5463_v15 = vadd.f32 %v5459_v20, %v9928_v60  ;;  %v8083_v20 = vld [vmem:[#allocation8 + $0xb0] sm:$0xf] }
 0xdc6   : > { %5711 = vmatpush.bf16.msra.mxu0 %v8020_v30  ;;  %v5502_v30 = vperm.slane %v7992_v3, 1 }
 0xdc7   : > { %v5468_v14 = vadd.f32 %v5463_v15, %v5462_v17 }
 0xdc9   : > { %5469 = vadd.xlane.f32.xlu2 %v5468_v14  ;;  %v8021_v14 = vld [vmem:[#allocation8 + $0x38] sm:$0xf0] }
 0xdca   : > { %v5460_v24 = vpop.f32.mrf.mxu3  ;;  %5712 = vmatpush.bf16.msra.mxu0 %v8012_v28 }
 0xe3c   : > { %v5470_v59 = vpop.xlane.xlu2 %5469 }
 0xe3d   : > { %v5471_v60 = vmul.f32 %v5470_v59, %v9165_v63  ;;  %v8016_v59 = vor.u32 %v8640_v55, %v8013_v4 }
 0xe3f   : > { %v10012_v35 = vsub.f32 %v5462_v17, %v5471_v60  ;;  %v10014_v36 = vsub.f32 %v5463_v15, %v5471_v60  ;;  %v8659_v17 = vld [vmem:[#allocation8 + $0xb4] sm:$0xf0]  ;;  %v8642_v15 = vld [vmem:[#allocation8 + $0x34] sm:$0xf]  ;;  %v8656_v60 = vld [vmem:[#allocation8 + $0xa4] sm:$0xf] }
 0xe40   : > { %v8084_v24 = vor.u32 %v8659_v17, %v8083_v20  ;;  %v8024_v22 = vor.u32 %v8642_v15, %v8021_v14  ;;  %v5501_v20 = vperm.slane %v7992_v3, 0 }
 0xe41   : > { %v5474_v61 = vmul.f32 %v10012_v35, %v10012_v35  ;;  %v5475_v62 = vmul.f32 %v10014_v36, %v10014_v36 }
 0xe42   : > { %5724 = vmatpush.bf16.msra.mxu1 %v8084_v24  ;;  %5737 = vmatpush.bf16.msra.mxu2 %v8024_v22 }
 0xe43   : > { %v5476_v10 = vadd.f32 %v5475_v62, %v5474_v61  ;;  %v8077_v61 = vld [vmem:[#allocation8 + $0xa8] sm:$0xf0] }
 0xe44   : > { %v8080_v62 = vor.u32 %v8656_v60, %v8077_v61  ;;  %v5761_v60 = vld [vmem:[%s10083_s28] sm:$0x3] }
 0xe45   : > { %5477 = vadd.xlane.f32.xlu0 %v5476_v10  ;;  %v8003_v10 = vld [vmem:[#allocation8 + $0x10] sm:$0xf]  ;;  %v5763_v61 = vperm.slane %v5761_v60, 0  ;;  %v5764_v38 = vperm.slane %v5761_v60, 1 }
 0xe46   : > { %5725 = vmatpush.bf16.msra.mxu1 %v8076_v5  ;;  %5738 = vmatpush.bf16.msra.mxu2 %v8016_v59  ;;  %v8004_v40 = vor.u32 %v8639_v39, %v8003_v10 }
 0xe47   : > { %5751 = vmatpush.bf16.msra.mxu3 %v8080_v62 }
 0xe48   : > { %5713 = vmatpush.bf16.msra.mxu0 %v8004_v40 }
 0xe4a   : > { %5726 = vmatpush.bf16.msra.mxu1 %v8068_v51  ;;  %5739 = vmatpush.bf16.msra.mxu2 %v8008_v41 }
 0xe4b   : > { %5752 = vmatpush.bf16.msra.mxu3 %v8072_v1 }
 0xe4c   : > { %5714 = vmatpush.bf16.msra.mxu0 %v7996_v0 }
 0xe4e   : > { %5727 = vmatpush.bf16.msra.mxu1 %v8060_v37  ;;  %5740 = vmatpush.bf16.msra.mxu2 %v8000_v8 }
 0xe4f   : > { %5753 = vmatpush.bf16.msra.mxu3 %v8064_v19 }
 0xeb8   : > { %v5478_v52 = vpop.xlane.xlu0 %5477 }
 0xeb9   : > { %v5479_v33 = vmul.f32 %v5478_v52, %v9165_v63  ;;  %v5495_v63 = vperm.slane %v7991_v9, 1 }
 0xebb   : > { %v5480_v54 = vadd.f32 1e-12, %v5479_v33 }
 0xebd   : > { %8809 = vrsqrt.f32 %v5480_v54  ;;  %vm5487_vm11 = vweird.f32 %v5480_v54 }
 0xec3   : > { %v8810_v58 = vpop.eup %8809 }
 0xec4   : > { %v5482_v34 = vmul.f32 %v8810_v58, %v5480_v54  ;;  %vm5488_vm10 = vweird.f32 %v8810_v58 }
 0xec5   : > { %vm5489_vm12 = vmor %vm5487_vm11, %vm5488_vm10 }
 0xec6   : > { %v5483_v26 = vmul.f32 %v8810_v58, %v5482_v34 }
 0xec8   : > { %v5484_v18 = vmul.f32 0.5, %v5483_v26 }
 0xeca   : > { %v5485_v6 = vsub.f32 1.5, %v5484_v18 }
 0xecc   : > { %v5486_v2 = vmul.f32 %v8810_v58, %v5485_v6 }
 0xece   : > { %v5490_v25 = vsel %vm5489_vm12, %v8810_v58, %v5486_v2 }
 0xecf   : > { %v5491_v12 = vmul.f32 %v5490_v25, %v10012_v35  ;;  %v5492_v13 = vmul.f32 %v5490_v25, %v10014_v36 }
 0xed1   : > { %v5498_v17 = vmul.f32 %v5494_v11, %v5491_v12  ;;  %v5499_v15 = vmul.f32 %v5495_v63, %v5492_v13 }
 0xed3   : > { %v5505_v14 = vadd.f32 %v5501_v20, %v5498_v17  ;;  %v5506_v24 = vadd.f32 %v5502_v30, %v5499_v15 }
 0xed5   : > { %v5507_v22 = vpack.c.bf16 %v5505_v14, %v5505_v14  ;;  %v5508_v56 = vpack.c.bf16 %v5506_v24, %v5506_v24 }
 0xed7   : > { %5715 = vmatmul.bf16.vlgmr.msra.gmra.mxu0 %v5507_v22  ;;  %5728 = vmatmul.bf16.vlgmr.msra.gmra.mxu1 %v5508_v56 }
 0xed8   : > { %5741 = vmatmul.bf16.vlgmr.msra.gmra.mxu2 %v5507_v22  ;;  %5754 = vmatmul.bf16.vlgmr.msra.gmra.mxu3 %v5508_v56 }
 0xf54   : > { %v5716_v35 = vpop.f32.mrf.mxu0  ;;  %v5729_v49 = vpop.f32.mrf.mxu1 }
 0xf55   : > { %v5717_v36 = vadd.f32 %v5716_v35, %v5703_v32 }
 0xf57   : > { %v5730_v45 = vadd.f32 %v5729_v49, %v5717_v36 }
 0xf59   : > { %8811 = vtanh.f32 %v5730_v45 }
 0xf5b   : > { %v5742_v28 = vpop.f32.mrf.mxu2  ;;  %v5755_v31 = vpop.f32.mrf.mxu3 }
 0xf5c   : > { %v5743_v55 = vadd.f32 %v5742_v28, %v5704_v27  ;;  %v5718_v4 = vpop.f32.mrf.mxu0  ;;  %v5731_v5 = vpop.f32.mrf.mxu1 }
 0xf5e   : > { %v5756_v59 = vadd.f32 %v5755_v31, %v5743_v55 }
 0xf5f   : > { %v8812_v62 = vpop.eup %8811 }
 0xf60   : > { %8813 = vtanh.f32 %v5756_v59  ;;  %v5767_v40 = vmul.f32 %v8812_v62, %v5763_v61 }
 0xf62   : > { %v5770_v29 = vsel %vm5769_vm13, %v5767_v40, 0.0 }
 0xf63   : > { %v5744_v10 = vpop.f32.mrf.mxu2  ;;  %v5757_v39 = vpop.f32.mrf.mxu3 }
 0xf66   : > { %v8814_v21 = vpop.eup %8813 }
 0xf67   : > { %v5768_v57 = vmul.f32 %v8814_v21, %v5764_v38 }
 0xf69   : > { %v5771_v51 = vsel %vm5769_vm13, %v5768_v57, 0.0 }
 0xf6a   : > { %v5772_v41 = vadd.f32 %v5771_v51, %v5770_v29 }
 0xf6c   : > { %5773 = vadd.xlane.f32.xlu1 %v5772_v41 }
 0xfdf   : > { %v5774_v7 = vpop.xlane.xlu1 %5773 }
 0xfe0   : > { %v5776_v1 = vadd.f32 %v5775_v53, %v5774_v7 }
 0xfe2   : > { %8668 = vpush %v5776_v1 }
0x1013   : > { %s8669_s27 = spop %8668 }
0x1014   : > { %v5779_v42 = vstv %s8669_s27 }
0x1015   : > { %5781 = vst [vmem:[%s710_s1] sm:$0xff] %v5779_v42 }
0x1016 PF: > { %s10085_s22 = sld [smem:[#allocation13_spill]] }
0x101c   : > { %s35_s23 = sadd.s32 1, %s10085_s22  }
0x101d   : > { %p32_p7 = scmp.ge.s32.totalorder %s35_s23, 4  }
0x101f   :  { %34 = sbr.rel (!%p32_p7) target bundleno = 13 (0xd), region = 162 }
0x1024   :  { %5801 = vsyncpa [#allocation4], 1 }
0x1025   :  { %5803 = vsyncpa [#allocation4 + $0x1], 1 }
0x1026   :  { %5804 = vsyncpa [#allocation6], 1 }
0x1027   :  { %5805 = vsyncpa [#allocation9], 1 }

</bundles_post_ra>
